<compile_context>
chip_gen: v5e
topology: v5e:2x2
jax: 0.10.0
libtpu: 0.0.40
codegen_flags: <defaults>
</compile_context>

<pallas_src>
import jax
import jax.numpy as jnp
from jax.experimental import pallas as pl
from jax.experimental.pallas import tpu as pltpu

BN_EPS = 1e-5
_DOT_DTYPE = jnp.bfloat16            # MXU operand / scratch dtype (accumulation stays f32)

_CP = pltpu.CompilerParams(
    dimension_semantics=("parallel",),          # batch grid axis -> megacore sharding on v7x
    vmem_limit_bytes=48 * 1024 * 1024,          # fits v7x's 64 MiB/TC; raise on v5e/v6e for big images
)


# ----------------------------- in-kernel helpers ---------------------------- #

def _halo_zero(pad_ref):
    """Zero only the two halo rows of a (H+2, W*C) padded scratch.  Width padding is folded
    into the banded weights, so there is no column halo.  Runs every grid step (cheap: two
    narrow row stores) so correctness does not depend on how the grid is split across cores."""
    zrow = jnp.zeros((1, pad_ref.shape[1]), pad_ref.dtype)
    pad_ref[0:1, :] = zrow
    pad_ref[pad_ref.shape[0] - 1:pad_ref.shape[0], :] = zrow


def _conv3x3(pad_ref, wb_ref, s_ref, b_ref, H):
    """Banded SAME 3x3 conv + folded BN + ReLU.

    pad_ref : (H+2, W*Cin) bf16 scratch (rows 0 / H+1 are the zero halo).
    wb_ref  : (3, W*Cin, W*Cout) bf16 banded weight (one slab per kernel row dy).
    Returns an (H, W*Cout) f32 value already in the lane-dense output layout.
    """
    acc = jnp.dot(pad_ref[0:H, :], wb_ref[0], preferred_element_type=jnp.float32)
    for dy in (1, 2):
        acc = acc + jnp.dot(pad_ref[dy:dy + H, :], wb_ref[dy],
                            preferred_element_type=jnp.float32)
    return jnp.maximum(acc * s_ref[...] + b_ref[...], 0.0)


# --------------------------------- kernels ---------------------------------- #

def _dc_kernel(x_ref, wb1, s1, b1, wb2, s2, b2, o_ref, pad1, pad2):
    """InConv / DoubleConv: (conv3x3 -> BN -> ReLU) x 2, fully fused, lane-dense I/O."""
    H = o_ref.shape[0]
    _halo_zero(pad1)
    _halo_zero(pad2)
    pad1[1:H + 1, :] = x_ref[...].astype(pad1.dtype)
    y1 = _conv3x3(pad1, wb1, s1, b1, H)
    pad2[1:H + 1, :] = y1.astype(pad2.dtype)
    o_ref[...] = _conv3x3(pad2, wb2, s2, b2, H)


def _down_kernel(x_ref, sel_e, sel_o, wb1, s1, b1, wb2, s2, b2, o_ref, pad1, pad2):
    """Down block: MaxPool2d(2) + DoubleConv in one kernel.  Row pooling uses two strided
    sublane loads; column pooling is folded into two 0/1 selection matmuls so the pooled map
    stays lane-dense with zero relayout."""
    H = o_ref.shape[0]
    _halo_zero(pad1)
    _halo_zero(pad2)
    r = jnp.maximum(x_ref[pl.ds(0, H, stride=2), :],
                    x_ref[pl.ds(1, H, stride=2), :]).astype(_DOT_DTYPE)
    pooled = jnp.maximum(
        jnp.dot(r, sel_e[...], preferred_element_type=jnp.float32),
        jnp.dot(r, sel_o[...], preferred_element_type=jnp.float32))
    pad1[1:H + 1, :] = pooled.astype(pad1.dtype)
    y1 = _conv3x3(pad1, wb1, s1, b1, H)
    pad2[1:H + 1, :] = y1.astype(pad2.dtype)
    o_ref[...] = _conv3x3(pad2, wb2, s2, b2, H)


def _make_up_kernel(x1_diff, x2_diff):
    """Up block, fully fused: [optional f_t2 - f_t1 diff] + ConvTranspose2d(2, stride=2) +
    channel-concat + DoubleConv.  The upsampled tensor never leaves VMEM."""

    def kernel(*refs):
        i = 0
        if x1_diff:
            x1 = refs[i][...] - refs[i + 1][...]
            i += 2
        else:
            x1 = refs[i][...]
            i += 1
        if x2_diff:
            x2 = refs[i][...] - refs[i + 1][...]
            i += 2
        else:
            x2 = refs[i][...]
            i += 1
        rw, rb, wb1a, wb1b, s1, b1, wb2, s2, b2 = refs[i:i + 9]
        o_ref = refs[i + 9]
        pada, padb, pad2 = refs[i + 10:i + 13]

        H2 = o_ref.shape[0]
        _halo_zero(pada)
        _halo_zero(padb)
        _halo_zero(pad2)

        # Skip branch straight into its padded scratch (first half of the channel concat).
        pada[1:H2 + 1, :] = x2.astype(pada.dtype)

        # ConvTranspose2d(k=2, s=2): one block-diagonal matmul per output-row parity; rows are
        # interleaved in-register and written once into the second padded scratch.
        x1b = x1.astype(_DOT_DTYPE)
        up0 = jnp.dot(x1b, rw[0], preferred_element_type=jnp.float32) + rb[...]
        up1 = jnp.dot(x1b, rw[1], preferred_element_type=jnp.float32) + rb[...]
        up = jnp.stack([up0, up1], axis=1).reshape(H2, up0.shape[1])
        padb[1:H2 + 1, :] = up.astype(padb.dtype)

        # conv1 over concat([x2, up]) realised as split banded matmuls (no channel concat).
        acc = None
        for dy in range(3):
            part = (jnp.dot(pada[dy:dy + H2, :], wb1a[dy], preferred_element_type=jnp.float32)
                    + jnp.dot(padb[dy:dy + H2, :], wb1b[dy], preferred_element_type=jnp.float32))
            acc = part if acc is None else acc + part
        y1 = jnp.maximum(acc * s1[...] + b1[...], 0.0)

        pad2[1:H2 + 1, :] = y1.astype(pad2.dtype)
        o_ref[...] = _conv3x3(pad2, wb2, s2, b2, H2)

    return kernel


def _head_kernel(x_ref, q_ref, b_ref, o_ref):
    """1x1 conv (OutConv) as a block-diagonal matmul; kept in f32 for logit fidelity."""
    o_ref[...] = jnp.dot(x_ref[...], q_ref[...],
                         preferred_element_type=jnp.float32) + b_ref[...]


# ------------------------------ JAX wrappers -------------------------------- #

def _act_spec(H, WC):
    """One batch item per grid step of a (B, H, W*C) lane-dense activation."""
    return pl.BlockSpec((None, H, WC), lambda n: (n, 0, 0))


def _half_spec(H, WC, off):
    """Like _act_spec, but reading the t1/t2 half of a (2N, H, W*C) stacked activation."""
    return pl.BlockSpec((None, H, WC), lambda n, off=off: (n + off, 0, 0))


def _param_spec(a):
    nd = a.ndim
    return pl.BlockSpec(a.shape, lambda n, nd=nd: (0,) * nd)


def double_conv(x, p, *, pool):
    """InConv (pool=False) or Down block (pool=True) over a lane-dense (B, H, W*C) input."""
    B, H_in, WC_in = x.shape
    H = H_in // 2 if pool else H_in
    WC_mid = p["s1t"].shape[1]
    WC_out = p["s2t"].shape[1]
    kernel = _down_kernel if pool else _dc_kernel
    extra = (p["sel_even"], p["sel_odd"]) if pool else ()
    args = (x,) + extra + (p["wb1"], p["s1t"], p["b1t"], p["wb2"], p["s2t"], p["b2t"])
    return pl.pallas_call(
        kernel,
        grid=(B,),
        in_specs=[_act_spec(H_in, WC_in)] + [_param_spec(a) for a in args[1:]],
        out_specs=_act_spec(H, WC_out),
        out_shape=jax.ShapeDtypeStruct((B, H, WC_out), jnp.float32),
        scratch_shapes=[pltpu.VMEM((H + 2, p["wb1"].shape[1]), _DOT_DTYPE),
                        pltpu.VMEM((H + 2, WC_mid), _DOT_DTYPE)],
        compiler_params=_CP,
    )(*args)


def up_block(x1_args, x2_args, p, grid_b):
    """Fused Up block.  x1_args / x2_args are lists of (array, BlockSpec); a length-2 list
    means the kernel computes the element-wise difference (t2 - t1) of the two views in VMEM
    (used by the change decoder, replacing standalone subtraction kernels)."""
    kernel = _make_up_kernel(len(x1_args) == 2, len(x2_args) == 2)
    feats = [a for a, _ in x1_args] + [a for a, _ in x2_args]
    fspecs = [s for _, s in x1_args] + [s for _, s in x2_args]
    pars = (p["rw"], p["rbt"], p["wb1a"], p["wb1b"], p["s1t"], p["b1t"],
            p["wb2"], p["s2t"], p["b2t"])
    H2 = 2 * x1_args[0][0].shape[1]
    assert x2_args[0][0].shape[1] == H2  # TODO(synk): odd sizes (F.pad path) unsupported.
    WC_mid = p["s1t"].shape[1]
    WC_out = p["s2t"].shape[1]
    return pl.pallas_call(
        kernel,
        grid=(grid_b,),
        in_specs=fspecs + [_param_spec(a) for a in pars],
        out_specs=_act_spec(H2, WC_out),
        out_shape=jax.ShapeDtypeStruct((grid_b, H2, WC_out), jnp.float32),
        scratch_shapes=[pltpu.VMEM((H2 + 2, p["wb1a"].shape[1]), _DOT_DTYPE),
                        pltpu.VMEM((H2 + 2, p["wb1b"].shape[1]), _DOT_DTYPE),
                        pltpu.VMEM((H2 + 2, WC_mid), _DOT_DTYPE)],
        compiler_params=_CP,
    )(*feats, *pars)


def out_head(x, p):
    B, H, WC_in = x.shape
    WC_out = p["bt"].shape[1]
    return pl.pallas_call(
        _head_kernel,
        grid=(B,),
        in_specs=[_act_spec(H, WC_in), _param_spec(p["q"]), _param_spec(p["bt"])],
        out_specs=_act_spec(H, WC_out),
        out_shape=jax.ShapeDtypeStruct((B, H, WC_out), jnp.float32),
        compiler_params=_CP,
    )(x, p["q"], p["bt"])


def siamese_unet_forward(x_t1, x_t2, params):
    """Mirrors DualTaskSiameseUNet.forward.  NCHW at the boundary; lane-dense (B, H, W*C)
    internally.  The two siamese passes are stacked on the batch axis so the shared-weight
    encoder / semantic decoder run as single deep-grid pallas_calls."""
    N, Cin, H, W = x_t1.shape

    def to_flat(x):
        return jnp.transpose(x, (0, 2, 3, 1)).reshape(x.shape[0], H, W * Cin)

    xs = jnp.concatenate([to_flat(x_t1), to_flat(x_t2)], axis=0)      # (2N, H, W*Cin)

    feats = [double_conv(xs, params["inc"], pool=False)]              # InConv
    for p in params["down"]:                                          # Encoder (Down blocks)
        feats.append(double_conv(feats[-1], p, pool=True))
    feats.reverse()                                                   # deepest first

    def whole(f):
        return (f, _act_spec(f.shape[1], f.shape[2]))

    def halves(f):
        # (t2 view, t1 view) of a stacked (2N, h, w*c) feature -> in-kernel diff = f_t2 - f_t1.
        return [(f, _half_spec(f.shape[1], f.shape[2], N)),
                (f, _half_spec(f.shape[1], f.shape[2], 0))]

    # ---- change decoder: feature differences fused into the Up kernels (no sub kernels).
    x1_args = halves(feats[0])
    for i, p in enumerate(params["dec_change"]):
        x1 = up_block(x1_args, halves(feats[i + 1]), p, N)
        x1_args = [whole(x1)]
    out_change = out_head(x1_args[0][0], params["outc_change"])

    # ---- semantic decoder: t1 and t2 decoded together (shared weights, grid of 2N).
    xsem = feats[0]
    for i, p in enumerate(params["dec_sem"]):
        xsem = up_block([whole(xsem)], [whole(feats[i + 1])], p, 2 * N)
    out_sem = out_head(xsem, params["outc_sem"])
    out_sem_t1, out_sem_t2 = out_sem[:N], out_sem[N:]

    out_ch = params["outc_sem"]["b"].shape[1]

    def to_nchw(y):
        return jnp.transpose(y.reshape(y.shape[0], H, W, out_ch), (0, 3, 1, 2))

    return to_nchw(out_change), to_nchw(out_sem_t1), to_nchw(out_sem_t2)


# ------------------------- weight packing (lane-dense) ----------------------- #

def _band_conv(w_hwio, W, dtype=_DOT_DTYPE):
    """(3,3,Cin,Cout) HWIO weight -> (3, W*Cin, W*Cout) banded matrices (one per kernel row).

    band[dy][(w+dx-1)*Cin + ci, w*Cout + co] = w_hwio[dy, dx, ci, co]; taps falling outside
    [0, W) are dropped, which is exactly SAME zero-padding along the width axis.
    """
    Cin, Cout = w_hwio.shape[2], w_hwio.shape[3]
    band = jnp.zeros((3, W, Cin, W, Cout), jnp.float32)
    for dx in range(3):
        w_lo, w_hi = max(0, 1 - dx), min(W, W + 1 - dx)
        ws = jnp.arange(w_lo, w_hi)
        shift = jnp.zeros((W, W), jnp.float32).at[ws + dx - 1, ws].set(1.0)
        band = band + jnp.einsum('jw,dio->djiwo', shift, w_hwio[:, dx].astype(jnp.float32))
    return band.reshape(3, W * Cin, W * Cout).astype(dtype)


def _pool_select(W_in, C, dtype=_DOT_DTYPE):
    """Two (W_in*C, (W_in//2)*C) 0/1 matrices selecting even / odd width-groups (MaxPool cols)."""
    W = W_in // 2
    sel = jnp.zeros((2, W_in, W), jnp.float32)
    sel = sel.at[0, 0::2, :].set(jnp.eye(W, dtype=jnp.float32))
    sel = sel.at[1, 1::2, :].set(jnp.eye(W, dtype=jnp.float32))
    S = jnp.einsum('kvw,cd->kvcwd', sel, jnp.eye(C, dtype=jnp.float32))
    return S.reshape(2, W_in * C, W * C).astype(dtype)


def _block_deconv(w_pt, W, dtype=_DOT_DTYPE):
    """(C, Co, 2, 2) ConvTranspose2d weight -> (2, W*C, 2*W*Co) block-diagonal matrices
    (one per output-row parity dy); column order (2w+dx)*Co + co."""
    eye = jnp.eye(W, dtype=jnp.float32)
    R = jnp.einsum('jw,iogx->gjiwxo', eye, w_pt.astype(jnp.float32))
    C, Co = w_pt.shape[0], w_pt.shape[1]
    return R.reshape(2, W * C, W * 2 * Co).astype(dtype)


def _block_1x1(w_mat, W):
    """(Cin, Cout) 1x1 weight -> (W*Cin, W*Cout) block-diagonal matrix (kept in f32)."""
    Cin, Cout = w_mat.shape
    Q = jnp.einsum('jw,io->jiwo', jnp.eye(W, dtype=jnp.float32), w_mat)
    return Q.reshape(W * Cin, W * Cout)


def _tile_vec(v, W):
    return jnp.tile(v.reshape(-1), W).reshape(1, -1)


def _pack_conv(c, W):
    return dict(wb=_band_conv(c["w_hwio"], W), st=_tile_vec(c["scale"], W),
                bt=_tile_vec(c["bias"], W))


def _pack_double(c1, c2, W):
    p1, p2 = _pack_conv(c1, W), _pack_conv(c2, W)
    return dict(c1=c1, c2=c2,
                wb1=p1["wb"], s1t=p1["st"], b1t=p1["bt"],
                wb2=p2["wb"], s2t=p2["st"], b2t=p2["bt"])


# -------------------------- deterministic parameters ------------------------ #

def _init_conv_bn(key, cin, cout):
    kw, kb, kg, kbt, km, kv = jax.random.split(key, 6)
    bound = (1.0 / (cin * 9)) ** 0.5
    w_oihw = jax.random.uniform(kw, (cout, cin, 3, 3), jnp.float32, -bound, bound)
    b = jax.random.uniform(kb, (cout,), jnp.float32, -bound, bound)
    gamma = 1.0 + 0.1 * jax.random.normal(kg, (cout,), jnp.float32)
    beta = 0.1 * jax.random.normal(kbt, (cout,), jnp.float32)
    mean = 0.05 * jax.random.normal(km, (cout,), jnp.float32)
    var = 0.5 + jax.random.uniform(kv, (cout,), jnp.float32)
    scale = gamma / jnp.sqrt(var + BN_EPS)                 # folded inference BatchNorm
    bias = beta + (b - mean) * scale                       # conv bias folded in as well
    w_hwio = jnp.transpose(w_oihw, (2, 3, 1, 0))           # (3, 3, Cin, Cout)
    return dict(w_hwio=w_hwio, scale=scale.reshape(1, cout), bias=bias.reshape(1, cout))


def _init_deconv(key, c):
    kw, kb = jax.random.split(key)
    bound = (1.0 / (c * 4)) ** 0.5
    w_pt = jax.random.uniform(kw, (c, c, 2, 2), jnp.float32, -bound, bound)  # (Cin, Cout, kH, kW)
    b = jax.random.uniform(kb, (c,), jnp.float32, -bound, bound)
    return dict(w_pt=w_pt, b_vec=b)


def _init_outc(key, cin, cout, W):
    kw, kb = jax.random.split(key)
    bound = (1.0 / cin) ** 0.5
    w_pt = jax.random.uniform(kw, (cout, cin, 1, 1), jnp.float32, -bound, bound)
    b = jax.random.uniform(kb, (cout,), jnp.float32, -bound, bound)
    w_mat = jnp.transpose(w_pt[:, :, 0, 0], (1, 0))
    return dict(w_mat=w_mat, b=b.reshape(1, cout),
                q=_block_1x1(w_mat, W), bt=jnp.tile(b, W).reshape(1, W * cout))


def build_decoder_params(key, topology, W):
    n = len(topology)
    up_topo = [topology[0]] + [topology[i + 1] if i != n - 1 else topology[i] for i in range(n)]
    keys = jax.random.split(key, n)
    layers = []
    w_lvl = W // (2 ** (n - 1))                 # conv width of the deepest decoder level
    for j, idx in enumerate(reversed(range(n))):
        cu = up_topo[idx]                       # ConvTranspose channels == x1 (and skip) channels
        cin = 2 * cu
        cout = up_topo[idx - 1] if idx != 0 else up_topo[idx]
        ku, k1, k2 = jax.random.split(keys[j], 3)
        up = _init_deconv(ku, cu)
        c1 = _init_conv_bn(k1, cin, cout)
        c2 = _init_conv_bn(k2, cout, cout)
        pk2 = _pack_conv(c2, w_lvl)
        layers.append(dict(
            up=up, c1=c1, c2=c2,
            rw=_block_deconv(up["w_pt"], w_lvl // 2),
            rbt=jnp.tile(up["b_vec"], w_lvl).reshape(1, -1),
            wb1a=_band_conv(c1["w_hwio"][:, :, :cu, :], w_lvl),   # skip (x2) half of conv1
            wb1b=_band_conv(c1["w_hwio"][:, :, cu:, :], w_lvl),   # upsampled (x1) half
            s1t=_tile_vec(c1["scale"], w_lvl), b1t=_tile_vec(c1["bias"], w_lvl),
            wb2=pk2["wb"], s2t=pk2["st"], b2t=pk2["bt"]))
        w_lvl *= 2
    return layers


def build_params(key, in_ch, out_ch, topology, W):
    n = len(topology)
    k_i, k_e, k_dc, k_ds, k_oc, k_os = jax.random.split(key, 6)

    ki1, ki2 = jax.random.split(k_i)
    inc = _pack_double(_init_conv_bn(ki1, in_ch, topology[0]),
                       _init_conv_bn(ki2, topology[0], topology[0]), W)

    enc_keys = jax.random.split(k_e, n)
    downs, w_lvl = [], W
    for i in range(n):
        cin = topology[i]
        cout = topology[i + 1] if i != n - 1 else topology[i]
        w_in, w_lvl = w_lvl, w_lvl // 2
        k1, k2 = jax.random.split(enc_keys[i])
        d = _pack_double(_init_conv_bn(k1, cin, cout), _init_conv_bn(k2, cout, cout), w_lvl)
        S = _pool_select(w_in, cin)
        d["sel_even"], d["sel_odd"] = S[0], S[1]
        downs.append(d)

    # NOTE: outc_change_sem (OutConv(2, 1)) exists in the PyTorch module but is unused in forward.
    return dict(
        inc=inc,
        down=downs,
        dec_change=build_decoder_params(k_dc, topology, W),
        dec_sem=build_decoder_params(k_ds, topology, W),
        outc_change=_init_outc(k_oc, topology[0], out_ch, W),
        outc_sem=_init_outc(k_os, topology[0], out_ch, W),
    )


# ------------------------------ pure-JAX reference -------------------------- #

def _conv_bn_relu_ref(x, c):
    y = jax.lax.conv_general_dilated(x, c["w_hwio"], (1, 1), "SAME",
                                     dimension_numbers=("NHWC", "HWIO", "NHWC"),
                                     precision=jax.lax.Precision.HIGHEST)
    return jnp.maximum(y * c["scale"] + c["bias"], 0.0)


def _double_conv_ref(x, p):
    return _conv_bn_relu_ref(_conv_bn_relu_ref(x, p["c1"]), p["c2"])


def _maxpool_ref(x):
    return jax.lax.reduce_window(x, -jnp.inf, jax.lax.max, (1, 2, 2, 1), (1, 2, 2, 1), "VALID")


def _deconv_ref(x, up):
    N, H, W, _ = x.shape
    y = jnp.einsum("nhwc,cofg->nhfwgo", x, up["w_pt"], precision=jax.lax.Precision.HIGHEST)
    return y.reshape(N, 2 * H, 2 * W, -1) + up["b_vec"]


def _up_ref(x1, x2, p):
    u = _deconv_ref(x1, p["up"])
    return _double_conv_ref(jnp.concatenate([x2, u], axis=-1), p)


def _conv1x1_ref(x, p):
    return jnp.einsum("nhwc,co->nhwo", x, p["w_mat"], precision=jax.lax.Precision.HIGHEST) + p["b"]


def forward_ref(x_t1, x_t2, params):
    def encode(x_nchw):
        x = jnp.transpose(x_nchw, (0, 2, 3, 1))
        x = _double_conv_ref(x, params["inc"])
        feats = [x]
        for p in params["down"]:
            feats.append(_double_conv_ref(_maxpool_ref(feats[-1]), p))
        feats.reverse()
        return feats

    f1, f2 = encode(x_t1), encode(x_t2)
    fd = [b - a for a, b in zip(f1, f2)]

    def decode(feats, dec_p):
        x1 = feats[0]
        for i, p in enumerate(dec_p):
            x1 = _up_ref(x1, feats[i + 1], p)
        return x1

    oc = _conv1x1_ref(decode(fd, params["dec_change"]), params["outc_change"])
    os2 = _conv1x1_ref(decode(f2, params["dec_sem"]), params["outc_sem"])
    os1 = _conv1x1_ref(decode(f1, params["dec_sem"]), params["outc_sem"])
    t = lambda z: jnp.transpose(z, (0, 3, 1, 2))
    return t(oc), t(os1), t(os2)


# ----------------------------------- main ----------------------------------- #

if __name__ == "__main__":
    key = jax.random.PRNGKey(0)
    topology = (4, 8)            # stand-in for cfg.MODEL.TOPOLOGY
    in_ch, out_ch = 4, 2         # cfg.MODEL.IN_CHANNELS / OUT_CHANNELS
    N, H, W = 2, 16, 16

    kx1, kx2, kp = jax.random.split(key, 3)
    x_t1 = jax.random.normal(kx1, (N, in_ch, H, W), jnp.float32)   # NCHW inputs
    x_t2 = jax.random.normal(kx2, (N, in_ch, H, W), jnp.float32)
    params = build_params(kp, in_ch, out_ch, topology, W)

    fwd = jax.jit(siamese_unet_forward)
    outs = fwd(x_t1, x_t2, params)
    outs = [jax.block_until_ready(o) for o in outs]

    # Sanity-check against a pure-JAX f32 reference.  The Pallas kernels use bf16 MXU
    # operands (f32 accumulation), hence the slightly loose tolerance.
    refs = forward_ref(x_t1, x_t2, params)
    assert len(outs) == len(refs) == 3
    for o, r in zip(outs, refs):
        assert o.shape == r.shape, (o.shape, r.shape)
        assert jnp.allclose(o, r, atol=6e-2, rtol=6e-2), float(jnp.max(jnp.abs(o - r)))

    print("KERNEL_OK")
</pallas_src>

<mosaic_0001>
module attributes {stable_mosaic.version = 11 : i64} {
  func.func @_down_kernel(%arg0: i32, %arg1: memref<1x16x64xf32, #tpu.memory_space<vmem>>, %arg2: memref<64x32xbf16, #tpu.memory_space<vmem>>, %arg3: memref<64x32xbf16, #tpu.memory_space<vmem>>, %arg4: memref<3x32x64xbf16, #tpu.memory_space<vmem>>, %arg5: memref<1x64xf32, #tpu.memory_space<vmem>>, %arg6: memref<1x64xf32, #tpu.memory_space<vmem>>, %arg7: memref<3x64x64xbf16, #tpu.memory_space<vmem>>, %arg8: memref<1x64xf32, #tpu.memory_space<vmem>>, %arg9: memref<1x64xf32, #tpu.memory_space<vmem>>, %arg10: memref<1x8x64xf32, #tpu.memory_space<vmem>>, %arg11: memref<10x32xbf16, #tpu.memory_space<vmem>>, %arg12: memref<10x64xbf16, #tpu.memory_space<vmem>>) attributes {dimension_semantics = [#tpu.dimension_semantics<parallel>], iteration_bounds = array<i64: 4>, scalar_prefetch = 0 : i64, scratch_operands = 2 : i64, tpu.core_type = #tpu.core_type<tc>, window_params = [{transform_indices = @transform_0, window_bounds = array<i64: 1, 16, 64>}, {pipeline_mode = #tpu.pipeline_mode<synchronous>, transform_indices = @transform_1, window_bounds = array<i64: 64, 32>}, {pipeline_mode = #tpu.pipeline_mode<synchronous>, transform_indices = @transform_2, window_bounds = array<i64: 64, 32>}, {pipeline_mode = #tpu.pipeline_mode<synchronous>, transform_indices = @transform_3, window_bounds = array<i64: 3, 32, 64>}, {pipeline_mode = #tpu.pipeline_mode<synchronous>, transform_indices = @transform_4, window_bounds = array<i64: 1, 64>}, {pipeline_mode = #tpu.pipeline_mode<synchronous>, transform_indices = @transform_5, window_bounds = array<i64: 1, 64>}, {pipeline_mode = #tpu.pipeline_mode<synchronous>, transform_indices = @transform_6, window_bounds = array<i64: 3, 64, 64>}, {pipeline_mode = #tpu.pipeline_mode<synchronous>, transform_indices = @transform_7, window_bounds = array<i64: 1, 64>}, {pipeline_mode = #tpu.pipeline_mode<synchronous>, transform_indices = @transform_8, window_bounds = array<i64: 1, 64>}, {transform_indices = @transform_9, window_bounds = array<i64: 1, 8, 64>}]} {
    %cst = arith.constant 0.000000e+00 : bf16
    %0 = vector.broadcast %cst : bf16 to vector<1x32xbf16>
    %c0 = arith.constant 0 : index
    %c0_0 = arith.constant 0 : index
    %1 = vector.load %arg11[%c0, %c0_0] : memref<10x32xbf16, #tpu.memory_space<vmem>>, vector<1x32xbf16>
    tpu.vector_store %arg11[%c0, %c0_0], %0 {strides = array<i32>} : memref<10x32xbf16, #tpu.memory_space<vmem>>, vector<1x32xbf16>,
    %c9 = arith.constant 9 : index
    %c0_1 = arith.constant 0 : index
    %2 = vector.load %arg11[%c9, %c0_1] : memref<10x32xbf16, #tpu.memory_space<vmem>>, vector<1x32xbf16>
    tpu.vector_store %arg11[%c9, %c0_1], %0 {strides = array<i32>} : memref<10x32xbf16, #tpu.memory_space<vmem>>, vector<1x32xbf16>,
    %cst_2 = arith.constant 0.000000e+00 : bf16
    %3 = vector.broadcast %cst_2 : bf16 to vector<1x64xbf16>
    %c0_3 = arith.constant 0 : index
    %c0_4 = arith.constant 0 : index
    %4 = vector.load %arg12[%c0_3, %c0_4] : memref<10x64xbf16, #tpu.memory_space<vmem>>, vector<1x64xbf16>
    tpu.vector_store %arg12[%c0_3, %c0_4], %3 {strides = array<i32>} : memref<10x64xbf16, #tpu.memory_space<vmem>>, vector<1x64xbf16>,
    %c9_5 = arith.constant 9 : index
    %c0_6 = arith.constant 0 : index
    %5 = vector.load %arg12[%c9_5, %c0_6] : memref<10x64xbf16, #tpu.memory_space<vmem>>, vector<1x64xbf16>
    tpu.vector_store %arg12[%c9_5, %c0_6], %3 {strides = array<i32>} : memref<10x64xbf16, #tpu.memory_space<vmem>>, vector<1x64xbf16>,
    %c0_7 = arith.constant 0 : index
    %c0_8 = arith.constant 0 : index
    %c0_9 = arith.constant 0 : index
    %6 = tpu.strided_load %arg1[%c0_7, %c0_8, %c0_9] {strides = array<i32: 1, 2, 1>} : memref<1x16x64xf32, #tpu.memory_space<vmem>>, vector<1x8x64xf32>
    %7 = vector.shape_cast %6 : vector<1x8x64xf32> to vector<8x64xf32>
    %c0_10 = arith.constant 0 : index
    %c1 = arith.constant 1 : index
    %c0_11 = arith.constant 0 : index
    %8 = tpu.strided_load %arg1[%c0_10, %c1, %c0_11] {strides = array<i32: 1, 2, 1>} : memref<1x16x64xf32, #tpu.memory_space<vmem>>, vector<1x8x64xf32>
    %9 = vector.shape_cast %8 : vector<1x8x64xf32> to vector<8x64xf32>
    %10 = arith.maximumf %7, %9 : vector<8x64xf32>
    %11 = arith.truncf %10 : vector<8x64xf32> to vector<8x64xbf16>
    %c0_12 = arith.constant 0 : index
    %c0_13 = arith.constant 0 : index
    %12 = vector.load %arg2[%c0_12, %c0_13] : memref<64x32xbf16, #tpu.memory_space<vmem>>, vector<64x32xbf16>
    %cst_14 = arith.constant dense<0.000000e+00> : vector<8x32xf32>
    %13 = tpu.matmul %11, %12, %cst_14 {dimension_numbers = #tpu.dot_dimension_numbers<[1], [0], [0], [1], [0, 0, 1, 1], [], []>} : vector<8x64xbf16>, vector<64x32xbf16>, vector<8x32xf32> -> vector<8x32xf32>
    %c0_15 = arith.constant 0 : index
    %c0_16 = arith.constant 0 : index
    %14 = vector.load %arg3[%c0_15, %c0_16] : memref<64x32xbf16, #tpu.memory_space<vmem>>, vector<64x32xbf16>
    %cst_17 = arith.constant dense<0.000000e+00> : vector<8x32xf32>
    %15 = tpu.matmul %11, %14, %cst_17 {dimension_numbers = #tpu.dot_dimension_numbers<[1], [0], [0], [1], [0, 0, 1, 1], [], []>} : vector<8x64xbf16>, vector<64x32xbf16>, vector<8x32xf32> -> vector<8x32xf32>
    %16 = arith.maximumf %13, %15 : vector<8x32xf32>
    %17 = arith.truncf %16 : vector<8x32xf32> to vector<8x32xbf16>
    %c1_18 = arith.constant 1 : index
    %c0_19 = arith.constant 0 : index
    %18 = vector.load %arg11[%c1_18, %c0_19] : memref<10x32xbf16, #tpu.memory_space<vmem>>, vector<8x32xbf16>
    tpu.vector_store %arg11[%c1_18, %c0_19], %17 {strides = array<i32>} : memref<10x32xbf16, #tpu.memory_space<vmem>>, vector<8x32xbf16>,
    %c0_20 = arith.constant 0 : index
    %c0_21 = arith.constant 0 : index
    %19 = vector.load %arg11[%c0_20, %c0_21] : memref<10x32xbf16, #tpu.memory_space<vmem>>, vector<8x32xbf16>
    %c0_22 = arith.constant 0 : index
    %c0_23 = arith.constant 0 : index
    %c0_24 = arith.constant 0 : index
    %20 = vector.load %arg4[%c0_22, %c0_23, %c0_24] : memref<3x32x64xbf16, #tpu.memory_space<vmem>>, vector<1x32x64xbf16>
    %21 = vector.shape_cast %20 : vector<1x32x64xbf16> to vector<32x64xbf16>
    %cst_25 = arith.constant dense<0.000000e+00> : vector<8x64xf32>
    %22 = tpu.matmul %19, %21, %cst_25 {dimension_numbers = #tpu.dot_dimension_numbers<[1], [0], [0], [1], [0, 0, 1, 1], [], []>} : vector<8x32xbf16>, vector<32x64xbf16>, vector<8x64xf32> -> vector<8x64xf32>
    %c1_26 = arith.constant 1 : index
    %c0_27 = arith.constant 0 : index
    %23 = vector.load %arg11[%c1_26, %c0_27] : memref<10x32xbf16, #tpu.memory_space<vmem>>, vector<8x32xbf16>
    %c1_28 = arith.constant 1 : index
    %c0_29 = arith.constant 0 : index
    %c0_30 = arith.constant 0 : index
    %24 = vector.load %arg4[%c1_28, %c0_29, %c0_30] : memref<3x32x64xbf16, #tpu.memory_space<vmem>>, vector<1x32x64xbf16>
    %25 = vector.shape_cast %24 : vector<1x32x64xbf16> to vector<32x64xbf16>
    %cst_31 = arith.constant dense<0.000000e+00> : vector<8x64xf32>
    %26 = tpu.matmul %23, %25, %cst_31 {dimension_numbers = #tpu.dot_dimension_numbers<[1], [0], [0], [1], [0, 0, 1, 1], [], []>} : vector<8x32xbf16>, vector<32x64xbf16>, vector<8x64xf32> -> vector<8x64xf32>
    %27 = arith.addf %22, %26 : vector<8x64xf32>
    %c2 = arith.constant 2 : index
    %c0_32 = arith.constant 0 : index
    %28 = vector.load %arg11[%c2, %c0_32] : memref<10x32xbf16, #tpu.memory_space<vmem>>, vector<8x32xbf16>
    %c2_33 = arith.constant 2 : index
    %c0_34 = arith.constant 0 : index
    %c0_35 = arith.constant 0 : index
    %29 = vector.load %arg4[%c2_33, %c0_34, %c0_35] : memref<3x32x64xbf16, #tpu.memory_space<vmem>>, vector<1x32x64xbf16>
    %30 = vector.shape_cast %29 : vector<1x32x64xbf16> to vector<32x64xbf16>
    %cst_36 = arith.constant dense<0.000000e+00> : vector<8x64xf32>
    %31 = tpu.matmul %28, %30, %cst_36 {dimension_numbers = #tpu.dot_dimension_numbers<[1], [0], [0], [1], [0, 0, 1, 1], [], []>} : vector<8x32xbf16>, vector<32x64xbf16>, vector<8x64xf32> -> vector<8x64xf32>
    %32 = arith.addf %27, %31 : vector<8x64xf32>
    %c0_37 = arith.constant 0 : index
    %c0_38 = arith.constant 0 : index
    %33 = vector.load %arg5[%c0_37, %c0_38] : memref<1x64xf32, #tpu.memory_space<vmem>>, vector<1x64xf32>
    %34 = vector.broadcast %33 : vector<1x64xf32> to vector<8x64xf32>
    %35 = arith.mulf %32, %34 : vector<8x64xf32>
    %c0_39 = arith.constant 0 : index
    %c0_40 = arith.constant 0 : index
    %36 = vector.load %arg6[%c0_39, %c0_40] : memref<1x64xf32, #tpu.memory_space<vmem>>, vector<1x64xf32>
    %37 = vector.broadcast %36 : vector<1x64xf32> to vector<8x64xf32>
    %38 = arith.addf %35, %37 : vector<8x64xf32>
    %cst_41 = arith.constant 0.000000e+00 : f32
    %39 = vector.broadcast %cst_41 : f32 to vector<8x64xf32>
    %40 = arith.maximumf %38, %39 : vector<8x64xf32>
    %41 = arith.truncf %40 : vector<8x64xf32> to vector<8x64xbf16>
    %c1_42 = arith.constant 1 : index
    %c0_43 = arith.constant 0 : index
    %42 = vector.load %arg12[%c1_42, %c0_43] : memref<10x64xbf16, #tpu.memory_space<vmem>>, vector<8x64xbf16>
    tpu.vector_store %arg12[%c1_42, %c0_43], %41 {strides = array<i32>} : memref<10x64xbf16, #tpu.memory_space<vmem>>, vector<8x64xbf16>,
    %c0_44 = arith.constant 0 : index
    %c0_45 = arith.constant 0 : index
    %43 = vector.load %arg12[%c0_44, %c0_45] : memref<10x64xbf16, #tpu.memory_space<vmem>>, vector<8x64xbf16>
    %c0_46 = arith.constant 0 : index
    %c0_47 = arith.constant 0 : index
    %c0_48 = arith.constant 0 : index
    %44 = vector.load %arg7[%c0_46, %c0_47, %c0_48] : memref<3x64x64xbf16, #tpu.memory_space<vmem>>, vector<1x64x64xbf16>
    %45 = vector.shape_cast %44 : vector<1x64x64xbf16> to vector<64x64xbf16>
    %cst_49 = arith.constant dense<0.000000e+00> : vector<8x64xf32>
    %46 = tpu.matmul %43, %45, %cst_49 {dimension_numbers = #tpu.dot_dimension_numbers<[1], [0], [0], [1], [0, 0, 1, 1], [], []>} : vector<8x64xbf16>, vector<64x64xbf16>, vector<8x64xf32> -> vector<8x64xf32>
    %c1_50 = arith.constant 1 : index
    %c0_51 = arith.constant 0 : index
    %47 = vector.load %arg12[%c1_50, %c0_51] : memref<10x64xbf16, #tpu.memory_space<vmem>>, vector<8x64xbf16>
    %c1_52 = arith.constant 1 : index
    %c0_53 = arith.constant 0 : index
    %c0_54 = arith.constant 0 : index
    %48 = vector.load %arg7[%c1_52, %c0_53, %c0_54] : memref<3x64x64xbf16, #tpu.memory_space<vmem>>, vector<1x64x64xbf16>
    %49 = vector.shape_cast %48 : vector<1x64x64xbf16> to vector<64x64xbf16>
    %cst_55 = arith.constant dense<0.000000e+00> : vector<8x64xf32>
    %50 = tpu.matmul %47, %49, %cst_55 {dimension_numbers = #tpu.dot_dimension_numbers<[1], [0], [0], [1], [0, 0, 1, 1], [], []>} : vector<8x64xbf16>, vector<64x64xbf16>, vector<8x64xf32> -> vector<8x64xf32>
    %51 = arith.addf %46, %50 : vector<8x64xf32>
    %c2_56 = arith.constant 2 : index
    %c0_57 = arith.constant 0 : index
    %52 = vector.load %arg12[%c2_56, %c0_57] : memref<10x64xbf16, #tpu.memory_space<vmem>>, vector<8x64xbf16>
    %c2_58 = arith.constant 2 : index
    %c0_59 = arith.constant 0 : index
    %c0_60 = arith.constant 0 : index
    %53 = vector.load %arg7[%c2_58, %c0_59, %c0_60] : memref<3x64x64xbf16, #tpu.memory_space<vmem>>, vector<1x64x64xbf16>
    %54 = vector.shape_cast %53 : vector<1x64x64xbf16> to vector<64x64xbf16>
    %cst_61 = arith.constant dense<0.000000e+00> : vector<8x64xf32>
    %55 = tpu.matmul %52, %54, %cst_61 {dimension_numbers = #tpu.dot_dimension_numbers<[1], [0], [0], [1], [0, 0, 1, 1], [], []>} : vector<8x64xbf16>, vector<64x64xbf16>, vector<8x64xf32> -> vector<8x64xf32>
    %56 = arith.addf %51, %55 : vector<8x64xf32>
    %c0_62 = arith.constant 0 : index
    %c0_63 = arith.constant 0 : index
    %57 = vector.load %arg8[%c0_62, %c0_63] : memref<1x64xf32, #tpu.memory_space<vmem>>, vector<1x64xf32>
    %58 = vector.broadcast %57 : vector<1x64xf32> to vector<8x64xf32>
    %59 = arith.mulf %56, %58 : vector<8x64xf32>
    %c0_64 = arith.constant 0 : index
    %c0_65 = arith.constant 0 : index
    %60 = vector.load %arg9[%c0_64, %c0_65] : memref<1x64xf32, #tpu.memory_space<vmem>>, vector<1x64xf32>
    %61 = vector.broadcast %60 : vector<1x64xf32> to vector<8x64xf32>
    %62 = arith.addf %59, %61 : vector<8x64xf32>
    %cst_66 = arith.constant 0.000000e+00 : f32
    %63 = vector.broadcast %cst_66 : f32 to vector<8x64xf32>
    %64 = arith.maximumf %62, %63 : vector<8x64xf32>
    %c0_67 = arith.constant 0 : index
    %c0_68 = arith.constant 0 : index
    %c0_69 = arith.constant 0 : index
    %65 = vector.load %arg10[%c0_67, %c0_68, %c0_69] : memref<1x8x64xf32, #tpu.memory_space<vmem>>, vector<1x8x64xf32>
    %66 = vector.shape_cast %65 : vector<1x8x64xf32> to vector<8x64xf32>
    %67 = vector.shape_cast %64 : vector<8x64xf32> to vector<1x8x64xf32>
    tpu.vector_store %arg10[%c0_67, %c0_68, %c0_69], %67 {strides = array<i32>} : memref<1x8x64xf32, #tpu.memory_space<vmem>>, vector<1x8x64xf32>,
    return
  }
  func.func @transform_0(%arg0: i32) -> (i32, i32, i32) {
    %c0_i32 = arith.constant 0 : i32
    %c0_i32_0 = arith.constant 0 : i32
    %c0_i32_1 = arith.constant 0 : i32
    return %arg0, %c0_i32, %c0_i32_0 : i32, i32, i32
  }
  func.func @transform_1(%arg0: i32) -> (i32, i32) {
    %c0_i32 = arith.constant 0 : i32
    %c0_i32_0 = arith.constant 0 : i32
    %c0_i32_1 = arith.constant 0 : i32
    return %c0_i32, %c0_i32_0 : i32, i32
  }
  func.func @transform_2(%arg0: i32) -> (i32, i32) {
    %c0_i32 = arith.constant 0 : i32
    %c0_i32_0 = arith.constant 0 : i32
    %c0_i32_1 = arith.constant 0 : i32
    return %c0_i32, %c0_i32_0 : i32, i32
  }
  func.func @transform_3(%arg0: i32) -> (i32, i32, i32) {
    %c0_i32 = arith.constant 0 : i32
    %c0_i32_0 = arith.constant 0 : i32
    %c0_i32_1 = arith.constant 0 : i32
    %c0_i32_2 = arith.constant 0 : i32
    return %c0_i32, %c0_i32_0, %c0_i32_1 : i32, i32, i32
  }
  func.func @transform_4(%arg0: i32) -> (i32, i32) {
    %c0_i32 = arith.constant 0 : i32
    %c0_i32_0 = arith.constant 0 : i32
    %c0_i32_1 = arith.constant 0 : i32
    return %c0_i32, %c0_i32_0 : i32, i32
  }
  func.func @transform_5(%arg0: i32) -> (i32, i32) {
    %c0_i32 = arith.constant 0 : i32
    %c0_i32_0 = arith.constant 0 : i32
    %c0_i32_1 = arith.constant 0 : i32
    return %c0_i32, %c0_i32_0 : i32, i32
  }
  func.func @transform_6(%arg0: i32) -> (i32, i32, i32) {
    %c0_i32 = arith.constant 0 : i32
    %c0_i32_0 = arith.constant 0 : i32
    %c0_i32_1 = arith.constant 0 : i32
    %c0_i32_2 = arith.constant 0 : i32
    return %c0_i32, %c0_i32_0, %c0_i32_1 : i32, i32, i32
  }
  func.func @transform_7(%arg0: i32) -> (i32, i32) {
    %c0_i32 = arith.constant 0 : i32
    %c0_i32_0 = arith.constant 0 : i32
    %c0_i32_1 = arith.constant 0 : i32
    return %c0_i32, %c0_i32_0 : i32, i32
  }
  func.func @transform_8(%arg0: i32) -> (i32, i32) {
    %c0_i32 = arith.constant 0 : i32
    %c0_i32_0 = arith.constant 0 : i32
    %c0_i32_1 = arith.constant 0 : i32
    return %c0_i32, %c0_i32_0 : i32, i32
  }
  func.func @transform_9(%arg0: i32) -> (i32, i32, i32) {
    %c0_i32 = arith.constant 0 : i32
    %c0_i32_0 = arith.constant 0 : i32
    %c0_i32_1 = arith.constant 0 : i32
    return %arg0, %c0_i32, %c0_i32_0 : i32, i32, i32
  }
}

module attributes {stable_mosaic.version = 11 : i64} {
  func.func @_dc_kernel(%arg0: i32, %arg1: memref<1x16x64xf32, #tpu.memory_space<vmem>>, %arg2: memref<3x64x64xbf16, #tpu.memory_space<vmem>>, %arg3: memref<1x64xf32, #tpu.memory_space<vmem>>, %arg4: memref<1x64xf32, #tpu.memory_space<vmem>>, %arg5: memref<3x64x64xbf16, #tpu.memory_space<vmem>>, %arg6: memref<1x64xf32, #tpu.memory_space<vmem>>, %arg7: memref<1x64xf32, #tpu.memory_space<vmem>>, %arg8: memref<1x16x64xf32, #tpu.memory_space<vmem>>, %arg9: memref<18x64xbf16, #tpu.memory_space<vmem>>, %arg10: memref<18x64xbf16, #tpu.memory_space<vmem>>) attributes {dimension_semantics = [#tpu.dimension_semantics<parallel>], iteration_bounds = array<i64: 4>, scalar_prefetch = 0 : i64, scratch_operands = 2 : i64, tpu.core_type = #tpu.core_type<tc>, window_params = [{transform_indices = @transform_0, window_bounds = array<i64: 1, 16, 64>}, {pipeline_mode = #tpu.pipeline_mode<synchronous>, transform_indices = @transform_1, window_bounds = array<i64: 3, 64, 64>}, {pipeline_mode = #tpu.pipeline_mode<synchronous>, transform_indices = @transform_2, window_bounds = array<i64: 1, 64>}, {pipeline_mode = #tpu.pipeline_mode<synchronous>, transform_indices = @transform_3, window_bounds = array<i64: 1, 64>}, {pipeline_mode = #tpu.pipeline_mode<synchronous>, transform_indices = @transform_4, window_bounds = array<i64: 3, 64, 64>}, {pipeline_mode = #tpu.pipeline_mode<synchronous>, transform_indices = @transform_5, window_bounds = array<i64: 1, 64>}, {pipeline_mode = #tpu.pipeline_mode<synchronous>, transform_indices = @transform_6, window_bounds = array<i64: 1, 64>}, {transform_indices = @transform_7, window_bounds = array<i64: 1, 16, 64>}]} {
    %cst = arith.constant 0.000000e+00 : bf16
    %0 = vector.broadcast %cst : bf16 to vector<1x64xbf16>
    %c0 = arith.constant 0 : index
    %c0_0 = arith.constant 0 : index
    %1 = vector.load %arg9[%c0, %c0_0] : memref<18x64xbf16, #tpu.memory_space<vmem>>, vector<1x64xbf16>
    tpu.vector_store %arg9[%c0, %c0_0], %0 {strides = array<i32>} : memref<18x64xbf16, #tpu.memory_space<vmem>>, vector<1x64xbf16>,
    %c17 = arith.constant 17 : index
    %c0_1 = arith.constant 0 : index
    %2 = vector.load %arg9[%c17, %c0_1] : memref<18x64xbf16, #tpu.memory_space<vmem>>, vector<1x64xbf16>
    tpu.vector_store %arg9[%c17, %c0_1], %0 {strides = array<i32>} : memref<18x64xbf16, #tpu.memory_space<vmem>>, vector<1x64xbf16>,
    %cst_2 = arith.constant 0.000000e+00 : bf16
    %3 = vector.broadcast %cst_2 : bf16 to vector<1x64xbf16>
    %c0_3 = arith.constant 0 : index
    %c0_4 = arith.constant 0 : index
    %4 = vector.load %arg10[%c0_3, %c0_4] : memref<18x64xbf16, #tpu.memory_space<vmem>>, vector<1x64xbf16>
    tpu.vector_store %arg10[%c0_3, %c0_4], %3 {strides = array<i32>} : memref<18x64xbf16, #tpu.memory_space<vmem>>, vector<1x64xbf16>,
    %c17_5 = arith.constant 17 : index
    %c0_6 = arith.constant 0 : index
    %5 = vector.load %arg10[%c17_5, %c0_6] : memref<18x64xbf16, #tpu.memory_space<vmem>>, vector<1x64xbf16>
    tpu.vector_store %arg10[%c17_5, %c0_6], %3 {strides = array<i32>} : memref<18x64xbf16, #tpu.memory_space<vmem>>, vector<1x64xbf16>,
    %c0_7 = arith.constant 0 : index
    %c0_8 = arith.constant 0 : index
    %c0_9 = arith.constant 0 : index
    %6 = vector.load %arg1[%c0_7, %c0_8, %c0_9] : memref<1x16x64xf32, #tpu.memory_space<vmem>>, vector<1x16x64xf32>
    %7 = vector.shape_cast %6 : vector<1x16x64xf32> to vector<16x64xf32>
    %8 = arith.truncf %7 : vector<16x64xf32> to vector<16x64xbf16>
    %c1 = arith.constant 1 : index
    %c0_10 = arith.constant 0 : index
    %9 = vector.load %arg9[%c1, %c0_10] : memref<18x64xbf16, #tpu.memory_space<vmem>>, vector<16x64xbf16>
    tpu.vector_store %arg9[%c1, %c0_10], %8 {strides = array<i32>} : memref<18x64xbf16, #tpu.memory_space<vmem>>, vector<16x64xbf16>,
    %c0_11 = arith.constant 0 : index
    %c0_12 = arith.constant 0 : index
    %10 = vector.load %arg9[%c0_11, %c0_12] : memref<18x64xbf16, #tpu.memory_space<vmem>>, vector<16x64xbf16>
    %c0_13 = arith.constant 0 : index
    %c0_14 = arith.constant 0 : index
    %c0_15 = arith.constant 0 : index
    %11 = vector.load %arg2[%c0_13, %c0_14, %c0_15] : memref<3x64x64xbf16, #tpu.memory_space<vmem>>, vector<1x64x64xbf16>
    %12 = vector.shape_cast %11 : vector<1x64x64xbf16> to vector<64x64xbf16>
    %cst_16 = arith.constant dense<0.000000e+00> : vector<16x64xf32>
    %13 = tpu.matmul %10, %12, %cst_16 {dimension_numbers = #tpu.dot_dimension_numbers<[1], [0], [0], [1], [0, 0, 1, 1], [], []>} : vector<16x64xbf16>, vector<64x64xbf16>, vector<16x64xf32> -> vector<16x64xf32>
    %c1_17 = arith.constant 1 : index
    %c0_18 = arith.constant 0 : index
    %14 = vector.load %arg9[%c1_17, %c0_18] : memref<18x64xbf16, #tpu.memory_space<vmem>>, vector<16x64xbf16>
    %c1_19 = arith.constant 1 : index
    %c0_20 = arith.constant 0 : index
    %c0_21 = arith.constant 0 : index
    %15 = vector.load %arg2[%c1_19, %c0_20, %c0_21] : memref<3x64x64xbf16, #tpu.memory_space<vmem>>, vector<1x64x64xbf16>
    %16 = vector.shape_cast %15 : vector<1x64x64xbf16> to vector<64x64xbf16>
    %cst_22 = arith.constant dense<0.000000e+00> : vector<16x64xf32>
    %17 = tpu.matmul %14, %16, %cst_22 {dimension_numbers = #tpu.dot_dimension_numbers<[1], [0], [0], [1], [0, 0, 1, 1], [], []>} : vector<16x64xbf16>, vector<64x64xbf16>, vector<16x64xf32> -> vector<16x64xf32>
    %18 = arith.addf %13, %17 : vector<16x64xf32>
    %c2 = arith.constant 2 : index
    %c0_23 = arith.constant 0 : index
    %19 = vector.load %arg9[%c2, %c0_23] : memref<18x64xbf16, #tpu.memory_space<vmem>>, vector<16x64xbf16>
    %c2_24 = arith.constant 2 : index
    %c0_25 = arith.constant 0 : index
    %c0_26 = arith.constant 0 : index
    %20 = vector.load %arg2[%c2_24, %c0_25, %c0_26] : memref<3x64x64xbf16, #tpu.memory_space<vmem>>, vector<1x64x64xbf16>
    %21 = vector.shape_cast %20 : vector<1x64x64xbf16> to vector<64x64xbf16>
    %cst_27 = arith.constant dense<0.000000e+00> : vector<16x64xf32>
    %22 = tpu.matmul %19, %21, %cst_27 {dimension_numbers = #tpu.dot_dimension_numbers<[1], [0], [0], [1], [0, 0, 1, 1], [], []>} : vector<16x64xbf16>, vector<64x64xbf16>, vector<16x64xf32> -> vector<16x64xf32>
    %23 = arith.addf %18, %22 : vector<16x64xf32>
    %c0_28 = arith.constant 0 : index
    %c0_29 = arith.constant 0 : index
    %24 = vector.load %arg3[%c0_28, %c0_29] : memref<1x64xf32, #tpu.memory_space<vmem>>, vector<1x64xf32>
    %25 = vector.broadcast %24 : vector<1x64xf32> to vector<16x64xf32>
    %26 = arith.mulf %23, %25 : vector<16x64xf32>
    %c0_30 = arith.constant 0 : index
    %c0_31 = arith.constant 0 : index
    %27 = vector.load %arg4[%c0_30, %c0_31] : memref<1x64xf32, #tpu.memory_space<vmem>>, vector<1x64xf32>
    %28 = vector.broadcast %27 : vector<1x64xf32> to vector<16x64xf32>
    %29 = arith.addf %26, %28 : vector<16x64xf32>
    %cst_32 = arith.constant 0.000000e+00 : f32
    %30 = vector.broadcast %cst_32 : f32 to vector<16x64xf32>
    %31 = arith.maximumf %29, %30 : vector<16x64xf32>
    %32 = arith.truncf %31 : vector<16x64xf32> to vector<16x64xbf16>
    %c1_33 = arith.constant 1 : index
    %c0_34 = arith.constant 0 : index
    %33 = vector.load %arg10[%c1_33, %c0_34] : memref<18x64xbf16, #tpu.memory_space<vmem>>, vector<16x64xbf16>
    tpu.vector_store %arg10[%c1_33, %c0_34], %32 {strides = array<i32>} : memref<18x64xbf16, #tpu.memory_space<vmem>>, vector<16x64xbf16>,
    %c0_35 = arith.constant 0 : index
    %c0_36 = arith.constant 0 : index
    %34 = vector.load %arg10[%c0_35, %c0_36] : memref<18x64xbf16, #tpu.memory_space<vmem>>, vector<16x64xbf16>
    %c0_37 = arith.constant 0 : index
    %c0_38 = arith.constant 0 : index
    %c0_39 = arith.constant 0 : index
    %35 = vector.load %arg5[%c0_37, %c0_38, %c0_39] : memref<3x64x64xbf16, #tpu.memory_space<vmem>>, vector<1x64x64xbf16>
    %36 = vector.shape_cast %35 : vector<1x64x64xbf16> to vector<64x64xbf16>
    %cst_40 = arith.constant dense<0.000000e+00> : vector<16x64xf32>
    %37 = tpu.matmul %34, %36, %cst_40 {dimension_numbers = #tpu.dot_dimension_numbers<[1], [0], [0], [1], [0, 0, 1, 1], [], []>} : vector<16x64xbf16>, vector<64x64xbf16>, vector<16x64xf32> -> vector<16x64xf32>
    %c1_41 = arith.constant 1 : index
    %c0_42 = arith.constant 0 : index
    %38 = vector.load %arg10[%c1_41, %c0_42] : memref<18x64xbf16, #tpu.memory_space<vmem>>, vector<16x64xbf16>
    %c1_43 = arith.constant 1 : index
    %c0_44 = arith.constant 0 : index
    %c0_45 = arith.constant 0 : index
    %39 = vector.load %arg5[%c1_43, %c0_44, %c0_45] : memref<3x64x64xbf16, #tpu.memory_space<vmem>>, vector<1x64x64xbf16>
    %40 = vector.shape_cast %39 : vector<1x64x64xbf16> to vector<64x64xbf16>
    %cst_46 = arith.constant dense<0.000000e+00> : vector<16x64xf32>
    %41 = tpu.matmul %38, %40, %cst_46 {dimension_numbers = #tpu.dot_dimension_numbers<[1], [0], [0], [1], [0, 0, 1, 1], [], []>} : vector<16x64xbf16>, vector<64x64xbf16>, vector<16x64xf32> -> vector<16x64xf32>
    %42 = arith.addf %37, %41 : vector<16x64xf32>
    %c2_47 = arith.constant 2 : index
    %c0_48 = arith.constant 0 : index
    %43 = vector.load %arg10[%c2_47, %c0_48] : memref<18x64xbf16, #tpu.memory_space<vmem>>, vector<16x64xbf16>
    %c2_49 = arith.constant 2 : index
    %c0_50 = arith.constant 0 : index
    %c0_51 = arith.constant 0 : index
    %44 = vector.load %arg5[%c2_49, %c0_50, %c0_51] : memref<3x64x64xbf16, #tpu.memory_space<vmem>>, vector<1x64x64xbf16>
    %45 = vector.shape_cast %44 : vector<1x64x64xbf16> to vector<64x64xbf16>
    %cst_52 = arith.constant dense<0.000000e+00> : vector<16x64xf32>
    %46 = tpu.matmul %43, %45, %cst_52 {dimension_numbers = #tpu.dot_dimension_numbers<[1], [0], [0], [1], [0, 0, 1, 1], [], []>} : vector<16x64xbf16>, vector<64x64xbf16>, vector<16x64xf32> -> vector<16x64xf32>
    %47 = arith.addf %42, %46 : vector<16x64xf32>
    %c0_53 = arith.constant 0 : index
    %c0_54 = arith.constant 0 : index
    %48 = vector.load %arg6[%c0_53, %c0_54] : memref<1x64xf32, #tpu.memory_space<vmem>>, vector<1x64xf32>
    %49 = vector.broadcast %48 : vector<1x64xf32> to vector<16x64xf32>
    %50 = arith.mulf %47, %49 : vector<16x64xf32>
    %c0_55 = arith.constant 0 : index
    %c0_56 = arith.constant 0 : index
    %51 = vector.load %arg7[%c0_55, %c0_56] : memref<1x64xf32, #tpu.memory_space<vmem>>, vector<1x64xf32>
    %52 = vector.broadcast %51 : vector<1x64xf32> to vector<16x64xf32>
    %53 = arith.addf %50, %52 : vector<16x64xf32>
    %cst_57 = arith.constant 0.000000e+00 : f32
    %54 = vector.broadcast %cst_57 : f32 to vector<16x64xf32>
    %55 = arith.maximumf %53, %54 : vector<16x64xf32>
    %c0_58 = arith.constant 0 : index
    %c0_59 = arith.constant 0 : index
    %c0_60 = arith.constant 0 : index
    %56 = vector.load %arg8[%c0_58, %c0_59, %c0_60] : memref<1x16x64xf32, #tpu.memory_space<vmem>>, vector<1x16x64xf32>
    %57 = vector.shape_cast %56 : vector<1x16x64xf32> to vector<16x64xf32>
    %58 = vector.shape_cast %55 : vector<16x64xf32> to vector<1x16x64xf32>
    tpu.vector_store %arg8[%c0_58, %c0_59, %c0_60], %58 {strides = array<i32>} : memref<1x16x64xf32, #tpu.memory_space<vmem>>, vector<1x16x64xf32>,
    return
  }
  func.func @transform_0(%arg0: i32) -> (i32, i32, i32) {
    %c0_i32 = arith.constant 0 : i32
    %c0_i32_0 = arith.constant 0 : i32
    %c0_i32_1 = arith.constant 0 : i32
    return %arg0, %c0_i32, %c0_i32_0 : i32, i32, i32
  }
  func.func @transform_1(%arg0: i32) -> (i32, i32, i32) {
    %c0_i32 = arith.constant 0 : i32
    %c0_i32_0 = arith.constant 0 : i32
    %c0_i32_1 = arith.constant 0 : i32
    %c0_i32_2 = arith.constant 0 : i32
    return %c0_i32, %c0_i32_0, %c0_i32_1 : i32, i32, i32
  }
  func.func @transform_2(%arg0: i32) -> (i32, i32) {
    %c0_i32 = arith.constant 0 : i32
    %c0_i32_0 = arith.constant 0 : i32
    %c0_i32_1 = arith.constant 0 : i32
    return %c0_i32, %c0_i32_0 : i32, i32
  }
  func.func @transform_3(%arg0: i32) -> (i32, i32) {
    %c0_i32 = arith.constant 0 : i32
    %c0_i32_0 = arith.constant 0 : i32
    %c0_i32_1 = arith.constant 0 : i32
    return %c0_i32, %c0_i32_0 : i32, i32
  }
  func.func @transform_4(%arg0: i32) -> (i32, i32, i32) {
    %c0_i32 = arith.constant 0 : i32
    %c0_i32_0 = arith.constant 0 : i32
    %c0_i32_1 = arith.constant 0 : i32
    %c0_i32_2 = arith.constant 0 : i32
    return %c0_i32, %c0_i32_0, %c0_i32_1 : i32, i32, i32
  }
  func.func @transform_5(%arg0: i32) -> (i32, i32) {
    %c0_i32 = arith.constant 0 : i32
    %c0_i32_0 = arith.constant 0 : i32
    %c0_i32_1 = arith.constant 0 : i32
    return %c0_i32, %c0_i32_0 : i32, i32
  }
  func.func @transform_6(%arg0: i32) -> (i32, i32) {
    %c0_i32 = arith.constant 0 : i32
    %c0_i32_0 = arith.constant 0 : i32
    %c0_i32_1 = arith.constant 0 : i32
    return %c0_i32, %c0_i32_0 : i32, i32
  }
  func.func @transform_7(%arg0: i32) -> (i32, i32, i32) {
    %c0_i32 = arith.constant 0 : i32
    %c0_i32_0 = arith.constant 0 : i32
    %c0_i32_1 = arith.constant 0 : i32
    return %arg0, %c0_i32, %c0_i32_0 : i32, i32, i32
  }
}

module attributes {stable_mosaic.version = 11 : i64} {
  func.func @_down_kernel(%arg0: i32, %arg1: memref<1x8x64xf32, #tpu.memory_space<vmem>>, %arg2: memref<64x32xbf16, #tpu.memory_space<vmem>>, %arg3: memref<64x32xbf16, #tpu.memory_space<vmem>>, %arg4: memref<3x32x32xbf16, #tpu.memory_space<vmem>>, %arg5: memref<1x32xf32, #tpu.memory_space<vmem>>, %arg6: memref<1x32xf32, #tpu.memory_space<vmem>>, %arg7: memref<3x32x32xbf16, #tpu.memory_space<vmem>>, %arg8: memref<1x32xf32, #tpu.memory_space<vmem>>, %arg9: memref<1x32xf32, #tpu.memory_space<vmem>>, %arg10: memref<1x4x32xf32, #tpu.memory_space<vmem>>, %arg11: memref<6x32xbf16, #tpu.memory_space<vmem>>, %arg12: memref<6x32xbf16, #tpu.memory_space<vmem>>) attributes {dimension_semantics = [#tpu.dimension_semantics<parallel>], iteration_bounds = array<i64: 4>, scalar_prefetch = 0 : i64, scratch_operands = 2 : i64, tpu.core_type = #tpu.core_type<tc>, window_params = [{transform_indices = @transform_0, window_bounds = array<i64: 1, 8, 64>}, {pipeline_mode = #tpu.pipeline_mode<synchronous>, transform_indices = @transform_1, window_bounds = array<i64: 64, 32>}, {pipeline_mode = #tpu.pipeline_mode<synchronous>, transform_indices = @transform_2, window_bounds = array<i64: 64, 32>}, {pipeline_mode = #tpu.pipeline_mode<synchronous>, transform_indices = @transform_3, window_bounds = array<i64: 3, 32, 32>}, {pipeline_mode = #tpu.pipeline_mode<synchronous>, transform_indices = @transform_4, window_bounds = array<i64: 1, 32>}, {pipeline_mode = #tpu.pipeline_mode<synchronous>, transform_indices = @transform_5, window_bounds = array<i64: 1, 32>}, {pipeline_mode = #tpu.pipeline_mode<synchronous>, transform_indices = @transform_6, window_bounds = array<i64: 3, 32, 32>}, {pipeline_mode = #tpu.pipeline_mode<synchronous>, transform_indices = @transform_7, window_bounds = array<i64: 1, 32>}, {pipeline_mode = #tpu.pipeline_mode<synchronous>, transform_indices = @transform_8, window_bounds = array<i64: 1, 32>}, {transform_indices = @transform_9, window_bounds = array<i64: 1, 4, 32>}]} {
    %cst = arith.constant 0.000000e+00 : bf16
    %0 = vector.broadcast %cst : bf16 to vector<1x32xbf16>
    %c0 = arith.constant 0 : index
    %c0_0 = arith.constant 0 : index
    %1 = vector.load %arg11[%c0, %c0_0] : memref<6x32xbf16, #tpu.memory_space<vmem>>, vector<1x32xbf16>
    tpu.vector_store %arg11[%c0, %c0_0], %0 {strides = array<i32>} : memref<6x32xbf16, #tpu.memory_space<vmem>>, vector<1x32xbf16>,
    %c5 = arith.constant 5 : index
    %c0_1 = arith.constant 0 : index
    %2 = vector.load %arg11[%c5, %c0_1] : memref<6x32xbf16, #tpu.memory_space<vmem>>, vector<1x32xbf16>
    tpu.vector_store %arg11[%c5, %c0_1], %0 {strides = array<i32>} : memref<6x32xbf16, #tpu.memory_space<vmem>>, vector<1x32xbf16>,
    %cst_2 = arith.constant 0.000000e+00 : bf16
    %3 = vector.broadcast %cst_2 : bf16 to vector<1x32xbf16>
    %c0_3 = arith.constant 0 : index
    %c0_4 = arith.constant 0 : index
    %4 = vector.load %arg12[%c0_3, %c0_4] : memref<6x32xbf16, #tpu.memory_space<vmem>>, vector<1x32xbf16>
    tpu.vector_store %arg12[%c0_3, %c0_4], %3 {strides = array<i32>} : memref<6x32xbf16, #tpu.memory_space<vmem>>, vector<1x32xbf16>,
    %c5_5 = arith.constant 5 : index
    %c0_6 = arith.constant 0 : index
    %5 = vector.load %arg12[%c5_5, %c0_6] : memref<6x32xbf16, #tpu.memory_space<vmem>>, vector<1x32xbf16>
    tpu.vector_store %arg12[%c5_5, %c0_6], %3 {strides = array<i32>} : memref<6x32xbf16, #tpu.memory_space<vmem>>, vector<1x32xbf16>,
    %c0_7 = arith.constant 0 : index
    %c0_8 = arith.constant 0 : index
    %c0_9 = arith.constant 0 : index
    %6 = tpu.strided_load %arg1[%c0_7, %c0_8, %c0_9] {strides = array<i32: 1, 2, 1>} : memref<1x8x64xf32, #tpu.memory_space<vmem>>, vector<1x4x64xf32>
    %7 = vector.shape_cast %6 : vector<1x4x64xf32> to vector<4x64xf32>
    %c0_10 = arith.constant 0 : index
    %c1 = arith.constant 1 : index
    %c0_11 = arith.constant 0 : index
    %8 = tpu.strided_load %arg1[%c0_10, %c1, %c0_11] {strides = array<i32: 1, 2, 1>} : memref<1x8x64xf32, #tpu.memory_space<vmem>>, vector<1x4x64xf32>
    %9 = vector.shape_cast %8 : vector<1x4x64xf32> to vector<4x64xf32>
    %10 = arith.maximumf %7, %9 : vector<4x64xf32>
    %11 = arith.truncf %10 : vector<4x64xf32> to vector<4x64xbf16>
    %c0_12 = arith.constant 0 : index
    %c0_13 = arith.constant 0 : index
    %12 = vector.load %arg2[%c0_12, %c0_13] : memref<64x32xbf16, #tpu.memory_space<vmem>>, vector<64x32xbf16>
    %cst_14 = arith.constant dense<0.000000e+00> : vector<4x32xf32>
    %13 = tpu.matmul %11, %12, %cst_14 {dimension_numbers = #tpu.dot_dimension_numbers<[1], [0], [0], [1], [0, 0, 1, 1], [], []>} : vector<4x64xbf16>, vector<64x32xbf16>, vector<4x32xf32> -> vector<4x32xf32>
    %c0_15 = arith.constant 0 : index
    %c0_16 = arith.constant 0 : index
    %14 = vector.load %arg3[%c0_15, %c0_16] : memref<64x32xbf16, #tpu.memory_space<vmem>>, vector<64x32xbf16>
    %cst_17 = arith.constant dense<0.000000e+00> : vector<4x32xf32>
    %15 = tpu.matmul %11, %14, %cst_17 {dimension_numbers = #tpu.dot_dimension_numbers<[1], [0], [0], [1], [0, 0, 1, 1], [], []>} : vector<4x64xbf16>, vector<64x32xbf16>, vector<4x32xf32> -> vector<4x32xf32>
    %16 = arith.maximumf %13, %15 : vector<4x32xf32>
    %17 = arith.truncf %16 : vector<4x32xf32> to vector<4x32xbf16>
    %c1_18 = arith.constant 1 : index
    %c0_19 = arith.constant 0 : index
    %18 = vector.load %arg11[%c1_18, %c0_19] : memref<6x32xbf16, #tpu.memory_space<vmem>>, vector<4x32xbf16>
    tpu.vector_store %arg11[%c1_18, %c0_19], %17 {strides = array<i32>} : memref<6x32xbf16, #tpu.memory_space<vmem>>, vector<4x32xbf16>,
    %c0_20 = arith.constant 0 : index
    %c0_21 = arith.constant 0 : index
    %19 = vector.load %arg11[%c0_20, %c0_21] : memref<6x32xbf16, #tpu.memory_space<vmem>>, vector<4x32xbf16>
    %c0_22 = arith.constant 0 : index
    %c0_23 = arith.constant 0 : index
    %c0_24 = arith.constant 0 : index
    %20 = vector.load %arg4[%c0_22, %c0_23, %c0_24] : memref<3x32x32xbf16, #tpu.memory_space<vmem>>, vector<1x32x32xbf16>
    %21 = vector.shape_cast %20 : vector<1x32x32xbf16> to vector<32x32xbf16>
    %cst_25 = arith.constant dense<0.000000e+00> : vector<4x32xf32>
    %22 = tpu.matmul %19, %21, %cst_25 {dimension_numbers = #tpu.dot_dimension_numbers<[1], [0], [0], [1], [0, 0, 1, 1], [], []>} : vector<4x32xbf16>, vector<32x32xbf16>, vector<4x32xf32> -> vector<4x32xf32>
    %c1_26 = arith.constant 1 : index
    %c0_27 = arith.constant 0 : index
    %23 = vector.load %arg11[%c1_26, %c0_27] : memref<6x32xbf16, #tpu.memory_space<vmem>>, vector<4x32xbf16>
    %c1_28 = arith.constant 1 : index
    %c0_29 = arith.constant 0 : index
    %c0_30 = arith.constant 0 : index
    %24 = vector.load %arg4[%c1_28, %c0_29, %c0_30] : memref<3x32x32xbf16, #tpu.memory_space<vmem>>, vector<1x32x32xbf16>
    %25 = vector.shape_cast %24 : vector<1x32x32xbf16> to vector<32x32xbf16>
    %cst_31 = arith.constant dense<0.000000e+00> : vector<4x32xf32>
    %26 = tpu.matmul %23, %25, %cst_31 {dimension_numbers = #tpu.dot_dimension_numbers<[1], [0], [0], [1], [0, 0, 1, 1], [], []>} : vector<4x32xbf16>, vector<32x32xbf16>, vector<4x32xf32> -> vector<4x32xf32>
    %27 = arith.addf %22, %26 : vector<4x32xf32>
    %c2 = arith.constant 2 : index
    %c0_32 = arith.constant 0 : index
    %28 = vector.load %arg11[%c2, %c0_32] : memref<6x32xbf16, #tpu.memory_space<vmem>>, vector<4x32xbf16>
    %c2_33 = arith.constant 2 : index
    %c0_34 = arith.constant 0 : index
    %c0_35 = arith.constant 0 : index
    %29 = vector.load %arg4[%c2_33, %c0_34, %c0_35] : memref<3x32x32xbf16, #tpu.memory_space<vmem>>, vector<1x32x32xbf16>
    %30 = vector.shape_cast %29 : vector<1x32x32xbf16> to vector<32x32xbf16>
    %cst_36 = arith.constant dense<0.000000e+00> : vector<4x32xf32>
    %31 = tpu.matmul %28, %30, %cst_36 {dimension_numbers = #tpu.dot_dimension_numbers<[1], [0], [0], [1], [0, 0, 1, 1], [], []>} : vector<4x32xbf16>, vector<32x32xbf16>, vector<4x32xf32> -> vector<4x32xf32>
    %32 = arith.addf %27, %31 : vector<4x32xf32>
    %c0_37 = arith.constant 0 : index
    %c0_38 = arith.constant 0 : index
    %33 = vector.load %arg5[%c0_37, %c0_38] : memref<1x32xf32, #tpu.memory_space<vmem>>, vector<1x32xf32>
    %34 = vector.broadcast %33 : vector<1x32xf32> to vector<4x32xf32>
    %35 = arith.mulf %32, %34 : vector<4x32xf32>
    %c0_39 = arith.constant 0 : index
    %c0_40 = arith.constant 0 : index
    %36 = vector.load %arg6[%c0_39, %c0_40] : memref<1x32xf32, #tpu.memory_space<vmem>>, vector<1x32xf32>
    %37 = vector.broadcast %36 : vector<1x32xf32> to vector<4x32xf32>
    %38 = arith.addf %35, %37 : vector<4x32xf32>
    %cst_41 = arith.constant 0.000000e+00 : f32
    %39 = vector.broadcast %cst_41 : f32 to vector<4x32xf32>
    %40 = arith.maximumf %38, %39 : vector<4x32xf32>
    %41 = arith.truncf %40 : vector<4x32xf32> to vector<4x32xbf16>
    %c1_42 = arith.constant 1 : index
    %c0_43 = arith.constant 0 : index
    %42 = vector.load %arg12[%c1_42, %c0_43] : memref<6x32xbf16, #tpu.memory_space<vmem>>, vector<4x32xbf16>
    tpu.vector_store %arg12[%c1_42, %c0_43], %41 {strides = array<i32>} : memref<6x32xbf16, #tpu.memory_space<vmem>>, vector<4x32xbf16>,
    %c0_44 = arith.constant 0 : index
    %c0_45 = arith.constant 0 : index
    %43 = vector.load %arg12[%c0_44, %c0_45] : memref<6x32xbf16, #tpu.memory_space<vmem>>, vector<4x32xbf16>
    %c0_46 = arith.constant 0 : index
    %c0_47 = arith.constant 0 : index
    %c0_48 = arith.constant 0 : index
    %44 = vector.load %arg7[%c0_46, %c0_47, %c0_48] : memref<3x32x32xbf16, #tpu.memory_space<vmem>>, vector<1x32x32xbf16>
    %45 = vector.shape_cast %44 : vector<1x32x32xbf16> to vector<32x32xbf16>
    %cst_49 = arith.constant dense<0.000000e+00> : vector<4x32xf32>
    %46 = tpu.matmul %43, %45, %cst_49 {dimension_numbers = #tpu.dot_dimension_numbers<[1], [0], [0], [1], [0, 0, 1, 1], [], []>} : vector<4x32xbf16>, vector<32x32xbf16>, vector<4x32xf32> -> vector<4x32xf32>
    %c1_50 = arith.constant 1 : index
    %c0_51 = arith.constant 0 : index
    %47 = vector.load %arg12[%c1_50, %c0_51] : memref<6x32xbf16, #tpu.memory_space<vmem>>, vector<4x32xbf16>
    %c1_52 = arith.constant 1 : index
    %c0_53 = arith.constant 0 : index
    %c0_54 = arith.constant 0 : index
    %48 = vector.load %arg7[%c1_52, %c0_53, %c0_54] : memref<3x32x32xbf16, #tpu.memory_space<vmem>>, vector<1x32x32xbf16>
    %49 = vector.shape_cast %48 : vector<1x32x32xbf16> to vector<32x32xbf16>
    %cst_55 = arith.constant dense<0.000000e+00> : vector<4x32xf32>
    %50 = tpu.matmul %47, %49, %cst_55 {dimension_numbers = #tpu.dot_dimension_numbers<[1], [0], [0], [1], [0, 0, 1, 1], [], []>} : vector<4x32xbf16>, vector<32x32xbf16>, vector<4x32xf32> -> vector<4x32xf32>
    %51 = arith.addf %46, %50 : vector<4x32xf32>
    %c2_56 = arith.constant 2 : index
    %c0_57 = arith.constant 0 : index
    %52 = vector.load %arg12[%c2_56, %c0_57] : memref<6x32xbf16, #tpu.memory_space<vmem>>, vector<4x32xbf16>
    %c2_58 = arith.constant 2 : index
    %c0_59 = arith.constant 0 : index
    %c0_60 = arith.constant 0 : index
    %53 = vector.load %arg7[%c2_58, %c0_59, %c0_60] : memref<3x32x32xbf16, #tpu.memory_space<vmem>>, vector<1x32x32xbf16>
    %54 = vector.shape_cast %53 : vector<1x32x32xbf16> to vector<32x32xbf16>
    %cst_61 = arith.constant dense<0.000000e+00> : vector<4x32xf32>
    %55 = tpu.matmul %52, %54, %cst_61 {dimension_numbers = #tpu.dot_dimension_numbers<[1], [0], [0], [1], [0, 0, 1, 1], [], []>} : vector<4x32xbf16>, vector<32x32xbf16>, vector<4x32xf32> -> vector<4x32xf32>
    %56 = arith.addf %51, %55 : vector<4x32xf32>
    %c0_62 = arith.constant 0 : index
    %c0_63 = arith.constant 0 : index
    %57 = vector.load %arg8[%c0_62, %c0_63] : memref<1x32xf32, #tpu.memory_space<vmem>>, vector<1x32xf32>
    %58 = vector.broadcast %57 : vector<1x32xf32> to vector<4x32xf32>
    %59 = arith.mulf %56, %58 : vector<4x32xf32>
    %c0_64 = arith.constant 0 : index
    %c0_65 = arith.constant 0 : index
    %60 = vector.load %arg9[%c0_64, %c0_65] : memref<1x32xf32, #tpu.memory_space<vmem>>, vector<1x32xf32>
    %61 = vector.broadcast %60 : vector<1x32xf32> to vector<4x32xf32>
    %62 = arith.addf %59, %61 : vector<4x32xf32>
    %cst_66 = arith.constant 0.000000e+00 : f32
    %63 = vector.broadcast %cst_66 : f32 to vector<4x32xf32>
    %64 = arith.maximumf %62, %63 : vector<4x32xf32>
    %c0_67 = arith.constant 0 : index
    %c0_68 = arith.constant 0 : index
    %c0_69 = arith.constant 0 : index
    %65 = vector.load %arg10[%c0_67, %c0_68, %c0_69] : memref<1x4x32xf32, #tpu.memory_space<vmem>>, vector<1x4x32xf32>
    %66 = vector.shape_cast %65 : vector<1x4x32xf32> to vector<4x32xf32>
    %67 = vector.shape_cast %64 : vector<4x32xf32> to vector<1x4x32xf32>
    tpu.vector_store %arg10[%c0_67, %c0_68, %c0_69], %67 {strides = array<i32>} : memref<1x4x32xf32, #tpu.memory_space<vmem>>, vector<1x4x32xf32>,
    return
  }
  func.func @transform_0(%arg0: i32) -> (i32, i32, i32) {
    %c0_i32 = arith.constant 0 : i32
    %c0_i32_0 = arith.constant 0 : i32
    %c0_i32_1 = arith.constant 0 : i32
    return %arg0, %c0_i32, %c0_i32_0 : i32, i32, i32
  }
  func.func @transform_1(%arg0: i32) -> (i32, i32) {
    %c0_i32 = arith.constant 0 : i32
    %c0_i32_0 = arith.constant 0 : i32
    %c0_i32_1 = arith.constant 0 : i32
    return %c0_i32, %c0_i32_0 : i32, i32
  }
  func.func @transform_2(%arg0: i32) -> (i32, i32) {
    %c0_i32 = arith.constant 0 : i32
    %c0_i32_0 = arith.constant 0 : i32
    %c0_i32_1 = arith.constant 0 : i32
    return %c0_i32, %c0_i32_0 : i32, i32
  }
  func.func @transform_3(%arg0: i32) -> (i32, i32, i32) {
    %c0_i32 = arith.constant 0 : i32
    %c0_i32_0 = arith.constant 0 : i32
    %c0_i32_1 = arith.constant 0 : i32
    %c0_i32_2 = arith.constant 0 : i32
    return %c0_i32, %c0_i32_0, %c0_i32_1 : i32, i32, i32
  }
  func.func @transform_4(%arg0: i32) -> (i32, i32) {
    %c0_i32 = arith.constant 0 : i32
    %c0_i32_0 = arith.constant 0 : i32
    %c0_i32_1 = arith.constant 0 : i32
    return %c0_i32, %c0_i32_0 : i32, i32
  }
  func.func @transform_5(%arg0: i32) -> (i32, i32) {
    %c0_i32 = arith.constant 0 : i32
    %c0_i32_0 = arith.constant 0 : i32
    %c0_i32_1 = arith.constant 0 : i32
    return %c0_i32, %c0_i32_0 : i32, i32
  }
  func.func @transform_6(%arg0: i32) -> (i32, i32, i32) {
    %c0_i32 = arith.constant 0 : i32
    %c0_i32_0 = arith.constant 0 : i32
    %c0_i32_1 = arith.constant 0 : i32
    %c0_i32_2 = arith.constant 0 : i32
    return %c0_i32, %c0_i32_0, %c0_i32_1 : i32, i32, i32
  }
  func.func @transform_7(%arg0: i32) -> (i32, i32) {
    %c0_i32 = arith.constant 0 : i32
    %c0_i32_0 = arith.constant 0 : i32
    %c0_i32_1 = arith.constant 0 : i32
    return %c0_i32, %c0_i32_0 : i32, i32
  }
  func.func @transform_8(%arg0: i32) -> (i32, i32) {
    %c0_i32 = arith.constant 0 : i32
    %c0_i32_0 = arith.constant 0 : i32
    %c0_i32_1 = arith.constant 0 : i32
    return %c0_i32, %c0_i32_0 : i32, i32
  }
  func.func @transform_9(%arg0: i32) -> (i32, i32, i32) {
    %c0_i32 = arith.constant 0 : i32
    %c0_i32_0 = arith.constant 0 : i32
    %c0_i32_1 = arith.constant 0 : i32
    return %arg0, %c0_i32, %c0_i32_0 : i32, i32, i32
  }
}

module attributes {stable_mosaic.version = 11 : i64} {
  func.func @kernel(%arg0: i32, %arg1: memref<1x4x32xf32, #tpu.memory_space<vmem>>, %arg2: memref<1x4x32xf32, #tpu.memory_space<vmem>>, %arg3: memref<1x8x64xf32, #tpu.memory_space<vmem>>, %arg4: memref<1x8x64xf32, #tpu.memory_space<vmem>>, %arg5: memref<2x32x64xbf16, #tpu.memory_space<vmem>>, %arg6: memref<1x64xf32, #tpu.memory_space<vmem>>, %arg7: memref<3x64x32xbf16, #tpu.memory_space<vmem>>, %arg8: memref<3x64x32xbf16, #tpu.memory_space<vmem>>, %arg9: memref<1x32xf32, #tpu.memory_space<vmem>>, %arg10: memref<1x32xf32, #tpu.memory_space<vmem>>, %arg11: memref<3x32x32xbf16, #tpu.memory_space<vmem>>, %arg12: memref<1x32xf32, #tpu.memory_space<vmem>>, %arg13: memref<1x32xf32, #tpu.memory_space<vmem>>, %arg14: memref<1x8x32xf32, #tpu.memory_space<vmem>>, %arg15: memref<10x64xbf16, #tpu.memory_space<vmem>>, %arg16: memref<10x64xbf16, #tpu.memory_space<vmem>>, %arg17: memref<10x32xbf16, #tpu.memory_space<vmem>>) attributes {dimension_semantics = [#tpu.dimension_semantics<parallel>], iteration_bounds = array<i64: 2>, scalar_prefetch = 0 : i64, scratch_operands = 3 : i64, tpu.core_type = #tpu.core_type<tc>, window_params = [{transform_indices = @transform_0, window_bounds = array<i64: 1, 4, 32>}, {transform_indices = @transform_1, window_bounds = array<i64: 1, 4, 32>}, {transform_indices = @transform_2, window_bounds = array<i64: 1, 8, 64>}, {transform_indices = @transform_3, window_bounds = array<i64: 1, 8, 64>}, {pipeline_mode = #tpu.pipeline_mode<synchronous>, transform_indices = @transform_4, window_bounds = array<i64: 2, 32, 64>}, {pipeline_mode = #tpu.pipeline_mode<synchronous>, transform_indices = @transform_5, window_bounds = array<i64: 1, 64>}, {pipeline_mode = #tpu.pipeline_mode<synchronous>, transform_indices = @transform_6, window_bounds = array<i64: 3, 64, 32>}, {pipeline_mode = #tpu.pipeline_mode<synchronous>, transform_indices = @transform_7, window_bounds = array<i64: 3, 64, 32>}, {pipeline_mode = #tpu.pipeline_mode<synchronous>, transform_indices = @transform_8, window_bounds = array<i64: 1, 32>}, {pipeline_mode = #tpu.pipeline_mode<synchronous>, transform_indices = @transform_9, window_bounds = array<i64: 1, 32>}, {pipeline_mode = #tpu.pipeline_mode<synchronous>, transform_indices = @transform_10, window_bounds = array<i64: 3, 32, 32>}, {pipeline_mode = #tpu.pipeline_mode<synchronous>, transform_indices = @transform_11, window_bounds = array<i64: 1, 32>}, {pipeline_mode = #tpu.pipeline_mode<synchronous>, transform_indices = @transform_12, window_bounds = array<i64: 1, 32>}, {transform_indices = @transform_13, window_bounds = array<i64: 1, 8, 32>}]} {
    %c0 = arith.constant 0 : index
    %c0_0 = arith.constant 0 : index
    %c0_1 = arith.constant 0 : index
    %0 = vector.load %arg1[%c0, %c0_0, %c0_1] : memref<1x4x32xf32, #tpu.memory_space<vmem>>, vector<1x4x32xf32>
    %1 = vector.shape_cast %0 : vector<1x4x32xf32> to vector<4x32xf32>
    %c0_2 = arith.constant 0 : index
    %c0_3 = arith.constant 0 : index
    %c0_4 = arith.constant 0 : index
    %2 = vector.load %arg2[%c0_2, %c0_3, %c0_4] : memref<1x4x32xf32, #tpu.memory_space<vmem>>, vector<1x4x32xf32>
    %3 = vector.shape_cast %2 : vector<1x4x32xf32> to vector<4x32xf32>
    %4 = arith.subf %1, %3 : vector<4x32xf32>
    %c0_5 = arith.constant 0 : index
    %c0_6 = arith.constant 0 : index
    %c0_7 = arith.constant 0 : index
    %5 = vector.load %arg3[%c0_5, %c0_6, %c0_7] : memref<1x8x64xf32, #tpu.memory_space<vmem>>, vector<1x8x64xf32>
    %6 = vector.shape_cast %5 : vector<1x8x64xf32> to vector<8x64xf32>
    %c0_8 = arith.constant 0 : index
    %c0_9 = arith.constant 0 : index
    %c0_10 = arith.constant 0 : index
    %7 = vector.load %arg4[%c0_8, %c0_9, %c0_10] : memref<1x8x64xf32, #tpu.memory_space<vmem>>, vector<1x8x64xf32>
    %8 = vector.shape_cast %7 : vector<1x8x64xf32> to vector<8x64xf32>
    %9 = arith.subf %6, %8 : vector<8x64xf32>
    %cst = arith.constant 0.000000e+00 : bf16
    %10 = vector.broadcast %cst : bf16 to vector<1x64xbf16>
    %c0_11 = arith.constant 0 : index
    %c0_12 = arith.constant 0 : index
    %11 = vector.load %arg15[%c0_11, %c0_12] : memref<10x64xbf16, #tpu.memory_space<vmem>>, vector<1x64xbf16>
    tpu.vector_store %arg15[%c0_11, %c0_12], %10 {strides = array<i32>} : memref<10x64xbf16, #tpu.memory_space<vmem>>, vector<1x64xbf16>,
    %c9 = arith.constant 9 : index
    %c0_13 = arith.constant 0 : index
    %12 = vector.load %arg15[%c9, %c0_13] : memref<10x64xbf16, #tpu.memory_space<vmem>>, vector<1x64xbf16>
    tpu.vector_store %arg15[%c9, %c0_13], %10 {strides = array<i32>} : memref<10x64xbf16, #tpu.memory_space<vmem>>, vector<1x64xbf16>,
    %cst_14 = arith.constant 0.000000e+00 : bf16
    %13 = vector.broadcast %cst_14 : bf16 to vector<1x64xbf16>
    %c0_15 = arith.constant 0 : index
    %c0_16 = arith.constant 0 : index
    %14 = vector.load %arg16[%c0_15, %c0_16] : memref<10x64xbf16, #tpu.memory_space<vmem>>, vector<1x64xbf16>
    tpu.vector_store %arg16[%c0_15, %c0_16], %13 {strides = array<i32>} : memref<10x64xbf16, #tpu.memory_space<vmem>>, vector<1x64xbf16>,
    %c9_17 = arith.constant 9 : index
    %c0_18 = arith.constant 0 : index
    %15 = vector.load %arg16[%c9_17, %c0_18] : memref<10x64xbf16, #tpu.memory_space<vmem>>, vector<1x64xbf16>
    tpu.vector_store %arg16[%c9_17, %c0_18], %13 {strides = array<i32>} : memref<10x64xbf16, #tpu.memory_space<vmem>>, vector<1x64xbf16>,
    %cst_19 = arith.constant 0.000000e+00 : bf16
    %16 = vector.broadcast %cst_19 : bf16 to vector<1x32xbf16>
    %c0_20 = arith.constant 0 : index
    %c0_21 = arith.constant 0 : index
    %17 = vector.load %arg17[%c0_20, %c0_21] : memref<10x32xbf16, #tpu.memory_space<vmem>>, vector<1x32xbf16>
    tpu.vector_store %arg17[%c0_20, %c0_21], %16 {strides = array<i32>} : memref<10x32xbf16, #tpu.memory_space<vmem>>, vector<1x32xbf16>,
    %c9_22 = arith.constant 9 : index
    %c0_23 = arith.constant 0 : index
    %18 = vector.load %arg17[%c9_22, %c0_23] : memref<10x32xbf16, #tpu.memory_space<vmem>>, vector<1x32xbf16>
    tpu.vector_store %arg17[%c9_22, %c0_23], %16 {strides = array<i32>} : memref<10x32xbf16, #tpu.memory_space<vmem>>, vector<1x32xbf16>,
    %19 = arith.truncf %9 : vector<8x64xf32> to vector<8x64xbf16>
    %c1 = arith.constant 1 : index
    %c0_24 = arith.constant 0 : index
    %20 = vector.load %arg15[%c1, %c0_24] : memref<10x64xbf16, #tpu.memory_space<vmem>>, vector<8x64xbf16>
    tpu.vector_store %arg15[%c1, %c0_24], %19 {strides = array<i32>} : memref<10x64xbf16, #tpu.memory_space<vmem>>, vector<8x64xbf16>,
    %21 = arith.truncf %4 : vector<4x32xf32> to vector<4x32xbf16>
    %c0_25 = arith.constant 0 : index
    %c0_26 = arith.constant 0 : index
    %c0_27 = arith.constant 0 : index
    %22 = vector.load %arg5[%c0_25, %c0_26, %c0_27] : memref<2x32x64xbf16, #tpu.memory_space<vmem>>, vector<1x32x64xbf16>
    %23 = vector.shape_cast %22 : vector<1x32x64xbf16> to vector<32x64xbf16>
    %cst_28 = arith.constant dense<0.000000e+00> : vector<4x64xf32>
    %24 = tpu.matmul %21, %23, %cst_28 {dimension_numbers = #tpu.dot_dimension_numbers<[1], [0], [0], [1], [0, 0, 1, 1], [], []>} : vector<4x32xbf16>, vector<32x64xbf16>, vector<4x64xf32> -> vector<4x64xf32>
    %c0_29 = arith.constant 0 : index
    %c0_30 = arith.constant 0 : index
    %25 = vector.load %arg6[%c0_29, %c0_30] : memref<1x64xf32, #tpu.memory_space<vmem>>, vector<1x64xf32>
    %26 = vector.broadcast %25 : vector<1x64xf32> to vector<4x64xf32>
    %27 = arith.addf %24, %26 : vector<4x64xf32>
    %c1_31 = arith.constant 1 : index
    %c0_32 = arith.constant 0 : index
    %c0_33 = arith.constant 0 : index
    %28 = vector.load %arg5[%c1_31, %c0_32, %c0_33] : memref<2x32x64xbf16, #tpu.memory_space<vmem>>, vector<1x32x64xbf16>
    %29 = vector.shape_cast %28 : vector<1x32x64xbf16> to vector<32x64xbf16>
    %cst_34 = arith.constant dense<0.000000e+00> : vector<4x64xf32>
    %30 = tpu.matmul %21, %29, %cst_34 {dimension_numbers = #tpu.dot_dimension_numbers<[1], [0], [0], [1], [0, 0, 1, 1], [], []>} : vector<4x32xbf16>, vector<32x64xbf16>, vector<4x64xf32> -> vector<4x64xf32>
    %c0_35 = arith.constant 0 : index
    %c0_36 = arith.constant 0 : index
    %31 = vector.load %arg6[%c0_35, %c0_36] : memref<1x64xf32, #tpu.memory_space<vmem>>, vector<1x64xf32>
    %32 = vector.broadcast %31 : vector<1x64xf32> to vector<4x64xf32>
    %33 = arith.addf %30, %32 : vector<4x64xf32>
    %34 = vector.shape_cast %27 : vector<4x64xf32> to vector<4x1x64xf32>
    %35 = vector.shape_cast %33 : vector<4x64xf32> to vector<4x1x64xf32>
    %36 = tpu.concatenate %34, %35 in 1 : vector<4x1x64xf32>, vector<4x1x64xf32> -> vector<4x2x64xf32>
    %37 = vector.shape_cast %36 : vector<4x2x64xf32> to vector<8x64xf32>
    %38 = arith.truncf %37 : vector<8x64xf32> to vector<8x64xbf16>
    %c1_37 = arith.constant 1 : index
    %c0_38 = arith.constant 0 : index
    %39 = vector.load %arg16[%c1_37, %c0_38] : memref<10x64xbf16, #tpu.memory_space<vmem>>, vector<8x64xbf16>
    tpu.vector_store %arg16[%c1_37, %c0_38], %38 {strides = array<i32>} : memref<10x64xbf16, #tpu.memory_space<vmem>>, vector<8x64xbf16>,
    %c0_39 = arith.constant 0 : index
    %c0_40 = arith.constant 0 : index
    %40 = vector.load %arg15[%c0_39, %c0_40] : memref<10x64xbf16, #tpu.memory_space<vmem>>, vector<8x64xbf16>
    %c0_41 = arith.constant 0 : index
    %c0_42 = arith.constant 0 : index
    %c0_43 = arith.constant 0 : index
    %41 = vector.load %arg7[%c0_41, %c0_42, %c0_43] : memref<3x64x32xbf16, #tpu.memory_space<vmem>>, vector<1x64x32xbf16>
    %42 = vector.shape_cast %41 : vector<1x64x32xbf16> to vector<64x32xbf16>
    %cst_44 = arith.constant dense<0.000000e+00> : vector<8x32xf32>
    %43 = tpu.matmul %40, %42, %cst_44 {dimension_numbers = #tpu.dot_dimension_numbers<[1], [0], [0], [1], [0, 0, 1, 1], [], []>} : vector<8x64xbf16>, vector<64x32xbf16>, vector<8x32xf32> -> vector<8x32xf32>
    %c0_45 = arith.constant 0 : index
    %c0_46 = arith.constant 0 : index
    %44 = vector.load %arg16[%c0_45, %c0_46] : memref<10x64xbf16, #tpu.memory_space<vmem>>, vector<8x64xbf16>
    %c0_47 = arith.constant 0 : index
    %c0_48 = arith.constant 0 : index
    %c0_49 = arith.constant 0 : index
    %45 = vector.load %arg8[%c0_47, %c0_48, %c0_49] : memref<3x64x32xbf16, #tpu.memory_space<vmem>>, vector<1x64x32xbf16>
    %46 = vector.shape_cast %45 : vector<1x64x32xbf16> to vector<64x32xbf16>
    %cst_50 = arith.constant dense<0.000000e+00> : vector<8x32xf32>
    %47 = tpu.matmul %44, %46, %cst_50 {dimension_numbers = #tpu.dot_dimension_numbers<[1], [0], [0], [1], [0, 0, 1, 1], [], []>} : vector<8x64xbf16>, vector<64x32xbf16>, vector<8x32xf32> -> vector<8x32xf32>
    %48 = arith.addf %43, %47 : vector<8x32xf32>
    %c1_51 = arith.constant 1 : index
    %c0_52 = arith.constant 0 : index
    %49 = vector.load %arg15[%c1_51, %c0_52] : memref<10x64xbf16, #tpu.memory_space<vmem>>, vector<8x64xbf16>
    %c1_53 = arith.constant 1 : index
    %c0_54 = arith.constant 0 : index
    %c0_55 = arith.constant 0 : index
    %50 = vector.load %arg7[%c1_53, %c0_54, %c0_55] : memref<3x64x32xbf16, #tpu.memory_space<vmem>>, vector<1x64x32xbf16>
    %51 = vector.shape_cast %50 : vector<1x64x32xbf16> to vector<64x32xbf16>
    %cst_56 = arith.constant dense<0.000000e+00> : vector<8x32xf32>
    %52 = tpu.matmul %49, %51, %cst_56 {dimension_numbers = #tpu.dot_dimension_numbers<[1], [0], [0], [1], [0, 0, 1, 1], [], []>} : vector<8x64xbf16>, vector<64x32xbf16>, vector<8x32xf32> -> vector<8x32xf32>
    %c1_57 = arith.constant 1 : index
    %c0_58 = arith.constant 0 : index
    %53 = vector.load %arg16[%c1_57, %c0_58] : memref<10x64xbf16, #tpu.memory_space<vmem>>, vector<8x64xbf16>
    %c1_59 = arith.constant 1 : index
    %c0_60 = arith.constant 0 : index
    %c0_61 = arith.constant 0 : index
    %54 = vector.load %arg8[%c1_59, %c0_60, %c0_61] : memref<3x64x32xbf16, #tpu.memory_space<vmem>>, vector<1x64x32xbf16>
    %55 = vector.shape_cast %54 : vector<1x64x32xbf16> to vector<64x32xbf16>
    %cst_62 = arith.constant dense<0.000000e+00> : vector<8x32xf32>
    %56 = tpu.matmul %53, %55, %cst_62 {dimension_numbers = #tpu.dot_dimension_numbers<[1], [0], [0], [1], [0, 0, 1, 1], [], []>} : vector<8x64xbf16>, vector<64x32xbf16>, vector<8x32xf32> -> vector<8x32xf32>
    %57 = arith.addf %52, %56 : vector<8x32xf32>
    %58 = arith.addf %48, %57 : vector<8x32xf32>
    %c2 = arith.constant 2 : index
    %c0_63 = arith.constant 0 : index
    %59 = vector.load %arg15[%c2, %c0_63] : memref<10x64xbf16, #tpu.memory_space<vmem>>, vector<8x64xbf16>
    %c2_64 = arith.constant 2 : index
    %c0_65 = arith.constant 0 : index
    %c0_66 = arith.constant 0 : index
    %60 = vector.load %arg7[%c2_64, %c0_65, %c0_66] : memref<3x64x32xbf16, #tpu.memory_space<vmem>>, vector<1x64x32xbf16>
    %61 = vector.shape_cast %60 : vector<1x64x32xbf16> to vector<64x32xbf16>
    %cst_67 = arith.constant dense<0.000000e+00> : vector<8x32xf32>
    %62 = tpu.matmul %59, %61, %cst_67 {dimension_numbers = #tpu.dot_dimension_numbers<[1], [0], [0], [1], [0, 0, 1, 1], [], []>} : vector<8x64xbf16>, vector<64x32xbf16>, vector<8x32xf32> -> vector<8x32xf32>
    %c2_68 = arith.constant 2 : index
    %c0_69 = arith.constant 0 : index
    %63 = vector.load %arg16[%c2_68, %c0_69] : memref<10x64xbf16, #tpu.memory_space<vmem>>, vector<8x64xbf16>
    %c2_70 = arith.constant 2 : index
    %c0_71 = arith.constant 0 : index
    %c0_72 = arith.constant 0 : index
    %64 = vector.load %arg8[%c2_70, %c0_71, %c0_72] : memref<3x64x32xbf16, #tpu.memory_space<vmem>>, vector<1x64x32xbf16>
    %65 = vector.shape_cast %64 : vector<1x64x32xbf16> to vector<64x32xbf16>
    %cst_73 = arith.constant dense<0.000000e+00> : vector<8x32xf32>
    %66 = tpu.matmul %63, %65, %cst_73 {dimension_numbers = #tpu.dot_dimension_numbers<[1], [0], [0], [1], [0, 0, 1, 1], [], []>} : vector<8x64xbf16>, vector<64x32xbf16>, vector<8x32xf32> -> vector<8x32xf32>
    %67 = arith.addf %62, %66 : vector<8x32xf32>
    %68 = arith.addf %58, %67 : vector<8x32xf32>
    %c0_74 = arith.constant 0 : index
    %c0_75 = arith.constant 0 : index
    %69 = vector.load %arg9[%c0_74, %c0_75] : memref<1x32xf32, #tpu.memory_space<vmem>>, vector<1x32xf32>
    %70 = vector.broadcast %69 : vector<1x32xf32> to vector<8x32xf32>
    %71 = arith.mulf %68, %70 : vector<8x32xf32>
    %c0_76 = arith.constant 0 : index
    %c0_77 = arith.constant 0 : index
    %72 = vector.load %arg10[%c0_76, %c0_77] : memref<1x32xf32, #tpu.memory_space<vmem>>, vector<1x32xf32>
    %73 = vector.broadcast %72 : vector<1x32xf32> to vector<8x32xf32>
    %74 = arith.addf %71, %73 : vector<8x32xf32>
    %cst_78 = arith.constant 0.000000e+00 : f32
    %75 = vector.broadcast %cst_78 : f32 to vector<8x32xf32>
    %76 = arith.maximumf %74, %75 : vector<8x32xf32>
    %77 = arith.truncf %76 : vector<8x32xf32> to vector<8x32xbf16>
    %c1_79 = arith.constant 1 : index
    %c0_80 = arith.constant 0 : index
    %78 = vector.load %arg17[%c1_79, %c0_80] : memref<10x32xbf16, #tpu.memory_space<vmem>>, vector<8x32xbf16>
    tpu.vector_store %arg17[%c1_79, %c0_80], %77 {strides = array<i32>} : memref<10x32xbf16, #tpu.memory_space<vmem>>, vector<8x32xbf16>,
    %c0_81 = arith.constant 0 : index
    %c0_82 = arith.constant 0 : index
    %79 = vector.load %arg17[%c0_81, %c0_82] : memref<10x32xbf16, #tpu.memory_space<vmem>>, vector<8x32xbf16>
    %c0_83 = arith.constant 0 : index
    %c0_84 = arith.constant 0 : index
    %c0_85 = arith.constant 0 : index
    %80 = vector.load %arg11[%c0_83, %c0_84, %c0_85] : memref<3x32x32xbf16, #tpu.memory_space<vmem>>, vector<1x32x32xbf16>
    %81 = vector.shape_cast %80 : vector<1x32x32xbf16> to vector<32x32xbf16>
    %cst_86 = arith.constant dense<0.000000e+00> : vector<8x32xf32>
    %82 = tpu.matmul %79, %81, %cst_86 {dimension_numbers = #tpu.dot_dimension_numbers<[1], [0], [0], [1], [0, 0, 1, 1], [], []>} : vector<8x32xbf16>, vector<32x32xbf16>, vector<8x32xf32> -> vector<8x32xf32>
    %c1_87 = arith.constant 1 : index
    %c0_88 = arith.constant 0 : index
    %83 = vector.load %arg17[%c1_87, %c0_88] : memref<10x32xbf16, #tpu.memory_space<vmem>>, vector<8x32xbf16>
    %c1_89 = arith.constant 1 : index
    %c0_90 = arith.constant 0 : index
    %c0_91 = arith.constant 0 : index
    %84 = vector.load %arg11[%c1_89, %c0_90, %c0_91] : memref<3x32x32xbf16, #tpu.memory_space<vmem>>, vector<1x32x32xbf16>
    %85 = vector.shape_cast %84 : vector<1x32x32xbf16> to vector<32x32xbf16>
    %cst_92 = arith.constant dense<0.000000e+00> : vector<8x32xf32>
    %86 = tpu.matmul %83, %85, %cst_92 {dimension_numbers = #tpu.dot_dimension_numbers<[1], [0], [0], [1], [0, 0, 1, 1], [], []>} : vector<8x32xbf16>, vector<32x32xbf16>, vector<8x32xf32> -> vector<8x32xf32>
    %87 = arith.addf %82, %86 : vector<8x32xf32>
    %c2_93 = arith.constant 2 : index
    %c0_94 = arith.constant 0 : index
    %88 = vector.load %arg17[%c2_93, %c0_94] : memref<10x32xbf16, #tpu.memory_space<vmem>>, vector<8x32xbf16>
    %c2_95 = arith.constant 2 : index
    %c0_96 = arith.constant 0 : index
    %c0_97 = arith.constant 0 : index
    %89 = vector.load %arg11[%c2_95, %c0_96, %c0_97] : memref<3x32x32xbf16, #tpu.memory_space<vmem>>, vector<1x32x32xbf16>
    %90 = vector.shape_cast %89 : vector<1x32x32xbf16> to vector<32x32xbf16>
    %cst_98 = arith.constant dense<0.000000e+00> : vector<8x32xf32>
    %91 = tpu.matmul %88, %90, %cst_98 {dimension_numbers = #tpu.dot_dimension_numbers<[1], [0], [0], [1], [0, 0, 1, 1], [], []>} : vector<8x32xbf16>, vector<32x32xbf16>, vector<8x32xf32> -> vector<8x32xf32>
    %92 = arith.addf %87, %91 : vector<8x32xf32>
    %c0_99 = arith.constant 0 : index
    %c0_100 = arith.constant 0 : index
    %93 = vector.load %arg12[%c0_99, %c0_100] : memref<1x32xf32, #tpu.memory_space<vmem>>, vector<1x32xf32>
    %94 = vector.broadcast %93 : vector<1x32xf32> to vector<8x32xf32>
    %95 = arith.mulf %92, %94 : vector<8x32xf32>
    %c0_101 = arith.constant 0 : index
    %c0_102 = arith.constant 0 : index
    %96 = vector.load %arg13[%c0_101, %c0_102] : memref<1x32xf32, #tpu.memory_space<vmem>>, vector<1x32xf32>
    %97 = vector.broadcast %96 : vector<1x32xf32> to vector<8x32xf32>
    %98 = arith.addf %95, %97 : vector<8x32xf32>
    %cst_103 = arith.constant 0.000000e+00 : f32
    %99 = vector.broadcast %cst_103 : f32 to vector<8x32xf32>
    %100 = arith.maximumf %98, %99 : vector<8x32xf32>
    %c0_104 = arith.constant 0 : index
    %c0_105 = arith.constant 0 : index
    %c0_106 = arith.constant 0 : index
    %101 = vector.load %arg14[%c0_104, %c0_105, %c0_106] : memref<1x8x32xf32, #tpu.memory_space<vmem>>, vector<1x8x32xf32>
    %102 = vector.shape_cast %101 : vector<1x8x32xf32> to vector<8x32xf32>
    %103 = vector.shape_cast %100 : vector<8x32xf32> to vector<1x8x32xf32>
    tpu.vector_store %arg14[%c0_104, %c0_105, %c0_106], %103 {strides = array<i32>} : memref<1x8x32xf32, #tpu.memory_space<vmem>>, vector<1x8x32xf32>,
    return
  }
  func.func @transform_0(%arg0: i32) -> (i32, i32, i32) {
    %c2_i32 = arith.constant 2 : i32
    %0 = arith.addi %arg0, %c2_i32 : i32
    %c0_i32 = arith.constant 0 : i32
    %c0_i32_0 = arith.constant 0 : i32
    %c0_i32_1 = arith.constant 0 : i32
    return %0, %c0_i32, %c0_i32_0 : i32, i32, i32
  }
  func.func @transform_1(%arg0: i32) -> (i32, i32, i32) {
    %c0_i32 = arith.constant 0 : i32
    %0 = arith.addi %arg0, %c0_i32 : i32
    %c0_i32_0 = arith.constant 0 : i32
    %c0_i32_1 = arith.constant 0 : i32
    %c0_i32_2 = arith.constant 0 : i32
    return %0, %c0_i32_0, %c0_i32_1 : i32, i32, i32
  }
  func.func @transform_2(%arg0: i32) -> (i32, i32, i32) {
    %c2_i32 = arith.constant 2 : i32
    %0 = arith.addi %arg0, %c2_i32 : i32
    %c0_i32 = arith.constant 0 : i32
    %c0_i32_0 = arith.constant 0 : i32
    %c0_i32_1 = arith.constant 0 : i32
    return %0, %c0_i32, %c0_i32_0 : i32, i32, i32
  }
  func.func @transform_3(%arg0: i32) -> (i32, i32, i32) {
    %c0_i32 = arith.constant 0 : i32
    %0 = arith.addi %arg0, %c0_i32 : i32
    %c0_i32_0 = arith.constant 0 : i32
    %c0_i32_1 = arith.constant 0 : i32
    %c0_i32_2 = arith.constant 0 : i32
    return %0, %c0_i32_0, %c0_i32_1 : i32, i32, i32
  }
  func.func @transform_4(%arg0: i32) -> (i32, i32, i32) {
    %c0_i32 = arith.constant 0 : i32
    %c0_i32_0 = arith.constant 0 : i32
    %c0_i32_1 = arith.constant 0 : i32
    %c0_i32_2 = arith.constant 0 : i32
    return %c0_i32, %c0_i32_0, %c0_i32_1 : i32, i32, i32
  }
  func.func @transform_5(%arg0: i32) -> (i32, i32) {
    %c0_i32 = arith.constant 0 : i32
    %c0_i32_0 = arith.constant 0 : i32
    %c0_i32_1 = arith.constant 0 : i32
    return %c0_i32, %c0_i32_0 : i32, i32
  }
  func.func @transform_6(%arg0: i32) -> (i32, i32, i32) {
    %c0_i32 = arith.constant 0 : i32
    %c0_i32_0 = arith.constant 0 : i32
    %c0_i32_1 = arith.constant 0 : i32
    %c0_i32_2 = arith.constant 0 : i32
    return %c0_i32, %c0_i32_0, %c0_i32_1 : i32, i32, i32
  }
  func.func @transform_7(%arg0: i32) -> (i32, i32, i32) {
    %c0_i32 = arith.constant 0 : i32
    %c0_i32_0 = arith.constant 0 : i32
    %c0_i32_1 = arith.constant 0 : i32
    %c0_i32_2 = arith.constant 0 : i32
    return %c0_i32, %c0_i32_0, %c0_i32_1 : i32, i32, i32
  }
  func.func @transform_8(%arg0: i32) -> (i32, i32) {
    %c0_i32 = arith.constant 0 : i32
    %c0_i32_0 = arith.constant 0 : i32
    %c0_i32_1 = arith.constant 0 : i32
    return %c0_i32, %c0_i32_0 : i32, i32
  }
  func.func @transform_9(%arg0: i32) -> (i32, i32) {
    %c0_i32 = arith.constant 0 : i32
    %c0_i32_0 = arith.constant 0 : i32
    %c0_i32_1 = arith.constant 0 : i32
    return %c0_i32, %c0_i32_0 : i32, i32
  }
  func.func @transform_10(%arg0: i32) -> (i32, i32, i32) {
    %c0_i32 = arith.constant 0 : i32
    %c0_i32_0 = arith.constant 0 : i32
    %c0_i32_1 = arith.constant 0 : i32
    %c0_i32_2 = arith.constant 0 : i32
    return %c0_i32, %c0_i32_0, %c0_i32_1 : i32, i32, i32
  }
  func.func @transform_11(%arg0: i32) -> (i32, i32) {
    %c0_i32 = arith.constant 0 : i32
    %c0_i32_0 = arith.constant 0 : i32
    %c0_i32_1 = arith.constant 0 : i32
    return %c0_i32, %c0_i32_0 : i32, i32
  }
  func.func @transform_12(%arg0: i32) -> (i32, i32) {
    %c0_i32 = arith.constant 0 : i32
    %c0_i32_0 = arith.constant 0 : i32
    %c0_i32_1 = arith.constant 0 : i32
    return %c0_i32, %c0_i32_0 : i32, i32
  }
  func.func @transform_13(%arg0: i32) -> (i32, i32, i32) {
    %c0_i32 = arith.constant 0 : i32
    %c0_i32_0 = arith.constant 0 : i32
    %c0_i32_1 = arith.constant 0 : i32
    return %arg0, %c0_i32, %c0_i32_0 : i32, i32, i32
  }
}

module attributes {stable_mosaic.version = 11 : i64} {
  func.func @kernel(%arg0: i32, %arg1: memref<1x8x32xf32, #tpu.memory_space<vmem>>, %arg2: memref<1x16x64xf32, #tpu.memory_space<vmem>>, %arg3: memref<1x16x64xf32, #tpu.memory_space<vmem>>, %arg4: memref<2x32x64xbf16, #tpu.memory_space<vmem>>, %arg5: memref<1x64xf32, #tpu.memory_space<vmem>>, %arg6: memref<3x64x64xbf16, #tpu.memory_space<vmem>>, %arg7: memref<3x64x64xbf16, #tpu.memory_space<vmem>>, %arg8: memref<1x64xf32, #tpu.memory_space<vmem>>, %arg9: memref<1x64xf32, #tpu.memory_space<vmem>>, %arg10: memref<3x64x64xbf16, #tpu.memory_space<vmem>>, %arg11: memref<1x64xf32, #tpu.memory_space<vmem>>, %arg12: memref<1x64xf32, #tpu.memory_space<vmem>>, %arg13: memref<1x16x64xf32, #tpu.memory_space<vmem>>, %arg14: memref<18x64xbf16, #tpu.memory_space<vmem>>, %arg15: memref<18x64xbf16, #tpu.memory_space<vmem>>, %arg16: memref<18x64xbf16, #tpu.memory_space<vmem>>) attributes {dimension_semantics = [#tpu.dimension_semantics<parallel>], iteration_bounds = array<i64: 2>, scalar_prefetch = 0 : i64, scratch_operands = 3 : i64, tpu.core_type = #tpu.core_type<tc>, window_params = [{transform_indices = @transform_0, window_bounds = array<i64: 1, 8, 32>}, {transform_indices = @transform_1, window_bounds = array<i64: 1, 16, 64>}, {transform_indices = @transform_2, window_bounds = array<i64: 1, 16, 64>}, {pipeline_mode = #tpu.pipeline_mode<synchronous>, transform_indices = @transform_3, window_bounds = array<i64: 2, 32, 64>}, {pipeline_mode = #tpu.pipeline_mode<synchronous>, transform_indices = @transform_4, window_bounds = array<i64: 1, 64>}, {pipeline_mode = #tpu.pipeline_mode<synchronous>, transform_indices = @transform_5, window_bounds = array<i64: 3, 64, 64>}, {pipeline_mode = #tpu.pipeline_mode<synchronous>, transform_indices = @transform_6, window_bounds = array<i64: 3, 64, 64>}, {pipeline_mode = #tpu.pipeline_mode<synchronous>, transform_indices = @transform_7, window_bounds = array<i64: 1, 64>}, {pipeline_mode = #tpu.pipeline_mode<synchronous>, transform_indices = @transform_8, window_bounds = array<i64: 1, 64>}, {pipeline_mode = #tpu.pipeline_mode<synchronous>, transform_indices = @transform_9, window_bounds = array<i64: 3, 64, 64>}, {pipeline_mode = #tpu.pipeline_mode<synchronous>, transform_indices = @transform_10, window_bounds = array<i64: 1, 64>}, {pipeline_mode = #tpu.pipeline_mode<synchronous>, transform_indices = @transform_11, window_bounds = array<i64: 1, 64>}, {transform_indices = @transform_12, window_bounds = array<i64: 1, 16, 64>}]} {
    %c0 = arith.constant 0 : index
    %c0_0 = arith.constant 0 : index
    %c0_1 = arith.constant 0 : index
    %0 = vector.load %arg1[%c0, %c0_0, %c0_1] : memref<1x8x32xf32, #tpu.memory_space<vmem>>, vector<1x8x32xf32>
    %1 = vector.shape_cast %0 : vector<1x8x32xf32> to vector<8x32xf32>
    %c0_2 = arith.constant 0 : index
    %c0_3 = arith.constant 0 : index
    %c0_4 = arith.constant 0 : index
    %2 = vector.load %arg2[%c0_2, %c0_3, %c0_4] : memref<1x16x64xf32, #tpu.memory_space<vmem>>, vector<1x16x64xf32>
    %3 = vector.shape_cast %2 : vector<1x16x64xf32> to vector<16x64xf32>
    %c0_5 = arith.constant 0 : index
    %c0_6 = arith.constant 0 : index
    %c0_7 = arith.constant 0 : index
    %4 = vector.load %arg3[%c0_5, %c0_6, %c0_7] : memref<1x16x64xf32, #tpu.memory_space<vmem>>, vector<1x16x64xf32>
    %5 = vector.shape_cast %4 : vector<1x16x64xf32> to vector<16x64xf32>
    %6 = arith.subf %3, %5 : vector<16x64xf32>
    %cst = arith.constant 0.000000e+00 : bf16
    %7 = vector.broadcast %cst : bf16 to vector<1x64xbf16>
    %c0_8 = arith.constant 0 : index
    %c0_9 = arith.constant 0 : index
    %8 = vector.load %arg14[%c0_8, %c0_9] : memref<18x64xbf16, #tpu.memory_space<vmem>>, vector<1x64xbf16>
    tpu.vector_store %arg14[%c0_8, %c0_9], %7 {strides = array<i32>} : memref<18x64xbf16, #tpu.memory_space<vmem>>, vector<1x64xbf16>,
    %c17 = arith.constant 17 : index
    %c0_10 = arith.constant 0 : index
    %9 = vector.load %arg14[%c17, %c0_10] : memref<18x64xbf16, #tpu.memory_space<vmem>>, vector<1x64xbf16>
    tpu.vector_store %arg14[%c17, %c0_10], %7 {strides = array<i32>} : memref<18x64xbf16, #tpu.memory_space<vmem>>, vector<1x64xbf16>,
    %cst_11 = arith.constant 0.000000e+00 : bf16
    %10 = vector.broadcast %cst_11 : bf16 to vector<1x64xbf16>
    %c0_12 = arith.constant 0 : index
    %c0_13 = arith.constant 0 : index
    %11 = vector.load %arg15[%c0_12, %c0_13] : memref<18x64xbf16, #tpu.memory_space<vmem>>, vector<1x64xbf16>
    tpu.vector_store %arg15[%c0_12, %c0_13], %10 {strides = array<i32>} : memref<18x64xbf16, #tpu.memory_space<vmem>>, vector<1x64xbf16>,
    %c17_14 = arith.constant 17 : index
    %c0_15 = arith.constant 0 : index
    %12 = vector.load %arg15[%c17_14, %c0_15] : memref<18x64xbf16, #tpu.memory_space<vmem>>, vector<1x64xbf16>
    tpu.vector_store %arg15[%c17_14, %c0_15], %10 {strides = array<i32>} : memref<18x64xbf16, #tpu.memory_space<vmem>>, vector<1x64xbf16>,
    %cst_16 = arith.constant 0.000000e+00 : bf16
    %13 = vector.broadcast %cst_16 : bf16 to vector<1x64xbf16>
    %c0_17 = arith.constant 0 : index
    %c0_18 = arith.constant 0 : index
    %14 = vector.load %arg16[%c0_17, %c0_18] : memref<18x64xbf16, #tpu.memory_space<vmem>>, vector<1x64xbf16>
    tpu.vector_store %arg16[%c0_17, %c0_18], %13 {strides = array<i32>} : memref<18x64xbf16, #tpu.memory_space<vmem>>, vector<1x64xbf16>,
    %c17_19 = arith.constant 17 : index
    %c0_20 = arith.constant 0 : index
    %15 = vector.load %arg16[%c17_19, %c0_20] : memref<18x64xbf16, #tpu.memory_space<vmem>>, vector<1x64xbf16>
    tpu.vector_store %arg16[%c17_19, %c0_20], %13 {strides = array<i32>} : memref<18x64xbf16, #tpu.memory_space<vmem>>, vector<1x64xbf16>,
    %16 = arith.truncf %6 : vector<16x64xf32> to vector<16x64xbf16>
    %c1 = arith.constant 1 : index
    %c0_21 = arith.constant 0 : index
    %17 = vector.load %arg14[%c1, %c0_21] : memref<18x64xbf16, #tpu.memory_space<vmem>>, vector<16x64xbf16>
    tpu.vector_store %arg14[%c1, %c0_21], %16 {strides = array<i32>} : memref<18x64xbf16, #tpu.memory_space<vmem>>, vector<16x64xbf16>,
    %18 = arith.truncf %1 : vector<8x32xf32> to vector<8x32xbf16>
    %c0_22 = arith.constant 0 : index
    %c0_23 = arith.constant 0 : index
    %c0_24 = arith.constant 0 : index
    %19 = vector.load %arg4[%c0_22, %c0_23, %c0_24] : memref<2x32x64xbf16, #tpu.memory_space<vmem>>, vector<1x32x64xbf16>
    %20 = vector.shape_cast %19 : vector<1x32x64xbf16> to vector<32x64xbf16>
    %cst_25 = arith.constant dense<0.000000e+00> : vector<8x64xf32>
    %21 = tpu.matmul %18, %20, %cst_25 {dimension_numbers = #tpu.dot_dimension_numbers<[1], [0], [0], [1], [0, 0, 1, 1], [], []>} : vector<8x32xbf16>, vector<32x64xbf16>, vector<8x64xf32> -> vector<8x64xf32>
    %c0_26 = arith.constant 0 : index
    %c0_27 = arith.constant 0 : index
    %22 = vector.load %arg5[%c0_26, %c0_27] : memref<1x64xf32, #tpu.memory_space<vmem>>, vector<1x64xf32>
    %23 = vector.broadcast %22 : vector<1x64xf32> to vector<8x64xf32>
    %24 = arith.addf %21, %23 : vector<8x64xf32>
    %c1_28 = arith.constant 1 : index
    %c0_29 = arith.constant 0 : index
    %c0_30 = arith.constant 0 : index
    %25 = vector.load %arg4[%c1_28, %c0_29, %c0_30] : memref<2x32x64xbf16, #tpu.memory_space<vmem>>, vector<1x32x64xbf16>
    %26 = vector.shape_cast %25 : vector<1x32x64xbf16> to vector<32x64xbf16>
    %cst_31 = arith.constant dense<0.000000e+00> : vector<8x64xf32>
    %27 = tpu.matmul %18, %26, %cst_31 {dimension_numbers = #tpu.dot_dimension_numbers<[1], [0], [0], [1], [0, 0, 1, 1], [], []>} : vector<8x32xbf16>, vector<32x64xbf16>, vector<8x64xf32> -> vector<8x64xf32>
    %c0_32 = arith.constant 0 : index
    %c0_33 = arith.constant 0 : index
    %28 = vector.load %arg5[%c0_32, %c0_33] : memref<1x64xf32, #tpu.memory_space<vmem>>, vector<1x64xf32>
    %29 = vector.broadcast %28 : vector<1x64xf32> to vector<8x64xf32>
    %30 = arith.addf %27, %29 : vector<8x64xf32>
    %31 = vector.shape_cast %24 : vector<8x64xf32> to vector<8x1x64xf32>
    %32 = vector.shape_cast %30 : vector<8x64xf32> to vector<8x1x64xf32>
    %33 = tpu.concatenate %31, %32 in 1 : vector<8x1x64xf32>, vector<8x1x64xf32> -> vector<8x2x64xf32>
    %34 = vector.shape_cast %33 : vector<8x2x64xf32> to vector<16x64xf32>
    %35 = arith.truncf %34 : vector<16x64xf32> to vector<16x64xbf16>
    %c1_34 = arith.constant 1 : index
    %c0_35 = arith.constant 0 : index
    %36 = vector.load %arg15[%c1_34, %c0_35] : memref<18x64xbf16, #tpu.memory_space<vmem>>, vector<16x64xbf16>
    tpu.vector_store %arg15[%c1_34, %c0_35], %35 {strides = array<i32>} : memref<18x64xbf16, #tpu.memory_space<vmem>>, vector<16x64xbf16>,
    %c0_36 = arith.constant 0 : index
    %c0_37 = arith.constant 0 : index
    %37 = vector.load %arg14[%c0_36, %c0_37] : memref<18x64xbf16, #tpu.memory_space<vmem>>, vector<16x64xbf16>
    %c0_38 = arith.constant 0 : index
    %c0_39 = arith.constant 0 : index
    %c0_40 = arith.constant 0 : index
    %38 = vector.load %arg6[%c0_38, %c0_39, %c0_40] : memref<3x64x64xbf16, #tpu.memory_space<vmem>>, vector<1x64x64xbf16>
    %39 = vector.shape_cast %38 : vector<1x64x64xbf16> to vector<64x64xbf16>
    %cst_41 = arith.constant dense<0.000000e+00> : vector<16x64xf32>
    %40 = tpu.matmul %37, %39, %cst_41 {dimension_numbers = #tpu.dot_dimension_numbers<[1], [0], [0], [1], [0, 0, 1, 1], [], []>} : vector<16x64xbf16>, vector<64x64xbf16>, vector<16x64xf32> -> vector<16x64xf32>
    %c0_42 = arith.constant 0 : index
    %c0_43 = arith.constant 0 : index
    %41 = vector.load %arg15[%c0_42, %c0_43] : memref<18x64xbf16, #tpu.memory_space<vmem>>, vector<16x64xbf16>
    %c0_44 = arith.constant 0 : index
    %c0_45 = arith.constant 0 : index
    %c0_46 = arith.constant 0 : index
    %42 = vector.load %arg7[%c0_44, %c0_45, %c0_46] : memref<3x64x64xbf16, #tpu.memory_space<vmem>>, vector<1x64x64xbf16>
    %43 = vector.shape_cast %42 : vector<1x64x64xbf16> to vector<64x64xbf16>
    %cst_47 = arith.constant dense<0.000000e+00> : vector<16x64xf32>
    %44 = tpu.matmul %41, %43, %cst_47 {dimension_numbers = #tpu.dot_dimension_numbers<[1], [0], [0], [1], [0, 0, 1, 1], [], []>} : vector<16x64xbf16>, vector<64x64xbf16>, vector<16x64xf32> -> vector<16x64xf32>
    %45 = arith.addf %40, %44 : vector<16x64xf32>
    %c1_48 = arith.constant 1 : index
    %c0_49 = arith.constant 0 : index
    %46 = vector.load %arg14[%c1_48, %c0_49] : memref<18x64xbf16, #tpu.memory_space<vmem>>, vector<16x64xbf16>
    %c1_50 = arith.constant 1 : index
    %c0_51 = arith.constant 0 : index
    %c0_52 = arith.constant 0 : index
    %47 = vector.load %arg6[%c1_50, %c0_51, %c0_52] : memref<3x64x64xbf16, #tpu.memory_space<vmem>>, vector<1x64x64xbf16>
    %48 = vector.shape_cast %47 : vector<1x64x64xbf16> to vector<64x64xbf16>
    %cst_53 = arith.constant dense<0.000000e+00> : vector<16x64xf32>
    %49 = tpu.matmul %46, %48, %cst_53 {dimension_numbers = #tpu.dot_dimension_numbers<[1], [0], [0], [1], [0, 0, 1, 1], [], []>} : vector<16x64xbf16>, vector<64x64xbf16>, vector<16x64xf32> -> vector<16x64xf32>
    %c1_54 = arith.constant 1 : index
    %c0_55 = arith.constant 0 : index
    %50 = vector.load %arg15[%c1_54, %c0_55] : memref<18x64xbf16, #tpu.memory_space<vmem>>, vector<16x64xbf16>
    %c1_56 = arith.constant 1 : index
    %c0_57 = arith.constant 0 : index
    %c0_58 = arith.constant 0 : index
    %51 = vector.load %arg7[%c1_56, %c0_57, %c0_58] : memref<3x64x64xbf16, #tpu.memory_space<vmem>>, vector<1x64x64xbf16>
    %52 = vector.shape_cast %51 : vector<1x64x64xbf16> to vector<64x64xbf16>
    %cst_59 = arith.constant dense<0.000000e+00> : vector<16x64xf32>
    %53 = tpu.matmul %50, %52, %cst_59 {dimension_numbers = #tpu.dot_dimension_numbers<[1], [0], [0], [1], [0, 0, 1, 1], [], []>} : vector<16x64xbf16>, vector<64x64xbf16>, vector<16x64xf32> -> vector<16x64xf32>
    %54 = arith.addf %49, %53 : vector<16x64xf32>
    %55 = arith.addf %45, %54 : vector<16x64xf32>
    %c2 = arith.constant 2 : index
    %c0_60 = arith.constant 0 : index
    %56 = vector.load %arg14[%c2, %c0_60] : memref<18x64xbf16, #tpu.memory_space<vmem>>, vector<16x64xbf16>
    %c2_61 = arith.constant 2 : index
    %c0_62 = arith.constant 0 : index
    %c0_63 = arith.constant 0 : index
    %57 = vector.load %arg6[%c2_61, %c0_62, %c0_63] : memref<3x64x64xbf16, #tpu.memory_space<vmem>>, vector<1x64x64xbf16>
    %58 = vector.shape_cast %57 : vector<1x64x64xbf16> to vector<64x64xbf16>
    %cst_64 = arith.constant dense<0.000000e+00> : vector<16x64xf32>
    %59 = tpu.matmul %56, %58, %cst_64 {dimension_numbers = #tpu.dot_dimension_numbers<[1], [0], [0], [1], [0, 0, 1, 1], [], []>} : vector<16x64xbf16>, vector<64x64xbf16>, vector<16x64xf32> -> vector<16x64xf32>
    %c2_65 = arith.constant 2 : index
    %c0_66 = arith.constant 0 : index
    %60 = vector.load %arg15[%c2_65, %c0_66] : memref<18x64xbf16, #tpu.memory_space<vmem>>, vector<16x64xbf16>
    %c2_67 = arith.constant 2 : index
    %c0_68 = arith.constant 0 : index
    %c0_69 = arith.constant 0 : index
    %61 = vector.load %arg7[%c2_67, %c0_68, %c0_69] : memref<3x64x64xbf16, #tpu.memory_space<vmem>>, vector<1x64x64xbf16>
    %62 = vector.shape_cast %61 : vector<1x64x64xbf16> to vector<64x64xbf16>
    %cst_70 = arith.constant dense<0.000000e+00> : vector<16x64xf32>
    %63 = tpu.matmul %60, %62, %cst_70 {dimension_numbers = #tpu.dot_dimension_numbers<[1], [0], [0], [1], [0, 0, 1, 1], [], []>} : vector<16x64xbf16>, vector<64x64xbf16>, vector<16x64xf32> -> vector<16x64xf32>
    %64 = arith.addf %59, %63 : vector<16x64xf32>
    %65 = arith.addf %55, %64 : vector<16x64xf32>
    %c0_71 = arith.constant 0 : index
    %c0_72 = arith.constant 0 : index
    %66 = vector.load %arg8[%c0_71, %c0_72] : memref<1x64xf32, #tpu.memory_space<vmem>>, vector<1x64xf32>
    %67 = vector.broadcast %66 : vector<1x64xf32> to vector<16x64xf32>
    %68 = arith.mulf %65, %67 : vector<16x64xf32>
    %c0_73 = arith.constant 0 : index
    %c0_74 = arith.constant 0 : index
    %69 = vector.load %arg9[%c0_73, %c0_74] : memref<1x64xf32, #tpu.memory_space<vmem>>, vector<1x64xf32>
    %70 = vector.broadcast %69 : vector<1x64xf32> to vector<16x64xf32>
    %71 = arith.addf %68, %70 : vector<16x64xf32>
    %cst_75 = arith.constant 0.000000e+00 : f32
    %72 = vector.broadcast %cst_75 : f32 to vector<16x64xf32>
    %73 = arith.maximumf %71, %72 : vector<16x64xf32>
    %74 = arith.truncf %73 : vector<16x64xf32> to vector<16x64xbf16>
    %c1_76 = arith.constant 1 : index
    %c0_77 = arith.constant 0 : index
    %75 = vector.load %arg16[%c1_76, %c0_77] : memref<18x64xbf16, #tpu.memory_space<vmem>>, vector<16x64xbf16>
    tpu.vector_store %arg16[%c1_76, %c0_77], %74 {strides = array<i32>} : memref<18x64xbf16, #tpu.memory_space<vmem>>, vector<16x64xbf16>,
    %c0_78 = arith.constant 0 : index
    %c0_79 = arith.constant 0 : index
    %76 = vector.load %arg16[%c0_78, %c0_79] : memref<18x64xbf16, #tpu.memory_space<vmem>>, vector<16x64xbf16>
    %c0_80 = arith.constant 0 : index
    %c0_81 = arith.constant 0 : index
    %c0_82 = arith.constant 0 : index
    %77 = vector.load %arg10[%c0_80, %c0_81, %c0_82] : memref<3x64x64xbf16, #tpu.memory_space<vmem>>, vector<1x64x64xbf16>
    %78 = vector.shape_cast %77 : vector<1x64x64xbf16> to vector<64x64xbf16>
    %cst_83 = arith.constant dense<0.000000e+00> : vector<16x64xf32>
    %79 = tpu.matmul %76, %78, %cst_83 {dimension_numbers = #tpu.dot_dimension_numbers<[1], [0], [0], [1], [0, 0, 1, 1], [], []>} : vector<16x64xbf16>, vector<64x64xbf16>, vector<16x64xf32> -> vector<16x64xf32>
    %c1_84 = arith.constant 1 : index
    %c0_85 = arith.constant 0 : index
    %80 = vector.load %arg16[%c1_84, %c0_85] : memref<18x64xbf16, #tpu.memory_space<vmem>>, vector<16x64xbf16>
    %c1_86 = arith.constant 1 : index
    %c0_87 = arith.constant 0 : index
    %c0_88 = arith.constant 0 : index
    %81 = vector.load %arg10[%c1_86, %c0_87, %c0_88] : memref<3x64x64xbf16, #tpu.memory_space<vmem>>, vector<1x64x64xbf16>
    %82 = vector.shape_cast %81 : vector<1x64x64xbf16> to vector<64x64xbf16>
    %cst_89 = arith.constant dense<0.000000e+00> : vector<16x64xf32>
    %83 = tpu.matmul %80, %82, %cst_89 {dimension_numbers = #tpu.dot_dimension_numbers<[1], [0], [0], [1], [0, 0, 1, 1], [], []>} : vector<16x64xbf16>, vector<64x64xbf16>, vector<16x64xf32> -> vector<16x64xf32>
    %84 = arith.addf %79, %83 : vector<16x64xf32>
    %c2_90 = arith.constant 2 : index
    %c0_91 = arith.constant 0 : index
    %85 = vector.load %arg16[%c2_90, %c0_91] : memref<18x64xbf16, #tpu.memory_space<vmem>>, vector<16x64xbf16>
    %c2_92 = arith.constant 2 : index
    %c0_93 = arith.constant 0 : index
    %c0_94 = arith.constant 0 : index
    %86 = vector.load %arg10[%c2_92, %c0_93, %c0_94] : memref<3x64x64xbf16, #tpu.memory_space<vmem>>, vector<1x64x64xbf16>
    %87 = vector.shape_cast %86 : vector<1x64x64xbf16> to vector<64x64xbf16>
    %cst_95 = arith.constant dense<0.000000e+00> : vector<16x64xf32>
    %88 = tpu.matmul %85, %87, %cst_95 {dimension_numbers = #tpu.dot_dimension_numbers<[1], [0], [0], [1], [0, 0, 1, 1], [], []>} : vector<16x64xbf16>, vector<64x64xbf16>, vector<16x64xf32> -> vector<16x64xf32>
    %89 = arith.addf %84, %88 : vector<16x64xf32>
    %c0_96 = arith.constant 0 : index
    %c0_97 = arith.constant 0 : index
    %90 = vector.load %arg11[%c0_96, %c0_97] : memref<1x64xf32, #tpu.memory_space<vmem>>, vector<1x64xf32>
    %91 = vector.broadcast %90 : vector<1x64xf32> to vector<16x64xf32>
    %92 = arith.mulf %89, %91 : vector<16x64xf32>
    %c0_98 = arith.constant 0 : index
    %c0_99 = arith.constant 0 : index
    %93 = vector.load %arg12[%c0_98, %c0_99] : memref<1x64xf32, #tpu.memory_space<vmem>>, vector<1x64xf32>
    %94 = vector.broadcast %93 : vector<1x64xf32> to vector<16x64xf32>
    %95 = arith.addf %92, %94 : vector<16x64xf32>
    %cst_100 = arith.constant 0.000000e+00 : f32
    %96 = vector.broadcast %cst_100 : f32 to vector<16x64xf32>
    %97 = arith.maximumf %95, %96 : vector<16x64xf32>
    %c0_101 = arith.constant 0 : index
    %c0_102 = arith.constant 0 : index
    %c0_103 = arith.constant 0 : index
    %98 = vector.load %arg13[%c0_101, %c0_102, %c0_103] : memref<1x16x64xf32, #tpu.memory_space<vmem>>, vector<1x16x64xf32>
    %99 = vector.shape_cast %98 : vector<1x16x64xf32> to vector<16x64xf32>
    %100 = vector.shape_cast %97 : vector<16x64xf32> to vector<1x16x64xf32>
    tpu.vector_store %arg13[%c0_101, %c0_102, %c0_103], %100 {strides = array<i32>} : memref<1x16x64xf32, #tpu.memory_space<vmem>>, vector<1x16x64xf32>,
    return
  }
  func.func @transform_0(%arg0: i32) -> (i32, i32, i32) {
    %c0_i32 = arith.constant 0 : i32
    %c0_i32_0 = arith.constant 0 : i32
    %c0_i32_1 = arith.constant 0 : i32
    return %arg0, %c0_i32, %c0_i32_0 : i32, i32, i32
  }
  func.func @transform_1(%arg0: i32) -> (i32, i32, i32) {
    %c2_i32 = arith.constant 2 : i32
    %0 = arith.addi %arg0, %c2_i32 : i32
    %c0_i32 = arith.constant 0 : i32
    %c0_i32_0 = arith.constant 0 : i32
    %c0_i32_1 = arith.constant 0 : i32
    return %0, %c0_i32, %c0_i32_0 : i32, i32, i32
  }
  func.func @transform_2(%arg0: i32) -> (i32, i32, i32) {
    %c0_i32 = arith.constant 0 : i32
    %0 = arith.addi %arg0, %c0_i32 : i32
    %c0_i32_0 = arith.constant 0 : i32
    %c0_i32_1 = arith.constant 0 : i32
    %c0_i32_2 = arith.constant 0 : i32
    return %0, %c0_i32_0, %c0_i32_1 : i32, i32, i32
  }
  func.func @transform_3(%arg0: i32) -> (i32, i32, i32) {
    %c0_i32 = arith.constant 0 : i32
    %c0_i32_0 = arith.constant 0 : i32
    %c0_i32_1 = arith.constant 0 : i32
    %c0_i32_2 = arith.constant 0 : i32
    return %c0_i32, %c0_i32_0, %c0_i32_1 : i32, i32, i32
  }
  func.func @transform_4(%arg0: i32) -> (i32, i32) {
    %c0_i32 = arith.constant 0 : i32
    %c0_i32_0 = arith.constant 0 : i32
    %c0_i32_1 = arith.constant 0 : i32
    return %c0_i32, %c0_i32_0 : i32, i32
  }
  func.func @transform_5(%arg0: i32) -> (i32, i32, i32) {
    %c0_i32 = arith.constant 0 : i32
    %c0_i32_0 = arith.constant 0 : i32
    %c0_i32_1 = arith.constant 0 : i32
    %c0_i32_2 = arith.constant 0 : i32
    return %c0_i32, %c0_i32_0, %c0_i32_1 : i32, i32, i32
  }
  func.func @transform_6(%arg0: i32) -> (i32, i32, i32) {
    %c0_i32 = arith.constant 0 : i32
    %c0_i32_0 = arith.constant 0 : i32
    %c0_i32_1 = arith.constant 0 : i32
    %c0_i32_2 = arith.constant 0 : i32
    return %c0_i32, %c0_i32_0, %c0_i32_1 : i32, i32, i32
  }
  func.func @transform_7(%arg0: i32) -> (i32, i32) {
    %c0_i32 = arith.constant 0 : i32
    %c0_i32_0 = arith.constant 0 : i32
    %c0_i32_1 = arith.constant 0 : i32
    return %c0_i32, %c0_i32_0 : i32, i32
  }
  func.func @transform_8(%arg0: i32) -> (i32, i32) {
    %c0_i32 = arith.constant 0 : i32
    %c0_i32_0 = arith.constant 0 : i32
    %c0_i32_1 = arith.constant 0 : i32
    return %c0_i32, %c0_i32_0 : i32, i32
  }
  func.func @transform_9(%arg0: i32) -> (i32, i32, i32) {
    %c0_i32 = arith.constant 0 : i32
    %c0_i32_0 = arith.constant 0 : i32
    %c0_i32_1 = arith.constant 0 : i32
    %c0_i32_2 = arith.constant 0 : i32
    return %c0_i32, %c0_i32_0, %c0_i32_1 : i32, i32, i32
  }
  func.func @transform_10(%arg0: i32) -> (i32, i32) {
    %c0_i32 = arith.constant 0 : i32
    %c0_i32_0 = arith.constant 0 : i32
    %c0_i32_1 = arith.constant 0 : i32
    return %c0_i32, %c0_i32_0 : i32, i32
  }
  func.func @transform_11(%arg0: i32) -> (i32, i32) {
    %c0_i32 = arith.constant 0 : i32
    %c0_i32_0 = arith.constant 0 : i32
    %c0_i32_1 = arith.constant 0 : i32
    return %c0_i32, %c0_i32_0 : i32, i32
  }
  func.func @transform_12(%arg0: i32) -> (i32, i32, i32) {
    %c0_i32 = arith.constant 0 : i32
    %c0_i32_0 = arith.constant 0 : i32
    %c0_i32_1 = arith.constant 0 : i32
    return %arg0, %c0_i32, %c0_i32_0 : i32, i32, i32
  }
}

module attributes {stable_mosaic.version = 11 : i64} {
  func.func @_head_kernel(%arg0: i32, %arg1: memref<1x16x64xf32, #tpu.memory_space<vmem>>, %arg2: memref<64x32xf32, #tpu.memory_space<vmem>>, %arg3: memref<1x32xf32, #tpu.memory_space<vmem>>, %arg4: memref<1x16x32xf32, #tpu.memory_space<vmem>>) attributes {dimension_semantics = [#tpu.dimension_semantics<parallel>], iteration_bounds = array<i64: 2>, scalar_prefetch = 0 : i64, scratch_operands = 0 : i64, tpu.core_type = #tpu.core_type<tc>, window_params = [{transform_indices = @transform_0, window_bounds = array<i64: 1, 16, 64>}, {pipeline_mode = #tpu.pipeline_mode<synchronous>, transform_indices = @transform_1, window_bounds = array<i64: 64, 32>}, {pipeline_mode = #tpu.pipeline_mode<synchronous>, transform_indices = @transform_2, window_bounds = array<i64: 1, 32>}, {transform_indices = @transform_3, window_bounds = array<i64: 1, 16, 32>}]} {
    %c0 = arith.constant 0 : index
    %c0_0 = arith.constant 0 : index
    %c0_1 = arith.constant 0 : index
    %0 = vector.load %arg1[%c0, %c0_0, %c0_1] : memref<1x16x64xf32, #tpu.memory_space<vmem>>, vector<1x16x64xf32>
    %1 = vector.shape_cast %0 : vector<1x16x64xf32> to vector<16x64xf32>
    %c0_2 = arith.constant 0 : index
    %c0_3 = arith.constant 0 : index
    %2 = vector.load %arg2[%c0_2, %c0_3] : memref<64x32xf32, #tpu.memory_space<vmem>>, vector<64x32xf32>
    %cst = arith.constant dense<0.000000e+00> : vector<16x32xf32>
    %3 = tpu.matmul %1, %2, %cst {dimension_numbers = #tpu.dot_dimension_numbers<[1], [0], [0], [1], [0, 0, 1, 1], [], []>} : vector<16x64xf32>, vector<64x32xf32>, vector<16x32xf32> -> vector<16x32xf32>
    %c0_4 = arith.constant 0 : index
    %c0_5 = arith.constant 0 : index
    %4 = vector.load %arg3[%c0_4, %c0_5] : memref<1x32xf32, #tpu.memory_space<vmem>>, vector<1x32xf32>
    %5 = vector.broadcast %4 : vector<1x32xf32> to vector<16x32xf32>
    %6 = arith.addf %3, %5 : vector<16x32xf32>
    %c0_6 = arith.constant 0 : index
    %c0_7 = arith.constant 0 : index
    %c0_8 = arith.constant 0 : index
    %7 = vector.load %arg4[%c0_6, %c0_7, %c0_8] : memref<1x16x32xf32, #tpu.memory_space<vmem>>, vector<1x16x32xf32>
    %8 = vector.shape_cast %7 : vector<1x16x32xf32> to vector<16x32xf32>
    %9 = vector.shape_cast %6 : vector<16x32xf32> to vector<1x16x32xf32>
    tpu.vector_store %arg4[%c0_6, %c0_7, %c0_8], %9 {strides = array<i32>} : memref<1x16x32xf32, #tpu.memory_space<vmem>>, vector<1x16x32xf32>,
    return
  }
  func.func @transform_0(%arg0: i32) -> (i32, i32, i32) {
    %c0_i32 = arith.constant 0 : i32
    %c0_i32_0 = arith.constant 0 : i32
    %c0_i32_1 = arith.constant 0 : i32
    return %arg0, %c0_i32, %c0_i32_0 : i32, i32, i32
  }
  func.func @transform_1(%arg0: i32) -> (i32, i32) {
    %c0_i32 = arith.constant 0 : i32
    %c0_i32_0 = arith.constant 0 : i32
    %c0_i32_1 = arith.constant 0 : i32
    return %c0_i32, %c0_i32_0 : i32, i32
  }
  func.func @transform_2(%arg0: i32) -> (i32, i32) {
    %c0_i32 = arith.constant 0 : i32
    %c0_i32_0 = arith.constant 0 : i32
    %c0_i32_1 = arith.constant 0 : i32
    return %c0_i32, %c0_i32_0 : i32, i32
  }
  func.func @transform_3(%arg0: i32) -> (i32, i32, i32) {
    %c0_i32 = arith.constant 0 : i32
    %c0_i32_0 = arith.constant 0 : i32
    %c0_i32_1 = arith.constant 0 : i32
    return %arg0, %c0_i32, %c0_i32_0 : i32, i32, i32
  }
}

module attributes {stable_mosaic.version = 11 : i64} {
  func.func @kernel(%arg0: i32, %arg1: memref<1x4x32xf32, #tpu.memory_space<vmem>>, %arg2: memref<1x8x64xf32, #tpu.memory_space<vmem>>, %arg3: memref<2x32x64xbf16, #tpu.memory_space<vmem>>, %arg4: memref<1x64xf32, #tpu.memory_space<vmem>>, %arg5: memref<3x64x32xbf16, #tpu.memory_space<vmem>>, %arg6: memref<3x64x32xbf16, #tpu.memory_space<vmem>>, %arg7: memref<1x32xf32, #tpu.memory_space<vmem>>, %arg8: memref<1x32xf32, #tpu.memory_space<vmem>>, %arg9: memref<3x32x32xbf16, #tpu.memory_space<vmem>>, %arg10: memref<1x32xf32, #tpu.memory_space<vmem>>, %arg11: memref<1x32xf32, #tpu.memory_space<vmem>>, %arg12: memref<1x8x32xf32, #tpu.memory_space<vmem>>, %arg13: memref<10x64xbf16, #tpu.memory_space<vmem>>, %arg14: memref<10x64xbf16, #tpu.memory_space<vmem>>, %arg15: memref<10x32xbf16, #tpu.memory_space<vmem>>) attributes {dimension_semantics = [#tpu.dimension_semantics<parallel>], iteration_bounds = array<i64: 4>, scalar_prefetch = 0 : i64, scratch_operands = 3 : i64, tpu.core_type = #tpu.core_type<tc>, window_params = [{transform_indices = @transform_0, window_bounds = array<i64: 1, 4, 32>}, {transform_indices = @transform_1, window_bounds = array<i64: 1, 8, 64>}, {pipeline_mode = #tpu.pipeline_mode<synchronous>, transform_indices = @transform_2, window_bounds = array<i64: 2, 32, 64>}, {pipeline_mode = #tpu.pipeline_mode<synchronous>, transform_indices = @transform_3, window_bounds = array<i64: 1, 64>}, {pipeline_mode = #tpu.pipeline_mode<synchronous>, transform_indices = @transform_4, window_bounds = array<i64: 3, 64, 32>}, {pipeline_mode = #tpu.pipeline_mode<synchronous>, transform_indices = @transform_5, window_bounds = array<i64: 3, 64, 32>}, {pipeline_mode = #tpu.pipeline_mode<synchronous>, transform_indices = @transform_6, window_bounds = array<i64: 1, 32>}, {pipeline_mode = #tpu.pipeline_mode<synchronous>, transform_indices = @transform_7, window_bounds = array<i64: 1, 32>}, {pipeline_mode = #tpu.pipeline_mode<synchronous>, transform_indices = @transform_8, window_bounds = array<i64: 3, 32, 32>}, {pipeline_mode = #tpu.pipeline_mode<synchronous>, transform_indices = @transform_9, window_bounds = array<i64: 1, 32>}, {pipeline_mode = #tpu.pipeline_mode<synchronous>, transform_indices = @transform_10, window_bounds = array<i64: 1, 32>}, {transform_indices = @transform_11, window_bounds = array<i64: 1, 8, 32>}]} {
    %c0 = arith.constant 0 : index
    %c0_0 = arith.constant 0 : index
    %c0_1 = arith.constant 0 : index
    %0 = vector.load %arg1[%c0, %c0_0, %c0_1] : memref<1x4x32xf32, #tpu.memory_space<vmem>>, vector<1x4x32xf32>
    %1 = vector.shape_cast %0 : vector<1x4x32xf32> to vector<4x32xf32>
    %c0_2 = arith.constant 0 : index
    %c0_3 = arith.constant 0 : index
    %c0_4 = arith.constant 0 : index
    %2 = vector.load %arg2[%c0_2, %c0_3, %c0_4] : memref<1x8x64xf32, #tpu.memory_space<vmem>>, vector<1x8x64xf32>
    %3 = vector.shape_cast %2 : vector<1x8x64xf32> to vector<8x64xf32>
    %cst = arith.constant 0.000000e+00 : bf16
    %4 = vector.broadcast %cst : bf16 to vector<1x64xbf16>
    %c0_5 = arith.constant 0 : index
    %c0_6 = arith.constant 0 : index
    %5 = vector.load %arg13[%c0_5, %c0_6] : memref<10x64xbf16, #tpu.memory_space<vmem>>, vector<1x64xbf16>
    tpu.vector_store %arg13[%c0_5, %c0_6], %4 {strides = array<i32>} : memref<10x64xbf16, #tpu.memory_space<vmem>>, vector<1x64xbf16>,
    %c9 = arith.constant 9 : index
    %c0_7 = arith.constant 0 : index
    %6 = vector.load %arg13[%c9, %c0_7] : memref<10x64xbf16, #tpu.memory_space<vmem>>, vector<1x64xbf16>
    tpu.vector_store %arg13[%c9, %c0_7], %4 {strides = array<i32>} : memref<10x64xbf16, #tpu.memory_space<vmem>>, vector<1x64xbf16>,
    %cst_8 = arith.constant 0.000000e+00 : bf16
    %7 = vector.broadcast %cst_8 : bf16 to vector<1x64xbf16>
    %c0_9 = arith.constant 0 : index
    %c0_10 = arith.constant 0 : index
    %8 = vector.load %arg14[%c0_9, %c0_10] : memref<10x64xbf16, #tpu.memory_space<vmem>>, vector<1x64xbf16>
    tpu.vector_store %arg14[%c0_9, %c0_10], %7 {strides = array<i32>} : memref<10x64xbf16, #tpu.memory_space<vmem>>, vector<1x64xbf16>,
    %c9_11 = arith.constant 9 : index
    %c0_12 = arith.constant 0 : index
    %9 = vector.load %arg14[%c9_11, %c0_12] : memref<10x64xbf16, #tpu.memory_space<vmem>>, vector<1x64xbf16>
    tpu.vector_store %arg14[%c9_11, %c0_12], %7 {strides = array<i32>} : memref<10x64xbf16, #tpu.memory_space<vmem>>, vector<1x64xbf16>,
    %cst_13 = arith.constant 0.000000e+00 : bf16
    %10 = vector.broadcast %cst_13 : bf16 to vector<1x32xbf16>
    %c0_14 = arith.constant 0 : index
    %c0_15 = arith.constant 0 : index
    %11 = vector.load %arg15[%c0_14, %c0_15] : memref<10x32xbf16, #tpu.memory_space<vmem>>, vector<1x32xbf16>
    tpu.vector_store %arg15[%c0_14, %c0_15], %10 {strides = array<i32>} : memref<10x32xbf16, #tpu.memory_space<vmem>>, vector<1x32xbf16>,
    %c9_16 = arith.constant 9 : index
    %c0_17 = arith.constant 0 : index
    %12 = vector.load %arg15[%c9_16, %c0_17] : memref<10x32xbf16, #tpu.memory_space<vmem>>, vector<1x32xbf16>
    tpu.vector_store %arg15[%c9_16, %c0_17], %10 {strides = array<i32>} : memref<10x32xbf16, #tpu.memory_space<vmem>>, vector<1x32xbf16>,
    %13 = arith.truncf %3 : vector<8x64xf32> to vector<8x64xbf16>
    %c1 = arith.constant 1 : index
    %c0_18 = arith.constant 0 : index
    %14 = vector.load %arg13[%c1, %c0_18] : memref<10x64xbf16, #tpu.memory_space<vmem>>, vector<8x64xbf16>
    tpu.vector_store %arg13[%c1, %c0_18], %13 {strides = array<i32>} : memref<10x64xbf16, #tpu.memory_space<vmem>>, vector<8x64xbf16>,
    %15 = arith.truncf %1 : vector<4x32xf32> to vector<4x32xbf16>
    %c0_19 = arith.constant 0 : index
    %c0_20 = arith.constant 0 : index
    %c0_21 = arith.constant 0 : index
    %16 = vector.load %arg3[%c0_19, %c0_20, %c0_21] : memref<2x32x64xbf16, #tpu.memory_space<vmem>>, vector<1x32x64xbf16>
    %17 = vector.shape_cast %16 : vector<1x32x64xbf16> to vector<32x64xbf16>
    %cst_22 = arith.constant dense<0.000000e+00> : vector<4x64xf32>
    %18 = tpu.matmul %15, %17, %cst_22 {dimension_numbers = #tpu.dot_dimension_numbers<[1], [0], [0], [1], [0, 0, 1, 1], [], []>} : vector<4x32xbf16>, vector<32x64xbf16>, vector<4x64xf32> -> vector<4x64xf32>
    %c0_23 = arith.constant 0 : index
    %c0_24 = arith.constant 0 : index
    %19 = vector.load %arg4[%c0_23, %c0_24] : memref<1x64xf32, #tpu.memory_space<vmem>>, vector<1x64xf32>
    %20 = vector.broadcast %19 : vector<1x64xf32> to vector<4x64xf32>
    %21 = arith.addf %18, %20 : vector<4x64xf32>
    %c1_25 = arith.constant 1 : index
    %c0_26 = arith.constant 0 : index
    %c0_27 = arith.constant 0 : index
    %22 = vector.load %arg3[%c1_25, %c0_26, %c0_27] : memref<2x32x64xbf16, #tpu.memory_space<vmem>>, vector<1x32x64xbf16>
    %23 = vector.shape_cast %22 : vector<1x32x64xbf16> to vector<32x64xbf16>
    %cst_28 = arith.constant dense<0.000000e+00> : vector<4x64xf32>
    %24 = tpu.matmul %15, %23, %cst_28 {dimension_numbers = #tpu.dot_dimension_numbers<[1], [0], [0], [1], [0, 0, 1, 1], [], []>} : vector<4x32xbf16>, vector<32x64xbf16>, vector<4x64xf32> -> vector<4x64xf32>
    %c0_29 = arith.constant 0 : index
    %c0_30 = arith.constant 0 : index
    %25 = vector.load %arg4[%c0_29, %c0_30] : memref<1x64xf32, #tpu.memory_space<vmem>>, vector<1x64xf32>
    %26 = vector.broadcast %25 : vector<1x64xf32> to vector<4x64xf32>
    %27 = arith.addf %24, %26 : vector<4x64xf32>
    %28 = vector.shape_cast %21 : vector<4x64xf32> to vector<4x1x64xf32>
    %29 = vector.shape_cast %27 : vector<4x64xf32> to vector<4x1x64xf32>
    %30 = tpu.concatenate %28, %29 in 1 : vector<4x1x64xf32>, vector<4x1x64xf32> -> vector<4x2x64xf32>
    %31 = vector.shape_cast %30 : vector<4x2x64xf32> to vector<8x64xf32>
    %32 = arith.truncf %31 : vector<8x64xf32> to vector<8x64xbf16>
    %c1_31 = arith.constant 1 : index
    %c0_32 = arith.constant 0 : index
    %33 = vector.load %arg14[%c1_31, %c0_32] : memref<10x64xbf16, #tpu.memory_space<vmem>>, vector<8x64xbf16>
    tpu.vector_store %arg14[%c1_31, %c0_32], %32 {strides = array<i32>} : memref<10x64xbf16, #tpu.memory_space<vmem>>, vector<8x64xbf16>,
    %c0_33 = arith.constant 0 : index
    %c0_34 = arith.constant 0 : index
    %34 = vector.load %arg13[%c0_33, %c0_34] : memref<10x64xbf16, #tpu.memory_space<vmem>>, vector<8x64xbf16>
    %c0_35 = arith.constant 0 : index
    %c0_36 = arith.constant 0 : index
    %c0_37 = arith.constant 0 : index
    %35 = vector.load %arg5[%c0_35, %c0_36, %c0_37] : memref<3x64x32xbf16, #tpu.memory_space<vmem>>, vector<1x64x32xbf16>
    %36 = vector.shape_cast %35 : vector<1x64x32xbf16> to vector<64x32xbf16>
    %cst_38 = arith.constant dense<0.000000e+00> : vector<8x32xf32>
    %37 = tpu.matmul %34, %36, %cst_38 {dimension_numbers = #tpu.dot_dimension_numbers<[1], [0], [0], [1], [0, 0, 1, 1], [], []>} : vector<8x64xbf16>, vector<64x32xbf16>, vector<8x32xf32> -> vector<8x32xf32>
    %c0_39 = arith.constant 0 : index
    %c0_40 = arith.constant 0 : index
    %38 = vector.load %arg14[%c0_39, %c0_40] : memref<10x64xbf16, #tpu.memory_space<vmem>>, vector<8x64xbf16>
    %c0_41 = arith.constant 0 : index
    %c0_42 = arith.constant 0 : index
    %c0_43 = arith.constant 0 : index
    %39 = vector.load %arg6[%c0_41, %c0_42, %c0_43] : memref<3x64x32xbf16, #tpu.memory_space<vmem>>, vector<1x64x32xbf16>
    %40 = vector.shape_cast %39 : vector<1x64x32xbf16> to vector<64x32xbf16>
    %cst_44 = arith.constant dense<0.000000e+00> : vector<8x32xf32>
    %41 = tpu.matmul %38, %40, %cst_44 {dimension_numbers = #tpu.dot_dimension_numbers<[1], [0], [0], [1], [0, 0, 1, 1], [], []>} : vector<8x64xbf16>, vector<64x32xbf16>, vector<8x32xf32> -> vector<8x32xf32>
    %42 = arith.addf %37, %41 : vector<8x32xf32>
    %c1_45 = arith.constant 1 : index
    %c0_46 = arith.constant 0 : index
    %43 = vector.load %arg13[%c1_45, %c0_46] : memref<10x64xbf16, #tpu.memory_space<vmem>>, vector<8x64xbf16>
    %c1_47 = arith.constant 1 : index
    %c0_48 = arith.constant 0 : index
    %c0_49 = arith.constant 0 : index
    %44 = vector.load %arg5[%c1_47, %c0_48, %c0_49] : memref<3x64x32xbf16, #tpu.memory_space<vmem>>, vector<1x64x32xbf16>
    %45 = vector.shape_cast %44 : vector<1x64x32xbf16> to vector<64x32xbf16>
    %cst_50 = arith.constant dense<0.000000e+00> : vector<8x32xf32>
    %46 = tpu.matmul %43, %45, %cst_50 {dimension_numbers = #tpu.dot_dimension_numbers<[1], [0], [0], [1], [0, 0, 1, 1], [], []>} : vector<8x64xbf16>, vector<64x32xbf16>, vector<8x32xf32> -> vector<8x32xf32>
    %c1_51 = arith.constant 1 : index
    %c0_52 = arith.constant 0 : index
    %47 = vector.load %arg14[%c1_51, %c0_52] : memref<10x64xbf16, #tpu.memory_space<vmem>>, vector<8x64xbf16>
    %c1_53 = arith.constant 1 : index
    %c0_54 = arith.constant 0 : index
    %c0_55 = arith.constant 0 : index
    %48 = vector.load %arg6[%c1_53, %c0_54, %c0_55] : memref<3x64x32xbf16, #tpu.memory_space<vmem>>, vector<1x64x32xbf16>
    %49 = vector.shape_cast %48 : vector<1x64x32xbf16> to vector<64x32xbf16>
    %cst_56 = arith.constant dense<0.000000e+00> : vector<8x32xf32>
    %50 = tpu.matmul %47, %49, %cst_56 {dimension_numbers = #tpu.dot_dimension_numbers<[1], [0], [0], [1], [0, 0, 1, 1], [], []>} : vector<8x64xbf16>, vector<64x32xbf16>, vector<8x32xf32> -> vector<8x32xf32>
    %51 = arith.addf %46, %50 : vector<8x32xf32>
    %52 = arith.addf %42, %51 : vector<8x32xf32>
    %c2 = arith.constant 2 : index
    %c0_57 = arith.constant 0 : index
    %53 = vector.load %arg13[%c2, %c0_57] : memref<10x64xbf16, #tpu.memory_space<vmem>>, vector<8x64xbf16>
    %c2_58 = arith.constant 2 : index
    %c0_59 = arith.constant 0 : index
    %c0_60 = arith.constant 0 : index
    %54 = vector.load %arg5[%c2_58, %c0_59, %c0_60] : memref<3x64x32xbf16, #tpu.memory_space<vmem>>, vector<1x64x32xbf16>
    %55 = vector.shape_cast %54 : vector<1x64x32xbf16> to vector<64x32xbf16>
    %cst_61 = arith.constant dense<0.000000e+00> : vector<8x32xf32>
    %56 = tpu.matmul %53, %55, %cst_61 {dimension_numbers = #tpu.dot_dimension_numbers<[1], [0], [0], [1], [0, 0, 1, 1], [], []>} : vector<8x64xbf16>, vector<64x32xbf16>, vector<8x32xf32> -> vector<8x32xf32>
    %c2_62 = arith.constant 2 : index
    %c0_63 = arith.constant 0 : index
    %57 = vector.load %arg14[%c2_62, %c0_63] : memref<10x64xbf16, #tpu.memory_space<vmem>>, vector<8x64xbf16>
    %c2_64 = arith.constant 2 : index
    %c0_65 = arith.constant 0 : index
    %c0_66 = arith.constant 0 : index
    %58 = vector.load %arg6[%c2_64, %c0_65, %c0_66] : memref<3x64x32xbf16, #tpu.memory_space<vmem>>, vector<1x64x32xbf16>
    %59 = vector.shape_cast %58 : vector<1x64x32xbf16> to vector<64x32xbf16>
    %cst_67 = arith.constant dense<0.000000e+00> : vector<8x32xf32>
    %60 = tpu.matmul %57, %59, %cst_67 {dimension_numbers = #tpu.dot_dimension_numbers<[1], [0], [0], [1], [0, 0, 1, 1], [], []>} : vector<8x64xbf16>, vector<64x32xbf16>, vector<8x32xf32> -> vector<8x32xf32>
    %61 = arith.addf %56, %60 : vector<8x32xf32>
    %62 = arith.addf %52, %61 : vector<8x32xf32>
    %c0_68 = arith.constant 0 : index
    %c0_69 = arith.constant 0 : index
    %63 = vector.load %arg7[%c0_68, %c0_69] : memref<1x32xf32, #tpu.memory_space<vmem>>, vector<1x32xf32>
    %64 = vector.broadcast %63 : vector<1x32xf32> to vector<8x32xf32>
    %65 = arith.mulf %62, %64 : vector<8x32xf32>
    %c0_70 = arith.constant 0 : index
    %c0_71 = arith.constant 0 : index
    %66 = vector.load %arg8[%c0_70, %c0_71] : memref<1x32xf32, #tpu.memory_space<vmem>>, vector<1x32xf32>
    %67 = vector.broadcast %66 : vector<1x32xf32> to vector<8x32xf32>
    %68 = arith.addf %65, %67 : vector<8x32xf32>
    %cst_72 = arith.constant 0.000000e+00 : f32
    %69 = vector.broadcast %cst_72 : f32 to vector<8x32xf32>
    %70 = arith.maximumf %68, %69 : vector<8x32xf32>
    %71 = arith.truncf %70 : vector<8x32xf32> to vector<8x32xbf16>
    %c1_73 = arith.constant 1 : index
    %c0_74 = arith.constant 0 : index
    %72 = vector.load %arg15[%c1_73, %c0_74] : memref<10x32xbf16, #tpu.memory_space<vmem>>, vector<8x32xbf16>
    tpu.vector_store %arg15[%c1_73, %c0_74], %71 {strides = array<i32>} : memref<10x32xbf16, #tpu.memory_space<vmem>>, vector<8x32xbf16>,
    %c0_75 = arith.constant 0 : index
    %c0_76 = arith.constant 0 : index
    %73 = vector.load %arg15[%c0_75, %c0_76] : memref<10x32xbf16, #tpu.memory_space<vmem>>, vector<8x32xbf16>
    %c0_77 = arith.constant 0 : index
    %c0_78 = arith.constant 0 : index
    %c0_79 = arith.constant 0 : index
    %74 = vector.load %arg9[%c0_77, %c0_78, %c0_79] : memref<3x32x32xbf16, #tpu.memory_space<vmem>>, vector<1x32x32xbf16>
    %75 = vector.shape_cast %74 : vector<1x32x32xbf16> to vector<32x32xbf16>
    %cst_80 = arith.constant dense<0.000000e+00> : vector<8x32xf32>
    %76 = tpu.matmul %73, %75, %cst_80 {dimension_numbers = #tpu.dot_dimension_numbers<[1], [0], [0], [1], [0, 0, 1, 1], [], []>} : vector<8x32xbf16>, vector<32x32xbf16>, vector<8x32xf32> -> vector<8x32xf32>
    %c1_81 = arith.constant 1 : index
    %c0_82 = arith.constant 0 : index
    %77 = vector.load %arg15[%c1_81, %c0_82] : memref<10x32xbf16, #tpu.memory_space<vmem>>, vector<8x32xbf16>
    %c1_83 = arith.constant 1 : index
    %c0_84 = arith.constant 0 : index
    %c0_85 = arith.constant 0 : index
    %78 = vector.load %arg9[%c1_83, %c0_84, %c0_85] : memref<3x32x32xbf16, #tpu.memory_space<vmem>>, vector<1x32x32xbf16>
    %79 = vector.shape_cast %78 : vector<1x32x32xbf16> to vector<32x32xbf16>
    %cst_86 = arith.constant dense<0.000000e+00> : vector<8x32xf32>
    %80 = tpu.matmul %77, %79, %cst_86 {dimension_numbers = #tpu.dot_dimension_numbers<[1], [0], [0], [1], [0, 0, 1, 1], [], []>} : vector<8x32xbf16>, vector<32x32xbf16>, vector<8x32xf32> -> vector<8x32xf32>
    %81 = arith.addf %76, %80 : vector<8x32xf32>
    %c2_87 = arith.constant 2 : index
    %c0_88 = arith.constant 0 : index
    %82 = vector.load %arg15[%c2_87, %c0_88] : memref<10x32xbf16, #tpu.memory_space<vmem>>, vector<8x32xbf16>
    %c2_89 = arith.constant 2 : index
    %c0_90 = arith.constant 0 : index
    %c0_91 = arith.constant 0 : index
    %83 = vector.load %arg9[%c2_89, %c0_90, %c0_91] : memref<3x32x32xbf16, #tpu.memory_space<vmem>>, vector<1x32x32xbf16>
    %84 = vector.shape_cast %83 : vector<1x32x32xbf16> to vector<32x32xbf16>
    %cst_92 = arith.constant dense<0.000000e+00> : vector<8x32xf32>
    %85 = tpu.matmul %82, %84, %cst_92 {dimension_numbers = #tpu.dot_dimension_numbers<[1], [0], [0], [1], [0, 0, 1, 1], [], []>} : vector<8x32xbf16>, vector<32x32xbf16>, vector<8x32xf32> -> vector<8x32xf32>
    %86 = arith.addf %81, %85 : vector<8x32xf32>
    %c0_93 = arith.constant 0 : index
    %c0_94 = arith.constant 0 : index
    %87 = vector.load %arg10[%c0_93, %c0_94] : memref<1x32xf32, #tpu.memory_space<vmem>>, vector<1x32xf32>
    %88 = vector.broadcast %87 : vector<1x32xf32> to vector<8x32xf32>
    %89 = arith.mulf %86, %88 : vector<8x32xf32>
    %c0_95 = arith.constant 0 : index
    %c0_96 = arith.constant 0 : index
    %90 = vector.load %arg11[%c0_95, %c0_96] : memref<1x32xf32, #tpu.memory_space<vmem>>, vector<1x32xf32>
    %91 = vector.broadcast %90 : vector<1x32xf32> to vector<8x32xf32>
    %92 = arith.addf %89, %91 : vector<8x32xf32>
    %cst_97 = arith.constant 0.000000e+00 : f32
    %93 = vector.broadcast %cst_97 : f32 to vector<8x32xf32>
    %94 = arith.maximumf %92, %93 : vector<8x32xf32>
    %c0_98 = arith.constant 0 : index
    %c0_99 = arith.constant 0 : index
    %c0_100 = arith.constant 0 : index
    %95 = vector.load %arg12[%c0_98, %c0_99, %c0_100] : memref<1x8x32xf32, #tpu.memory_space<vmem>>, vector<1x8x32xf32>
    %96 = vector.shape_cast %95 : vector<1x8x32xf32> to vector<8x32xf32>
    %97 = vector.shape_cast %94 : vector<8x32xf32> to vector<1x8x32xf32>
    tpu.vector_store %arg12[%c0_98, %c0_99, %c0_100], %97 {strides = array<i32>} : memref<1x8x32xf32, #tpu.memory_space<vmem>>, vector<1x8x32xf32>,
    return
  }
  func.func @transform_0(%arg0: i32) -> (i32, i32, i32) {
    %c0_i32 = arith.constant 0 : i32
    %c0_i32_0 = arith.constant 0 : i32
    %c0_i32_1 = arith.constant 0 : i32
    return %arg0, %c0_i32, %c0_i32_0 : i32, i32, i32
  }
  func.func @transform_1(%arg0: i32) -> (i32, i32, i32) {
    %c0_i32 = arith.constant 0 : i32
    %c0_i32_0 = arith.constant 0 : i32
    %c0_i32_1 = arith.constant 0 : i32
    return %arg0, %c0_i32, %c0_i32_0 : i32, i32, i32
  }
  func.func @transform_2(%arg0: i32) -> (i32, i32, i32) {
    %c0_i32 = arith.constant 0 : i32
    %c0_i32_0 = arith.constant 0 : i32
    %c0_i32_1 = arith.constant 0 : i32
    %c0_i32_2 = arith.constant 0 : i32
    return %c0_i32, %c0_i32_0, %c0_i32_1 : i32, i32, i32
  }
  func.func @transform_3(%arg0: i32) -> (i32, i32) {
    %c0_i32 = arith.constant 0 : i32
    %c0_i32_0 = arith.constant 0 : i32
    %c0_i32_1 = arith.constant 0 : i32
    return %c0_i32, %c0_i32_0 : i32, i32
  }
  func.func @transform_4(%arg0: i32) -> (i32, i32, i32) {
    %c0_i32 = arith.constant 0 : i32
    %c0_i32_0 = arith.constant 0 : i32
    %c0_i32_1 = arith.constant 0 : i32
    %c0_i32_2 = arith.constant 0 : i32
    return %c0_i32, %c0_i32_0, %c0_i32_1 : i32, i32, i32
  }
  func.func @transform_5(%arg0: i32) -> (i32, i32, i32) {
    %c0_i32 = arith.constant 0 : i32
    %c0_i32_0 = arith.constant 0 : i32
    %c0_i32_1 = arith.constant 0 : i32
    %c0_i32_2 = arith.constant 0 : i32
    return %c0_i32, %c0_i32_0, %c0_i32_1 : i32, i32, i32
  }
  func.func @transform_6(%arg0: i32) -> (i32, i32) {
    %c0_i32 = arith.constant 0 : i32
    %c0_i32_0 = arith.constant 0 : i32
    %c0_i32_1 = arith.constant 0 : i32
    return %c0_i32, %c0_i32_0 : i32, i32
  }
  func.func @transform_7(%arg0: i32) -> (i32, i32) {
    %c0_i32 = arith.constant 0 : i32
    %c0_i32_0 = arith.constant 0 : i32
    %c0_i32_1 = arith.constant 0 : i32
    return %c0_i32, %c0_i32_0 : i32, i32
  }
  func.func @transform_8(%arg0: i32) -> (i32, i32, i32) {
    %c0_i32 = arith.constant 0 : i32
    %c0_i32_0 = arith.constant 0 : i32
    %c0_i32_1 = arith.constant 0 : i32
    %c0_i32_2 = arith.constant 0 : i32
    return %c0_i32, %c0_i32_0, %c0_i32_1 : i32, i32, i32
  }
  func.func @transform_9(%arg0: i32) -> (i32, i32) {
    %c0_i32 = arith.constant 0 : i32
    %c0_i32_0 = arith.constant 0 : i32
    %c0_i32_1 = arith.constant 0 : i32
    return %c0_i32, %c0_i32_0 : i32, i32
  }
  func.func @transform_10(%arg0: i32) -> (i32, i32) {
    %c0_i32 = arith.constant 0 : i32
    %c0_i32_0 = arith.constant 0 : i32
    %c0_i32_1 = arith.constant 0 : i32
    return %c0_i32, %c0_i32_0 : i32, i32
  }
  func.func @transform_11(%arg0: i32) -> (i32, i32, i32) {
    %c0_i32 = arith.constant 0 : i32
    %c0_i32_0 = arith.constant 0 : i32
    %c0_i32_1 = arith.constant 0 : i32
    return %arg0, %c0_i32, %c0_i32_0 : i32, i32, i32
  }
}

module attributes {stable_mosaic.version = 11 : i64} {
  func.func @kernel(%arg0: i32, %arg1: memref<1x8x32xf32, #tpu.memory_space<vmem>>, %arg2: memref<1x16x64xf32, #tpu.memory_space<vmem>>, %arg3: memref<2x32x64xbf16, #tpu.memory_space<vmem>>, %arg4: memref<1x64xf32, #tpu.memory_space<vmem>>, %arg5: memref<3x64x64xbf16, #tpu.memory_space<vmem>>, %arg6: memref<3x64x64xbf16, #tpu.memory_space<vmem>>, %arg7: memref<1x64xf32, #tpu.memory_space<vmem>>, %arg8: memref<1x64xf32, #tpu.memory_space<vmem>>, %arg9: memref<3x64x64xbf16, #tpu.memory_space<vmem>>, %arg10: memref<1x64xf32, #tpu.memory_space<vmem>>, %arg11: memref<1x64xf32, #tpu.memory_space<vmem>>, %arg12: memref<1x16x64xf32, #tpu.memory_space<vmem>>, %arg13: memref<18x64xbf16, #tpu.memory_space<vmem>>, %arg14: memref<18x64xbf16, #tpu.memory_space<vmem>>, %arg15: memref<18x64xbf16, #tpu.memory_space<vmem>>) attributes {dimension_semantics = [#tpu.dimension_semantics<parallel>], iteration_bounds = array<i64: 4>, scalar_prefetch = 0 : i64, scratch_operands = 3 : i64, tpu.core_type = #tpu.core_type<tc>, window_params = [{transform_indices = @transform_0, window_bounds = array<i64: 1, 8, 32>}, {transform_indices = @transform_1, window_bounds = array<i64: 1, 16, 64>}, {pipeline_mode = #tpu.pipeline_mode<synchronous>, transform_indices = @transform_2, window_bounds = array<i64: 2, 32, 64>}, {pipeline_mode = #tpu.pipeline_mode<synchronous>, transform_indices = @transform_3, window_bounds = array<i64: 1, 64>}, {pipeline_mode = #tpu.pipeline_mode<synchronous>, transform_indices = @transform_4, window_bounds = array<i64: 3, 64, 64>}, {pipeline_mode = #tpu.pipeline_mode<synchronous>, transform_indices = @transform_5, window_bounds = array<i64: 3, 64, 64>}, {pipeline_mode = #tpu.pipeline_mode<synchronous>, transform_indices = @transform_6, window_bounds = array<i64: 1, 64>}, {pipeline_mode = #tpu.pipeline_mode<synchronous>, transform_indices = @transform_7, window_bounds = array<i64: 1, 64>}, {pipeline_mode = #tpu.pipeline_mode<synchronous>, transform_indices = @transform_8, window_bounds = array<i64: 3, 64, 64>}, {pipeline_mode = #tpu.pipeline_mode<synchronous>, transform_indices = @transform_9, window_bounds = array<i64: 1, 64>}, {pipeline_mode = #tpu.pipeline_mode<synchronous>, transform_indices = @transform_10, window_bounds = array<i64: 1, 64>}, {transform_indices = @transform_11, window_bounds = array<i64: 1, 16, 64>}]} {
    %c0 = arith.constant 0 : index
    %c0_0 = arith.constant 0 : index
    %c0_1 = arith.constant 0 : index
    %0 = vector.load %arg1[%c0, %c0_0, %c0_1] : memref<1x8x32xf32, #tpu.memory_space<vmem>>, vector<1x8x32xf32>
    %1 = vector.shape_cast %0 : vector<1x8x32xf32> to vector<8x32xf32>
    %c0_2 = arith.constant 0 : index
    %c0_3 = arith.constant 0 : index
    %c0_4 = arith.constant 0 : index
    %2 = vector.load %arg2[%c0_2, %c0_3, %c0_4] : memref<1x16x64xf32, #tpu.memory_space<vmem>>, vector<1x16x64xf32>
    %3 = vector.shape_cast %2 : vector<1x16x64xf32> to vector<16x64xf32>
    %cst = arith.constant 0.000000e+00 : bf16
    %4 = vector.broadcast %cst : bf16 to vector<1x64xbf16>
    %c0_5 = arith.constant 0 : index
    %c0_6 = arith.constant 0 : index
    %5 = vector.load %arg13[%c0_5, %c0_6] : memref<18x64xbf16, #tpu.memory_space<vmem>>, vector<1x64xbf16>
    tpu.vector_store %arg13[%c0_5, %c0_6], %4 {strides = array<i32>} : memref<18x64xbf16, #tpu.memory_space<vmem>>, vector<1x64xbf16>,
    %c17 = arith.constant 17 : index
    %c0_7 = arith.constant 0 : index
    %6 = vector.load %arg13[%c17, %c0_7] : memref<18x64xbf16, #tpu.memory_space<vmem>>, vector<1x64xbf16>
    tpu.vector_store %arg13[%c17, %c0_7], %4 {strides = array<i32>} : memref<18x64xbf16, #tpu.memory_space<vmem>>, vector<1x64xbf16>,
    %cst_8 = arith.constant 0.000000e+00 : bf16
    %7 = vector.broadcast %cst_8 : bf16 to vector<1x64xbf16>
    %c0_9 = arith.constant 0 : index
    %c0_10 = arith.constant 0 : index
    %8 = vector.load %arg14[%c0_9, %c0_10] : memref<18x64xbf16, #tpu.memory_space<vmem>>, vector<1x64xbf16>
    tpu.vector_store %arg14[%c0_9, %c0_10], %7 {strides = array<i32>} : memref<18x64xbf16, #tpu.memory_space<vmem>>, vector<1x64xbf16>,
    %c17_11 = arith.constant 17 : index
    %c0_12 = arith.constant 0 : index
    %9 = vector.load %arg14[%c17_11, %c0_12] : memref<18x64xbf16, #tpu.memory_space<vmem>>, vector<1x64xbf16>
    tpu.vector_store %arg14[%c17_11, %c0_12], %7 {strides = array<i32>} : memref<18x64xbf16, #tpu.memory_space<vmem>>, vector<1x64xbf16>,
    %cst_13 = arith.constant 0.000000e+00 : bf16
    %10 = vector.broadcast %cst_13 : bf16 to vector<1x64xbf16>
    %c0_14 = arith.constant 0 : index
    %c0_15 = arith.constant 0 : index
    %11 = vector.load %arg15[%c0_14, %c0_15] : memref<18x64xbf16, #tpu.memory_space<vmem>>, vector<1x64xbf16>
    tpu.vector_store %arg15[%c0_14, %c0_15], %10 {strides = array<i32>} : memref<18x64xbf16, #tpu.memory_space<vmem>>, vector<1x64xbf16>,
    %c17_16 = arith.constant 17 : index
    %c0_17 = arith.constant 0 : index
    %12 = vector.load %arg15[%c17_16, %c0_17] : memref<18x64xbf16, #tpu.memory_space<vmem>>, vector<1x64xbf16>
    tpu.vector_store %arg15[%c17_16, %c0_17], %10 {strides = array<i32>} : memref<18x64xbf16, #tpu.memory_space<vmem>>, vector<1x64xbf16>,
    %13 = arith.truncf %3 : vector<16x64xf32> to vector<16x64xbf16>
    %c1 = arith.constant 1 : index
    %c0_18 = arith.constant 0 : index
    %14 = vector.load %arg13[%c1, %c0_18] : memref<18x64xbf16, #tpu.memory_space<vmem>>, vector<16x64xbf16>
    tpu.vector_store %arg13[%c1, %c0_18], %13 {strides = array<i32>} : memref<18x64xbf16, #tpu.memory_space<vmem>>, vector<16x64xbf16>,
    %15 = arith.truncf %1 : vector<8x32xf32> to vector<8x32xbf16>
    %c0_19 = arith.constant 0 : index
    %c0_20 = arith.constant 0 : index
    %c0_21 = arith.constant 0 : index
    %16 = vector.load %arg3[%c0_19, %c0_20, %c0_21] : memref<2x32x64xbf16, #tpu.memory_space<vmem>>, vector<1x32x64xbf16>
    %17 = vector.shape_cast %16 : vector<1x32x64xbf16> to vector<32x64xbf16>
    %cst_22 = arith.constant dense<0.000000e+00> : vector<8x64xf32>
    %18 = tpu.matmul %15, %17, %cst_22 {dimension_numbers = #tpu.dot_dimension_numbers<[1], [0], [0], [1], [0, 0, 1, 1], [], []>} : vector<8x32xbf16>, vector<32x64xbf16>, vector<8x64xf32> -> vector<8x64xf32>
    %c0_23 = arith.constant 0 : index
    %c0_24 = arith.constant 0 : index
    %19 = vector.load %arg4[%c0_23, %c0_24] : memref<1x64xf32, #tpu.memory_space<vmem>>, vector<1x64xf32>
    %20 = vector.broadcast %19 : vector<1x64xf32> to vector<8x64xf32>
    %21 = arith.addf %18, %20 : vector<8x64xf32>
    %c1_25 = arith.constant 1 : index
    %c0_26 = arith.constant 0 : index
    %c0_27 = arith.constant 0 : index
    %22 = vector.load %arg3[%c1_25, %c0_26, %c0_27] : memref<2x32x64xbf16, #tpu.memory_space<vmem>>, vector<1x32x64xbf16>
    %23 = vector.shape_cast %22 : vector<1x32x64xbf16> to vector<32x64xbf16>
    %cst_28 = arith.constant dense<0.000000e+00> : vector<8x64xf32>
    %24 = tpu.matmul %15, %23, %cst_28 {dimension_numbers = #tpu.dot_dimension_numbers<[1], [0], [0], [1], [0, 0, 1, 1], [], []>} : vector<8x32xbf16>, vector<32x64xbf16>, vector<8x64xf32> -> vector<8x64xf32>
    %c0_29 = arith.constant 0 : index
    %c0_30 = arith.constant 0 : index
    %25 = vector.load %arg4[%c0_29, %c0_30] : memref<1x64xf32, #tpu.memory_space<vmem>>, vector<1x64xf32>
    %26 = vector.broadcast %25 : vector<1x64xf32> to vector<8x64xf32>
    %27 = arith.addf %24, %26 : vector<8x64xf32>
    %28 = vector.shape_cast %21 : vector<8x64xf32> to vector<8x1x64xf32>
    %29 = vector.shape_cast %27 : vector<8x64xf32> to vector<8x1x64xf32>
    %30 = tpu.concatenate %28, %29 in 1 : vector<8x1x64xf32>, vector<8x1x64xf32> -> vector<8x2x64xf32>
    %31 = vector.shape_cast %30 : vector<8x2x64xf32> to vector<16x64xf32>
    %32 = arith.truncf %31 : vector<16x64xf32> to vector<16x64xbf16>
    %c1_31 = arith.constant 1 : index
    %c0_32 = arith.constant 0 : index
    %33 = vector.load %arg14[%c1_31, %c0_32] : memref<18x64xbf16, #tpu.memory_space<vmem>>, vector<16x64xbf16>
    tpu.vector_store %arg14[%c1_31, %c0_32], %32 {strides = array<i32>} : memref<18x64xbf16, #tpu.memory_space<vmem>>, vector<16x64xbf16>,
    %c0_33 = arith.constant 0 : index
    %c0_34 = arith.constant 0 : index
    %34 = vector.load %arg13[%c0_33, %c0_34] : memref<18x64xbf16, #tpu.memory_space<vmem>>, vector<16x64xbf16>
    %c0_35 = arith.constant 0 : index
    %c0_36 = arith.constant 0 : index
    %c0_37 = arith.constant 0 : index
    %35 = vector.load %arg5[%c0_35, %c0_36, %c0_37] : memref<3x64x64xbf16, #tpu.memory_space<vmem>>, vector<1x64x64xbf16>
    %36 = vector.shape_cast %35 : vector<1x64x64xbf16> to vector<64x64xbf16>
    %cst_38 = arith.constant dense<0.000000e+00> : vector<16x64xf32>
    %37 = tpu.matmul %34, %36, %cst_38 {dimension_numbers = #tpu.dot_dimension_numbers<[1], [0], [0], [1], [0, 0, 1, 1], [], []>} : vector<16x64xbf16>, vector<64x64xbf16>, vector<16x64xf32> -> vector<16x64xf32>
    %c0_39 = arith.constant 0 : index
    %c0_40 = arith.constant 0 : index
    %38 = vector.load %arg14[%c0_39, %c0_40] : memref<18x64xbf16, #tpu.memory_space<vmem>>, vector<16x64xbf16>
    %c0_41 = arith.constant 0 : index
    %c0_42 = arith.constant 0 : index
    %c0_43 = arith.constant 0 : index
    %39 = vector.load %arg6[%c0_41, %c0_42, %c0_43] : memref<3x64x64xbf16, #tpu.memory_space<vmem>>, vector<1x64x64xbf16>
    %40 = vector.shape_cast %39 : vector<1x64x64xbf16> to vector<64x64xbf16>
    %cst_44 = arith.constant dense<0.000000e+00> : vector<16x64xf32>
    %41 = tpu.matmul %38, %40, %cst_44 {dimension_numbers = #tpu.dot_dimension_numbers<[1], [0], [0], [1], [0, 0, 1, 1], [], []>} : vector<16x64xbf16>, vector<64x64xbf16>, vector<16x64xf32> -> vector<16x64xf32>
    %42 = arith.addf %37, %41 : vector<16x64xf32>
    %c1_45 = arith.constant 1 : index
    %c0_46 = arith.constant 0 : index
    %43 = vector.load %arg13[%c1_45, %c0_46] : memref<18x64xbf16, #tpu.memory_space<vmem>>, vector<16x64xbf16>
    %c1_47 = arith.constant 1 : index
    %c0_48 = arith.constant 0 : index
    %c0_49 = arith.constant 0 : index
    %44 = vector.load %arg5[%c1_47, %c0_48, %c0_49] : memref<3x64x64xbf16, #tpu.memory_space<vmem>>, vector<1x64x64xbf16>
    %45 = vector.shape_cast %44 : vector<1x64x64xbf16> to vector<64x64xbf16>
    %cst_50 = arith.constant dense<0.000000e+00> : vector<16x64xf32>
    %46 = tpu.matmul %43, %45, %cst_50 {dimension_numbers = #tpu.dot_dimension_numbers<[1], [0], [0], [1], [0, 0, 1, 1], [], []>} : vector<16x64xbf16>, vector<64x64xbf16>, vector<16x64xf32> -> vector<16x64xf32>
    %c1_51 = arith.constant 1 : index
    %c0_52 = arith.constant 0 : index
    %47 = vector.load %arg14[%c1_51, %c0_52] : memref<18x64xbf16, #tpu.memory_space<vmem>>, vector<16x64xbf16>
    %c1_53 = arith.constant 1 : index
    %c0_54 = arith.constant 0 : index
    %c0_55 = arith.constant 0 : index
    %48 = vector.load %arg6[%c1_53, %c0_54, %c0_55] : memref<3x64x64xbf16, #tpu.memory_space<vmem>>, vector<1x64x64xbf16>
    %49 = vector.shape_cast %48 : vector<1x64x64xbf16> to vector<64x64xbf16>
    %cst_56 = arith.constant dense<0.000000e+00> : vector<16x64xf32>
    %50 = tpu.matmul %47, %49, %cst_56 {dimension_numbers = #tpu.dot_dimension_numbers<[1], [0], [0], [1], [0, 0, 1, 1], [], []>} : vector<16x64xbf16>, vector<64x64xbf16>, vector<16x64xf32> -> vector<16x64xf32>
    %51 = arith.addf %46, %50 : vector<16x64xf32>
    %52 = arith.addf %42, %51 : vector<16x64xf32>
    %c2 = arith.constant 2 : index
    %c0_57 = arith.constant 0 : index
    %53 = vector.load %arg13[%c2, %c0_57] : memref<18x64xbf16, #tpu.memory_space<vmem>>, vector<16x64xbf16>
    %c2_58 = arith.constant 2 : index
    %c0_59 = arith.constant 0 : index
    %c0_60 = arith.constant 0 : index
    %54 = vector.load %arg5[%c2_58, %c0_59, %c0_60] : memref<3x64x64xbf16, #tpu.memory_space<vmem>>, vector<1x64x64xbf16>
    %55 = vector.shape_cast %54 : vector<1x64x64xbf16> to vector<64x64xbf16>
    %cst_61 = arith.constant dense<0.000000e+00> : vector<16x64xf32>
    %56 = tpu.matmul %53, %55, %cst_61 {dimension_numbers = #tpu.dot_dimension_numbers<[1], [0], [0], [1], [0, 0, 1, 1], [], []>} : vector<16x64xbf16>, vector<64x64xbf16>, vector<16x64xf32> -> vector<16x64xf32>
    %c2_62 = arith.constant 2 : index
    %c0_63 = arith.constant 0 : index
    %57 = vector.load %arg14[%c2_62, %c0_63] : memref<18x64xbf16, #tpu.memory_space<vmem>>, vector<16x64xbf16>
    %c2_64 = arith.constant 2 : index
    %c0_65 = arith.constant 0 : index
    %c0_66 = arith.constant 0 : index
    %58 = vector.load %arg6[%c2_64, %c0_65, %c0_66] : memref<3x64x64xbf16, #tpu.memory_space<vmem>>, vector<1x64x64xbf16>
    %59 = vector.shape_cast %58 : vector<1x64x64xbf16> to vector<64x64xbf16>
    %cst_67 = arith.constant dense<0.000000e+00> : vector<16x64xf32>
    %60 = tpu.matmul %57, %59, %cst_67 {dimension_numbers = #tpu.dot_dimension_numbers<[1], [0], [0], [1], [0, 0, 1, 1], [], []>} : vector<16x64xbf16>, vector<64x64xbf16>, vector<16x64xf32> -> vector<16x64xf32>
    %61 = arith.addf %56, %60 : vector<16x64xf32>
    %62 = arith.addf %52, %61 : vector<16x64xf32>
    %c0_68 = arith.constant 0 : index
    %c0_69 = arith.constant 0 : index
    %63 = vector.load %arg7[%c0_68, %c0_69] : memref<1x64xf32, #tpu.memory_space<vmem>>, vector<1x64xf32>
    %64 = vector.broadcast %63 : vector<1x64xf32> to vector<16x64xf32>
    %65 = arith.mulf %62, %64 : vector<16x64xf32>
    %c0_70 = arith.constant 0 : index
    %c0_71 = arith.constant 0 : index
    %66 = vector.load %arg8[%c0_70, %c0_71] : memref<1x64xf32, #tpu.memory_space<vmem>>, vector<1x64xf32>
    %67 = vector.broadcast %66 : vector<1x64xf32> to vector<16x64xf32>
    %68 = arith.addf %65, %67 : vector<16x64xf32>
    %cst_72 = arith.constant 0.000000e+00 : f32
    %69 = vector.broadcast %cst_72 : f32 to vector<16x64xf32>
    %70 = arith.maximumf %68, %69 : vector<16x64xf32>
    %71 = arith.truncf %70 : vector<16x64xf32> to vector<16x64xbf16>
    %c1_73 = arith.constant 1 : index
    %c0_74 = arith.constant 0 : index
    %72 = vector.load %arg15[%c1_73, %c0_74] : memref<18x64xbf16, #tpu.memory_space<vmem>>, vector<16x64xbf16>
    tpu.vector_store %arg15[%c1_73, %c0_74], %71 {strides = array<i32>} : memref<18x64xbf16, #tpu.memory_space<vmem>>, vector<16x64xbf16>,
    %c0_75 = arith.constant 0 : index
    %c0_76 = arith.constant 0 : index
    %73 = vector.load %arg15[%c0_75, %c0_76] : memref<18x64xbf16, #tpu.memory_space<vmem>>, vector<16x64xbf16>
    %c0_77 = arith.constant 0 : index
    %c0_78 = arith.constant 0 : index
    %c0_79 = arith.constant 0 : index
    %74 = vector.load %arg9[%c0_77, %c0_78, %c0_79] : memref<3x64x64xbf16, #tpu.memory_space<vmem>>, vector<1x64x64xbf16>
    %75 = vector.shape_cast %74 : vector<1x64x64xbf16> to vector<64x64xbf16>
    %cst_80 = arith.constant dense<0.000000e+00> : vector<16x64xf32>
    %76 = tpu.matmul %73, %75, %cst_80 {dimension_numbers = #tpu.dot_dimension_numbers<[1], [0], [0], [1], [0, 0, 1, 1], [], []>} : vector<16x64xbf16>, vector<64x64xbf16>, vector<16x64xf32> -> vector<16x64xf32>
    %c1_81 = arith.constant 1 : index
    %c0_82 = arith.constant 0 : index
    %77 = vector.load %arg15[%c1_81, %c0_82] : memref<18x64xbf16, #tpu.memory_space<vmem>>, vector<16x64xbf16>
    %c1_83 = arith.constant 1 : index
    %c0_84 = arith.constant 0 : index
    %c0_85 = arith.constant 0 : index
    %78 = vector.load %arg9[%c1_83, %c0_84, %c0_85] : memref<3x64x64xbf16, #tpu.memory_space<vmem>>, vector<1x64x64xbf16>
    %79 = vector.shape_cast %78 : vector<1x64x64xbf16> to vector<64x64xbf16>
    %cst_86 = arith.constant dense<0.000000e+00> : vector<16x64xf32>
    %80 = tpu.matmul %77, %79, %cst_86 {dimension_numbers = #tpu.dot_dimension_numbers<[1], [0], [0], [1], [0, 0, 1, 1], [], []>} : vector<16x64xbf16>, vector<64x64xbf16>, vector<16x64xf32> -> vector<16x64xf32>
    %81 = arith.addf %76, %80 : vector<16x64xf32>
    %c2_87 = arith.constant 2 : index
    %c0_88 = arith.constant 0 : index
    %82 = vector.load %arg15[%c2_87, %c0_88] : memref<18x64xbf16, #tpu.memory_space<vmem>>, vector<16x64xbf16>
    %c2_89 = arith.constant 2 : index
    %c0_90 = arith.constant 0 : index
    %c0_91 = arith.constant 0 : index
    %83 = vector.load %arg9[%c2_89, %c0_90, %c0_91] : memref<3x64x64xbf16, #tpu.memory_space<vmem>>, vector<1x64x64xbf16>
    %84 = vector.shape_cast %83 : vector<1x64x64xbf16> to vector<64x64xbf16>
    %cst_92 = arith.constant dense<0.000000e+00> : vector<16x64xf32>
    %85 = tpu.matmul %82, %84, %cst_92 {dimension_numbers = #tpu.dot_dimension_numbers<[1], [0], [0], [1], [0, 0, 1, 1], [], []>} : vector<16x64xbf16>, vector<64x64xbf16>, vector<16x64xf32> -> vector<16x64xf32>
    %86 = arith.addf %81, %85 : vector<16x64xf32>
    %c0_93 = arith.constant 0 : index
    %c0_94 = arith.constant 0 : index
    %87 = vector.load %arg10[%c0_93, %c0_94] : memref<1x64xf32, #tpu.memory_space<vmem>>, vector<1x64xf32>
    %88 = vector.broadcast %87 : vector<1x64xf32> to vector<16x64xf32>
    %89 = arith.mulf %86, %88 : vector<16x64xf32>
    %c0_95 = arith.constant 0 : index
    %c0_96 = arith.constant 0 : index
    %90 = vector.load %arg11[%c0_95, %c0_96] : memref<1x64xf32, #tpu.memory_space<vmem>>, vector<1x64xf32>
    %91 = vector.broadcast %90 : vector<1x64xf32> to vector<16x64xf32>
    %92 = arith.addf %89, %91 : vector<16x64xf32>
    %cst_97 = arith.constant 0.000000e+00 : f32
    %93 = vector.broadcast %cst_97 : f32 to vector<16x64xf32>
    %94 = arith.maximumf %92, %93 : vector<16x64xf32>
    %c0_98 = arith.constant 0 : index
    %c0_99 = arith.constant 0 : index
    %c0_100 = arith.constant 0 : index
    %95 = vector.load %arg12[%c0_98, %c0_99, %c0_100] : memref<1x16x64xf32, #tpu.memory_space<vmem>>, vector<1x16x64xf32>
    %96 = vector.shape_cast %95 : vector<1x16x64xf32> to vector<16x64xf32>
    %97 = vector.shape_cast %94 : vector<16x64xf32> to vector<1x16x64xf32>
    tpu.vector_store %arg12[%c0_98, %c0_99, %c0_100], %97 {strides = array<i32>} : memref<1x16x64xf32, #tpu.memory_space<vmem>>, vector<1x16x64xf32>,
    return
  }
  func.func @transform_0(%arg0: i32) -> (i32, i32, i32) {
    %c0_i32 = arith.constant 0 : i32
    %c0_i32_0 = arith.constant 0 : i32
    %c0_i32_1 = arith.constant 0 : i32
    return %arg0, %c0_i32, %c0_i32_0 : i32, i32, i32
  }
  func.func @transform_1(%arg0: i32) -> (i32, i32, i32) {
    %c0_i32 = arith.constant 0 : i32
    %c0_i32_0 = arith.constant 0 : i32
    %c0_i32_1 = arith.constant 0 : i32
    return %arg0, %c0_i32, %c0_i32_0 : i32, i32, i32
  }
  func.func @transform_2(%arg0: i32) -> (i32, i32, i32) {
    %c0_i32 = arith.constant 0 : i32
    %c0_i32_0 = arith.constant 0 : i32
    %c0_i32_1 = arith.constant 0 : i32
    %c0_i32_2 = arith.constant 0 : i32
    return %c0_i32, %c0_i32_0, %c0_i32_1 : i32, i32, i32
  }
  func.func @transform_3(%arg0: i32) -> (i32, i32) {
    %c0_i32 = arith.constant 0 : i32
    %c0_i32_0 = arith.constant 0 : i32
    %c0_i32_1 = arith.constant 0 : i32
    return %c0_i32, %c0_i32_0 : i32, i32
  }
  func.func @transform_4(%arg0: i32) -> (i32, i32, i32) {
    %c0_i32 = arith.constant 0 : i32
    %c0_i32_0 = arith.constant 0 : i32
    %c0_i32_1 = arith.constant 0 : i32
    %c0_i32_2 = arith.constant 0 : i32
    return %c0_i32, %c0_i32_0, %c0_i32_1 : i32, i32, i32
  }
  func.func @transform_5(%arg0: i32) -> (i32, i32, i32) {
    %c0_i32 = arith.constant 0 : i32
    %c0_i32_0 = arith.constant 0 : i32
    %c0_i32_1 = arith.constant 0 : i32
    %c0_i32_2 = arith.constant 0 : i32
    return %c0_i32, %c0_i32_0, %c0_i32_1 : i32, i32, i32
  }
  func.func @transform_6(%arg0: i32) -> (i32, i32) {
    %c0_i32 = arith.constant 0 : i32
    %c0_i32_0 = arith.constant 0 : i32
    %c0_i32_1 = arith.constant 0 : i32
    return %c0_i32, %c0_i32_0 : i32, i32
  }
  func.func @transform_7(%arg0: i32) -> (i32, i32) {
    %c0_i32 = arith.constant 0 : i32
    %c0_i32_0 = arith.constant 0 : i32
    %c0_i32_1 = arith.constant 0 : i32
    return %c0_i32, %c0_i32_0 : i32, i32
  }
  func.func @transform_8(%arg0: i32) -> (i32, i32, i32) {
    %c0_i32 = arith.constant 0 : i32
    %c0_i32_0 = arith.constant 0 : i32
    %c0_i32_1 = arith.constant 0 : i32
    %c0_i32_2 = arith.constant 0 : i32
    return %c0_i32, %c0_i32_0, %c0_i32_1 : i32, i32, i32
  }
  func.func @transform_9(%arg0: i32) -> (i32, i32) {
    %c0_i32 = arith.constant 0 : i32
    %c0_i32_0 = arith.constant 0 : i32
    %c0_i32_1 = arith.constant 0 : i32
    return %c0_i32, %c0_i32_0 : i32, i32
  }
  func.func @transform_10(%arg0: i32) -> (i32, i32) {
    %c0_i32 = arith.constant 0 : i32
    %c0_i32_0 = arith.constant 0 : i32
    %c0_i32_1 = arith.constant 0 : i32
    return %c0_i32, %c0_i32_0 : i32, i32
  }
  func.func @transform_11(%arg0: i32) -> (i32, i32, i32) {
    %c0_i32 = arith.constant 0 : i32
    %c0_i32_0 = arith.constant 0 : i32
    %c0_i32_1 = arith.constant 0 : i32
    return %arg0, %c0_i32, %c0_i32_0 : i32, i32, i32
  }
}

module attributes {stable_mosaic.version = 11 : i64} {
  func.func @_head_kernel(%arg0: i32, %arg1: memref<1x16x64xf32, #tpu.memory_space<vmem>>, %arg2: memref<64x32xf32, #tpu.memory_space<vmem>>, %arg3: memref<1x32xf32, #tpu.memory_space<vmem>>, %arg4: memref<1x16x32xf32, #tpu.memory_space<vmem>>) attributes {dimension_semantics = [#tpu.dimension_semantics<parallel>], iteration_bounds = array<i64: 4>, scalar_prefetch = 0 : i64, scratch_operands = 0 : i64, tpu.core_type = #tpu.core_type<tc>, window_params = [{transform_indices = @transform_0, window_bounds = array<i64: 1, 16, 64>}, {pipeline_mode = #tpu.pipeline_mode<synchronous>, transform_indices = @transform_1, window_bounds = array<i64: 64, 32>}, {pipeline_mode = #tpu.pipeline_mode<synchronous>, transform_indices = @transform_2, window_bounds = array<i64: 1, 32>}, {transform_indices = @transform_3, window_bounds = array<i64: 1, 16, 32>}]} {
    %c0 = arith.constant 0 : index
    %c0_0 = arith.constant 0 : index
    %c0_1 = arith.constant 0 : index
    %0 = vector.load %arg1[%c0, %c0_0, %c0_1] : memref<1x16x64xf32, #tpu.memory_space<vmem>>, vector<1x16x64xf32>
    %1 = vector.shape_cast %0 : vector<1x16x64xf32> to vector<16x64xf32>
    %c0_2 = arith.constant 0 : index
    %c0_3 = arith.constant 0 : index
    %2 = vector.load %arg2[%c0_2, %c0_3] : memref<64x32xf32, #tpu.memory_space<vmem>>, vector<64x32xf32>
    %cst = arith.constant dense<0.000000e+00> : vector<16x32xf32>
    %3 = tpu.matmul %1, %2, %cst {dimension_numbers = #tpu.dot_dimension_numbers<[1], [0], [0], [1], [0, 0, 1, 1], [], []>} : vector<16x64xf32>, vector<64x32xf32>, vector<16x32xf32> -> vector<16x32xf32>
    %c0_4 = arith.constant 0 : index
    %c0_5 = arith.constant 0 : index
    %4 = vector.load %arg3[%c0_4, %c0_5] : memref<1x32xf32, #tpu.memory_space<vmem>>, vector<1x32xf32>
    %5 = vector.broadcast %4 : vector<1x32xf32> to vector<16x32xf32>
    %6 = arith.addf %3, %5 : vector<16x32xf32>
    %c0_6 = arith.constant 0 : index
    %c0_7 = arith.constant 0 : index
    %c0_8 = arith.constant 0 : index
    %7 = vector.load %arg4[%c0_6, %c0_7, %c0_8] : memref<1x16x32xf32, #tpu.memory_space<vmem>>, vector<1x16x32xf32>
    %8 = vector.shape_cast %7 : vector<1x16x32xf32> to vector<16x32xf32>
    %9 = vector.shape_cast %6 : vector<16x32xf32> to vector<1x16x32xf32>
    tpu.vector_store %arg4[%c0_6, %c0_7, %c0_8], %9 {strides = array<i32>} : memref<1x16x32xf32, #tpu.memory_space<vmem>>, vector<1x16x32xf32>,
    return
  }
  func.func @transform_0(%arg0: i32) -> (i32, i32, i32) {
    %c0_i32 = arith.constant 0 : i32
    %c0_i32_0 = arith.constant 0 : i32
    %c0_i32_1 = arith.constant 0 : i32
    return %arg0, %c0_i32, %c0_i32_0 : i32, i32, i32
  }
  func.func @transform_1(%arg0: i32) -> (i32, i32) {
    %c0_i32 = arith.constant 0 : i32
    %c0_i32_0 = arith.constant 0 : i32
    %c0_i32_1 = arith.constant 0 : i32
    return %c0_i32, %c0_i32_0 : i32, i32
  }
  func.func @transform_2(%arg0: i32) -> (i32, i32) {
    %c0_i32 = arith.constant 0 : i32
    %c0_i32_0 = arith.constant 0 : i32
    %c0_i32_1 = arith.constant 0 : i32
    return %c0_i32, %c0_i32_0 : i32, i32
  }
  func.func @transform_3(%arg0: i32) -> (i32, i32, i32) {
    %c0_i32 = arith.constant 0 : i32
    %c0_i32_0 = arith.constant 0 : i32
    %c0_i32_1 = arith.constant 0 : i32
    return %arg0, %c0_i32, %c0_i32_0 : i32, i32, i32
  }
}

</mosaic_0001>

<bundles_post_ra>
// kernel: siamese_unet_forward.10
= control target key start
LH: loop header
LB: loop body
LE: loop exit
PB: predicated region body
PF: predicated region fallthrough
CT: control target
= control target key end

     0   :  { %s1095_s30 = smov 0   ;;  %s1235_s0 = inlined_call_operand.vmem [shape: f32[4,16,64], index: 0, kind: input, shape index: {}]   ;;  %s1236_s1 = inlined_call_operand.vmem [shape: bf16[64,32], index: 1, kind: input, shape index: {}]   ;;  %s1237_s2 = inlined_call_operand.vmem [shape: bf16[64,32], index: 2, kind: input, shape index: {}]   ;;  %s1238_s3 = inlined_call_operand.vmem [shape: bf16[3,32,64], index: 3, kind: input, shape index: {}]   ;;  %s1239_s4 = inlined_call_operand.vmem [shape: f32[1,64], index: 4, kind: input, shape index: {}]   ;;  %s1240_s5 = inlined_call_operand.vmem [shape: f32[1,64], index: 5, kind: input, shape index: {}]   ;;  %s1241_s6 = inlined_call_operand.vmem [shape: bf16[3,64,64], index: 6, kind: input, shape index: {}]   ;;  %s1242_s7 = inlined_call_operand.vmem [shape: f32[1,64], index: 7, kind: input, shape index: {}]   ;;  %s1243_s8 = inlined_call_operand.vmem [shape: f32[1,64], index: 8, kind: input, shape index: {}]   ;;  %s1244_s9 = inlined_call_operand.vmem [shape: f32[4,8,64], index: 9, kind: output, shape index: {}]  }
   0x1 LB: > { %s851_s10 = sadd.s32 4294967295, %s1043_s30   ;;  %p855_p0 = scmp.ge.s32.totalorder %s1043_s30, 1  ;;  %s1043_s30 = sphi %s1095_s30, %s19_s30  }
   0x2   : > { %p287_p1 = scmp.lt.s32.totalorder %s1043_s30, 5 }
   0x4   : > { %p288_p2 = pnand %p855_p0, %p287_p1 }
   0x5   : > { %p322_p3 = scmp.lt.s32.totalorder (!%p288_p2), %s851_s10, 3 }
   0x6   : > { %291 = sbr.rel (%p288_p2) target bundleno = 511 (0x1ff), region = 56 }
   0xb   : > { %v1002_v0 = vld [vmem:[%s1236_s1 + $0x18] sm:$0xff]  ;;  %v1001_v2 = vld [vmem:[%s1236_s1 + $0x10] sm:$0xff]  ;;  %s1250_s10 = smov (!%p322_p3, %s851_s10), 3  ;;  %v1000_v4 = vld [vmem:[%s1236_s1 + $0x8] sm:$0xff]  ;;  %vm389_vm0 = vcmask 523264   ;;  %vm332_vm1 = vcmask 253952  }
   0xc   : > { %v1006_v1 = vld [vmem:[%s1237_s2 + $0x18] sm:$0xff]  ;;  %397 = vmatpush.bf16.msra.mxu0 %v1002_v0  ;;  %v1005_v3 = vld [vmem:[%s1237_s2 + $0x10] sm:$0xff]  ;;  %s998_s19 = sshll.u32 %s1250_s10, 4  ;;  %v1004_v5 = vld [vmem:[%s1237_s2 + $0x8] sm:$0xff]  ;;  %vm333_vm2 = vsmask.f32 256 }
   0xd   : > { %442 = vmatpush.bf16.msra.mxu1 %v1006_v1  ;;  %s326_s24 = scalar_lea.vmem %s1235_s0, %s998_s19  ;;  %v999_v9 = vld [vmem:[%s1236_s1] sm:$0xff]  ;;  %vm343_vm3 = vcmask 516096   ;;  %vm1135_vm4 = vmand %vm332_vm1, %vm333_vm2  ;;  %vm338_vm5 = vsmask.f32 7938  ;;  %v345_v15 = vld [vmem:[#allocation3] sm:$0x1] }
   0xe   : > { %v352_v6 = vld [vmem:[%s326_s24] ss:$2 sm:$0xff]  ;;  %v859_v7 = vld [vmem:[%s326_s24 + $0x1] ss:$2 sm:$0xff]  ;;  %vm339_vm6 = vmand %vm332_vm1, %vm338_vm5  ;;  %vm463_vm9 = vcmask 257024   ;;  %vm506_vm11 = vcmask 261120  }
   0xf   : > { %v355_v8 = vmax.f32 %v352_v6, %v859_v7  ;;  %v1003_v10 = vld [vmem:[%s1237_s2] sm:$0xff]  ;;  %v349_v17 = vld [vmem:[#allocation3 + $0x4] sm:$0x1]  ;;  %vm1142_vm7 = vmand %vm343_vm3, %vm333_vm2  ;;  %vm612_vm12 = vcmask 519168   ;;  %s858_s18 = sshll.u32 %s1250_s10, 3 }
  0x10   : > { %398 = vmatpush.bf16.msra.mxu0 %v1001_v2  ;;  %v335_v12 = vld [vmem:[#allocation2] sm:$0x1]  ;;  %v340_v14 = vld [vmem:[#allocation2 + $0x4] sm:$0x1]  ;;  %v346_v20 = vsel %vm1142_vm7, 0, %v345_v15  ;;  %vm348_vm8 = vmand %vm343_vm3, %vm338_vm5  ;;  %s330_s21 = scalar_lea.vmem %s1244_s9, %s858_s18 }
  0x11   : > { %443 = vmatpush.bf16.msra.mxu1 %v1005_v3  ;;  %v356_v11 = vpack.c.bf16 %v355_v8, %v355_v8  ;;  %v336_v16 = vsel %vm1135_vm4, 0, %v335_v12  ;;  %v341_v18 = vsel %vm339_vm6, 0, %v340_v14  ;;  %347 = vst [vmem:[#allocation3] sm:$0x1] %v346_v20  ;;  %v350_v21 = vsel %vm348_vm8, 0, %v349_v17  ;;  %v1008_v22 = vld [vmem:[%s1238_s3 + $0x8] sm:$0xff]  ;;  %vm464_vm10 = vmand %vm463_vm9, %vm338_vm5 }
  0x12   : > { %337 = vst [vmem:[#allocation2] sm:$0x1] %v336_v16  ;;  %544 = vmatpush.bf16.msra.mxu3 %v1008_v22  ;;  %v1007_v23 = vld [vmem:[%s1238_s3] sm:$0xff]  ;;  %v1010_v24 = vld [vmem:[%s1238_s3 + $0x18] sm:$0xff]  ;;  %v1009_v25 = vld [vmem:[%s1238_s3 + $0x10] sm:$0xff] }
  0x13   : > { %342 = vst [vmem:[#allocation2 + $0x4] sm:$0x1] %v341_v18  ;;  %516 = vmatpush.bf16.msra.mxu2 %v1010_v24  ;;  %v1012_v26 = vld [vmem:[%s1238_s3 + $0x28] sm:$0xff]  ;;  %v1011_v30 = vld [vmem:[%s1238_s3 + $0x20] sm:$0xff]  ;;  %v1016_v57 = vld [vmem:[%s1241_s6 + $0x18] sm:$0xff] }
  0x14   : > { %399 = vmatpush.bf16.msra.mxu0 %v1000_v4  ;;  %351 = vst [vmem:[#allocation3 + $0x4] sm:$0x1] %v350_v21  ;;  %v1015_v59 = vld [vmem:[%s1241_s6 + $0x10] sm:$0xff]  ;;  %v1024_v61 = vld [vmem:[%s1241_s6 + $0x58] sm:$0xff]  ;;  %v1014_v62 = vld [vmem:[%s1241_s6 + $0x8] sm:$0xff] }
  0x15   : > { %444 = vmatpush.bf16.msra.mxu1 %v1004_v5  ;;  %v1020_v63 = vld [vmem:[%s1241_s6 + $0x38] sm:$0xff]  ;;  %v1023_v0 = vld [vmem:[%s1241_s6 + $0x50] sm:$0xff]  ;;  %v1013_v1 = vld [vmem:[%s1241_s6] sm:$0xff] }
  0x16   : > { %545 = vmatpush.bf16.msra.mxu3 %v1007_v23  ;;  %v1019_v2 = vld [vmem:[%s1241_s6 + $0x30] sm:$0xff]  ;;  %v1022_v3 = vld [vmem:[%s1241_s6 + $0x48] sm:$0xff]  ;;  %v1021_v6 = vld [vmem:[%s1241_s6 + $0x40] sm:$0xff] }
  0x17   : > { %517 = vmatpush.bf16.msra.mxu2 %v1009_v25  ;;  %v1018_v5 = vld [vmem:[%s1241_s6 + $0x28] sm:$0xff]  ;;  %v1033_v8 = vld [vmem:[%s1239_s4] ss:$0 sm:$0xff]  ;;  %vm613_vm13 = vmand %vm612_vm12, %vm338_vm5 }
  0x18   : > { %400 = vmatpush.bf16.msra.mxu0 %v999_v9  ;;  %v1034_v12 = vld [vmem:[%s1240_s5] ss:$0 sm:$0xff]  ;;  %v614_v22 = vld [vmem:[#allocation3] sm:$0xf] }
  0x19   : > { %445 = vmatpush.bf16.msra.mxu1 %v1003_v10  ;;  %v465_v35 = vld [vmem:[#allocation2] sm:$0xf] }
  0x1a   : > { %v468_v36 = vld [vmem:[#allocation2 + $0x4] sm:$0x1]  ;;  %682 = vmatpush.bf16.msrb.mxu3 %v1020_v63 }
  0x1b   : > { %876 = vmatmul.msk.bf16.vlgmr.msra.gmra.mxu0 %vm389_vm0, %v356_v11  ;;  %582 = vmatpush.bf16.msrb.mxu2 %v1012_v26  ;;  %v1017_v10 = vld [vmem:[%s1241_s6 + $0x20] sm:$0xff]  ;;  %v617_v23 = vld [vmem:[#allocation3 + $0x4] sm:$0x1] }
  0x1c   : > { %893 = vmatmul.msk.bf16.vlgmr.msra.gmra.mxu1 %vm389_vm0, %v356_v11  ;;  %722 = vmatpush.bf16.msrb.mxu0 %v1016_v57 }
  0x1d   : > { %776 = vmatpush.bf16.msrb.mxu1 %v1024_v61 }
  0x1e   : > { %683 = vmatpush.bf16.msrb.mxu3 %v1019_v2 }
  0x1f   : > { %583 = vmatpush.bf16.msrb.mxu2 %v1011_v30 }
  0x20   : > { %723 = vmatpush.bf16.msrb.mxu0 %v1015_v59 }
  0x21   : > { %777 = vmatpush.bf16.msrb.mxu1 %v1023_v0 }
  0x22   : > { %684 = vmatpush.bf16.msrb.mxu3 %v1018_v5 }
  0x24   : > { %724 = vmatpush.bf16.msrb.mxu0 %v1014_v62 }
  0x25   : > { %778 = vmatpush.bf16.msrb.mxu1 %v1022_v3 }
  0x26   : > { %685 = vmatpush.bf16.msrb.mxu3 %v1017_v10 }
  0x28   : > { %725 = vmatpush.bf16.msrb.mxu0 %v1013_v1 }
  0x29   : > { %779 = vmatpush.bf16.msrb.mxu1 %v1021_v6 }
  0x98   : > { %v402_v27 = vpop.f32.mrf.mxu0 }
  0x99   : > { %v447_v28 = vpop.f32.mrf.mxu1 }
  0x9a   : > { %v451_v29 = vmax.f32 %v402_v27, %v447_v28 }
  0x9c   : > { %v452_v31 = vpack.c.bf16 %v451_v29, %v451_v29 }
  0x9e   : > { %v454_v32 = vshrl.u32 %v452_v31, 16  ;;  %v457_v34 = vshll.u32 %v452_v31, 16 }
  0xa0   : > { %v456_v33 = vrot.slane %v454_v32, 7  ;;  %v404_v37 = vpop.f32.mrf.mxu0 }
  0xa1   : > { %v449_v38 = vpop.f32.mrf.mxu1 }
  0xa2   : > { %v459_v39 = vor.u32 %v457_v34, %v456_v33  ;;  %v460_v40 = vrot.slane %v456_v33, 4 }
  0xa4   : > { %v466_v41 = vsel %vm464_vm10, %v459_v39, %v465_v35  ;;  %v469_v42 = vsel %vm1135_vm4, %v460_v40, %v468_v36 }
  0xa5   : > { %467 = vst [vmem:[#allocation2] sm:$0xf] %v466_v41 }
  0xa6   : > { %470 = vst [vmem:[#allocation2 + $0x4] sm:$0x1] %v469_v42 }
  0xac   : > { %v471_v43 = vld [vmem:[#allocation2] sm:$0xf] }
  0xad   : > { %v476_v44 = vld [vmem:[#allocation2 + $0x4] sm:$0x1]  ;;  %v484_v45 = vunpack.c.l.b16 %v471_v43  ;;  %915 = vmatmul.msk.bf16.vlgmr.msra.gmra.mxu3 %vm506_vm11, %v471_v43  ;;  %v551_v52 = vld [vmem:[#allocation2] sm:$0xe] }
  0xae   : > { %v485_v46 = vunpack.c.l.b16 %v476_v44  ;;  %v558_v53 = vunpack.c.l.b16 %v551_v52 }
  0xb0   : > { %v486_v47 = vpack.c.b16 %v485_v46, %v484_v45  ;;  %v559_v54 = vpack.c.b16 %v485_v46, %v558_v53  ;;  %v1035_v46 = vld [vmem:[%s1242_s7] ss:$0 sm:$0xff] }
  0xb2   : > { %v490_v48 = vshll.u32 %v486_v47, 16  ;;  %v488_v49 = vshrl.u32 %v486_v47, 16  ;;  %v560_v55 = vrot.slane %v559_v54, 1 }
  0xb4   : > { %v492_v50 = vrot.slane %v490_v48, 1  ;;  %v1036_v48 = vld [vmem:[%s1243_s8] ss:$0 sm:$0xff] }
  0xb6   : > { %v493_v51 = vor.u32 %v492_v50, %v488_v49 }
  0xb8   : > { %906 = vmatmul.msk.bf16.vlgmr.msra.gmra.mxu2 %vm506_vm11, %v493_v51 }
  0xc8   : > { %928 = vmatmul.msk.bf16.vlgmr.msrb.gmra.mxu2 %vm506_vm11, %v560_v55 }
 0x130   : > { %v547_v56 = vpop.f32.mrf.mxu3 }
 0x138   : > { %v549_v58 = vpop.f32.mrf.mxu3 }
 0x13b   : > { %v519_v60 = vpop.f32.mrf.mxu2 }
 0x13c   : > { %v548_v7 = vadd.f32 %v547_v56, %v519_v60 }
 0x143   : > { %v521_v4 = vpop.f32.mrf.mxu2 }
 0x14b   : > { %v585_v9 = vpop.f32.mrf.mxu2 }
 0x14c   : > { %v589_v11 = vadd.f32 %v585_v9, %v548_v7 }
 0x14e   : > { %v594_v13 = vmul.f32 %v1033_v8, %v589_v11 }
 0x150   : > { %v599_v14 = vadd.f32 %v1034_v12, %v594_v13 }
 0x152   : > { %v600_v15 = vmax.f32 %v599_v14, 0.0 }
 0x153   : > { %v587_v16 = vpop.f32.mrf.mxu2 }
 0x154   : > { %v601_v17 = vpack.c.bf16 %v600_v15, %v600_v15 }
 0x156   : > { %v603_v18 = vshrl.u32 %v601_v17, 16  ;;  %v606_v21 = vshll.u32 %v601_v17, 16 }
 0x158   : > { %v605_v20 = vrot.slane %v603_v18, 7 }
 0x15a   : > { %v608_v24 = vor.u32 %v606_v21, %v605_v20  ;;  %v609_v25 = vrot.slane %v605_v20, 4 }
 0x15c   : > { %v615_v26 = vsel %vm613_vm13, %v608_v24, %v614_v22  ;;  %v618_v27 = vsel %vm1142_vm7, %v609_v25, %v617_v23 }
 0x15d   : > { %616 = vst [vmem:[#allocation3] sm:$0xf] %v615_v26 }
 0x15e   : > { %619 = vst [vmem:[#allocation3 + $0x4] sm:$0x1] %v618_v27 }
 0x164   : > { %v620_v28 = vld [vmem:[#allocation3] sm:$0xf] }
 0x165   : > { %v731_v29 = vld [vmem:[#allocation3] sm:$0xe]  ;;  %v629_v30 = vld [vmem:[#allocation3 + $0x4] sm:$0x1]  ;;  %v641_v31 = vunpack.c.l.b16 %v620_v28  ;;  %970 = vmatmul.msk.bf16.vlgmr.msrb.gmra.mxu0 %vm389_vm0, %v620_v28 }
 0x166   : > { %v742_v32 = vunpack.c.l.b16 %v731_v29  ;;  %v642_v33 = vunpack.c.l.b16 %v629_v30 }
 0x168   : > { %v643_v34 = vpack.c.b16 %v642_v33, %v641_v31  ;;  %v743_v35 = vpack.c.b16 %v642_v33, %v742_v32 }
 0x16a   : > { %v647_v36 = vshll.u32 %v643_v34, 16  ;;  %v744_v37 = vrot.slane %v743_v35, 1  ;;  %v645_v38 = vshrl.u32 %v643_v34, 16 }
 0x16c   : > { %v649_v39 = vrot.slane %v647_v36, 1  ;;  %995 = vmatmul.msk.bf16.vlgmr.msrb.gmra.mxu1 %vm389_vm0, %v744_v37 }
 0x16e   : > { %v650_v19 = vor.u32 %v649_v39, %v645_v38 }
 0x170   : > { %953 = vmatmul.msk.bf16.vlgmr.msrb.gmra.mxu3 %vm389_vm0, %v650_v19 }
 0x1e2   : > { %v727_v40 = vpop.f32.mrf.mxu0 }
 0x1e9   : > { %v781_v41 = vpop.f32.mrf.mxu1 }
 0x1ea   : > { %v729_v42 = vpop.f32.mrf.mxu0 }
 0x1f1   : > { %v783_v43 = vpop.f32.mrf.mxu1 }
 0x1f3   : > { %v687_v44 = vpop.f32.mrf.mxu3 }
 0x1f4   : > { %v728_v45 = vadd.f32 %v727_v40, %v687_v44 }
 0x1f6   : > { %v785_v47 = vadd.f32 %v781_v41, %v728_v45 }
 0x1f8   : > { %v790_v49 = vmul.f32 %v1035_v46, %v785_v47 }
 0x1fa   : > { %v795_v50 = vadd.f32 %v1036_v48, %v790_v49 }
 0x1fb   : > { %v689_v51 = vpop.f32.mrf.mxu3 }
 0x1fc   : > { %v796_v52 = vmax.f32 %v795_v50, 0.0 }
 0x1fe   : > { %797 = vst.msk [vmem:[%s330_s21] sm:$0xff] %vm389_vm0, %v796_v52 }
 0x1ff PF: > { %s19_s30 = sadd.s32 1, %s1043_s30  }
 0x200   : > { %p16_p4 = scmp.ge.s32.totalorder %s19_s30, 6  }
 0x202   :  { %18 = sbr.rel (!%p16_p4) target bundleno = 1 (0x1), region = 91 }

// kernel: siamese_unet_forward.11
= control target key start
LH: loop header
LB: loop body
LE: loop exit
PB: predicated region body
PF: predicated region fallthrough
CT: control target
= control target key end

     0   :  { %s988_s30 = smov 0   ;;  %s1095_s0 = inlined_call_operand.vmem [shape: f32[4,8,64], index: 0, kind: input, shape index: {}]   ;;  %s1096_s1 = inlined_call_operand.vmem [shape: bf16[64,32], index: 1, kind: input, shape index: {}]   ;;  %s1097_s2 = inlined_call_operand.vmem [shape: bf16[64,32], index: 2, kind: input, shape index: {}]   ;;  %s1098_s3 = inlined_call_operand.vmem [shape: bf16[3,32,32], index: 3, kind: input, shape index: {}]   ;;  %s1099_s4 = inlined_call_operand.vmem [shape: f32[1,32], index: 4, kind: input, shape index: {}]   ;;  %s1100_s5 = inlined_call_operand.vmem [shape: f32[1,32], index: 5, kind: input, shape index: {}]   ;;  %s1101_s6 = inlined_call_operand.vmem [shape: bf16[3,32,32], index: 6, kind: input, shape index: {}]   ;;  %s1102_s7 = inlined_call_operand.vmem [shape: f32[1,32], index: 7, kind: input, shape index: {}]   ;;  %s1103_s8 = inlined_call_operand.vmem [shape: f32[1,32], index: 8, kind: input, shape index: {}]   ;;  %s1104_s9 = inlined_call_operand.vmem [shape: f32[4,4,32], index: 9, kind: output, shape index: {}]  }
   0x1 LB: > { %s784_s10 = sadd.s32 4294967295, %s936_s30   ;;  %p788_p0 = scmp.ge.s32.totalorder %s936_s30, 1  ;;  %s936_s30 = sphi %s988_s30, %s19_s30  }
   0x2   : > { %p286_p1 = scmp.lt.s32.totalorder %s936_s30, 5 }
   0x4   : > { %p287_p2 = pnand %p788_p0, %p286_p1 }
   0x5   : > { %p320_p3 = scmp.lt.s32.totalorder (!%p287_p2), %s784_s10, 3 }
   0x6   : > { %290 = sbr.rel (%p287_p2) target bundleno = 512 (0x200), region = 56 }
   0xb   : > { %v901_v0 = vld [vmem:[%s1096_s1 + $0x18] sm:$0xff]  ;;  %v900_v2 = vld [vmem:[%s1096_s1 + $0x10] sm:$0xff]  ;;  %s1108_s10 = smov (!%p320_p3, %s784_s10), 3  ;;  %v899_v4 = vld [vmem:[%s1096_s1 + $0x8] sm:$0xff]  ;;  %vm384_vm0 = vcmask 523264   ;;  %vm329_vm1 = vcmask 253952  }
   0xc   : > { %v905_v1 = vld [vmem:[%s1097_s2 + $0x18] sm:$0xff]  ;;  %392 = vmatpush.bf16.msra.mxu0 %v901_v0  ;;  %v904_v3 = vld [vmem:[%s1097_s2 + $0x10] sm:$0xff]  ;;  %s789_s19 = sshll.u32 %s1108_s10, 3  ;;  %v903_v5 = vld [vmem:[%s1097_s2 + $0x8] sm:$0xff]  ;;  %vm330_vm2 = vsmask.f32 256 }
   0xd   : > { %437 = vmatpush.bf16.msra.mxu1 %v905_v1  ;;  %s323_s26 = scalar_lea.vmem %s1095_s0, %s789_s19  ;;  %v898_v9 = vld [vmem:[%s1096_s1] sm:$0xff]  ;;  %vm335_vm3 = vcmask 256002   ;;  %vm331_vm4 = vmand %vm329_vm1, %vm330_vm2  ;;  %vm336_vm5 = vsmask.f32 7946  ;;  %v907_v20 = vld [vmem:[%s1098_s3 + $0x8] sm:$0xff]  ;;  %vm456_vm7 = vcmask 256000  }
   0xe   : > { %v347_v6 = vld [vmem:[%s323_s26] ss:$2 sm:$0xf]  ;;  %v791_v7 = vld [vmem:[%s323_s26 + $0x1] ss:$2 sm:$0xf]  ;;  %vm337_vm6 = vmand %vm335_vm3, %vm336_vm5  ;;  %533 = vmatpush.bf16.msra.mxu3 %v907_v20 }
   0xf   : > { %v350_v8 = vmax.f32 %v347_v6, %v791_v7  ;;  %v902_v10 = vld [vmem:[%s1097_s2] sm:$0xff]  ;;  %v909_v22 = vld [vmem:[%s1098_s3 + $0x18] sm:$0xff]  ;;  %v908_v23 = vld [vmem:[%s1098_s3 + $0x10] sm:$0xff]  ;;  %vm457_vm8 = vsmask.f32 2306  ;;  %vm495_vm10 = vcmask 261120  }
  0x10   : > { %393 = vmatpush.bf16.msra.mxu0 %v900_v2  ;;  %v332_v12 = vld [vmem:[#allocation2] sm:$0x1]  ;;  %v338_v13 = vld [vmem:[#allocation2] sm:$0x4]  ;;  %v341_v14 = vld [vmem:[#allocation3] sm:$0x1]  ;;  %505 = vmatpush.bf16.msra.mxu2 %v909_v22 }
  0x11   : > { %438 = vmatpush.bf16.msra.mxu1 %v904_v3  ;;  %v351_v11 = vpack.c.bf16 %v350_v8, %v350_v8  ;;  %v333_v15 = vsel %vm331_vm4, 0, %v332_v12  ;;  %v342_v16 = vsel %vm331_vm4, 0, %v341_v14  ;;  %v344_v17 = vld [vmem:[#allocation3] sm:$0x4]  ;;  %v339_v18 = vsel %vm337_vm6, 0, %v338_v13  ;;  %v911_v24 = vld [vmem:[%s1098_s3 + $0x28] sm:$0xff]  ;;  %vm1044_vm9 = vmand %vm456_vm7, %vm457_vm8 }
  0x12   : > { %334 = vst [vmem:[#allocation2] sm:$0x1] %v333_v15  ;;  %v345_v19 = vsel %vm337_vm6, 0, %v344_v17  ;;  %v906_v21 = vld [vmem:[%s1098_s3] sm:$0xff]  ;;  %v913_v54 = vld [vmem:[%s1101_s6 + $0x8] sm:$0xff]  ;;  %v915_v55 = vld [vmem:[%s1101_s6 + $0x18] sm:$0xff] }
  0x13   : > { %340 = vst [vmem:[#allocation2] sm:$0x4] %v339_v18  ;;  %534 = vmatpush.bf16.msra.mxu3 %v906_v21  ;;  %v910_v27 = vld [vmem:[%s1098_s3 + $0x20] sm:$0xff]  ;;  %v917_v56 = vld [vmem:[%s1101_s6 + $0x28] sm:$0xff]  ;;  %v914_v59 = vld [vmem:[%s1101_s6 + $0x10] sm:$0xff]  ;;  %s790_s25 = sshll.u32 %s1108_s10, 2 }
  0x14   : > { %394 = vmatpush.bf16.msra.mxu0 %v899_v4  ;;  %343 = vst [vmem:[#allocation3] sm:$0x1] %v342_v16  ;;  %506 = vmatpush.bf16.msra.mxu2 %v908_v23  ;;  %v912_v57 = vld [vmem:[%s1101_s6] sm:$0xff]  ;;  %s327_s28 = scalar_lea.vmem %s1104_s9, %s790_s25  ;;  %vm729_vm11 = vcmask 257024  }
  0x15   : > { %439 = vmatpush.bf16.msra.mxu1 %v903_v5  ;;  %346 = vst [vmem:[#allocation3] sm:$0x4] %v345_v19  ;;  %v916_v60 = vld [vmem:[%s1101_s6 + $0x20] sm:$0xff] }
  0x16   : > { %v926_v62 = vld [vmem:[%s1099_s4] ss:$0 sm:$0xff] }
  0x17   : > { %644 = vmatpush.bf16.msrb.mxu3 %v915_v55  ;;  %v927_v1 = vld [vmem:[%s1100_s5] ss:$0 sm:$0xff] }
  0x18   : > { %395 = vmatpush.bf16.msra.mxu0 %v898_v9  ;;  %571 = vmatpush.bf16.msrb.mxu2 %v911_v24  ;;  %v929_v33 = vld [vmem:[%s1103_s8] ss:$0 sm:$0xff] }
  0x19   : > { %440 = vmatpush.bf16.msra.mxu1 %v902_v10 }
  0x1a   : > { %v459_v34 = vld [vmem:[#allocation2] sm:$0x7] }
  0x1b   : > { %808 = vmatmul.msk.bf16.vlgmr.msra.gmra.mxu0 %vm384_vm0, %v351_v11  ;;  %645 = vmatpush.bf16.msrb.mxu3 %v914_v59 }
  0x1c   : > { %825 = vmatmul.msk.bf16.vlgmr.msra.gmra.mxu1 %vm384_vm0, %v351_v11  ;;  %572 = vmatpush.bf16.msrb.mxu2 %v910_v27  ;;  %v599_v10 = vld [vmem:[#allocation3] sm:$0x7] }
  0x1d   : > { %672 = vmatpush.bf16.msrb.mxu0 %v913_v54  ;;  %710 = vmatpush.bf16.msrb.mxu1 %v917_v56 }
  0x21   : > { %673 = vmatpush.bf16.msrb.mxu0 %v912_v57  ;;  %711 = vmatpush.bf16.msrb.mxu1 %v916_v60 }
  0x98   : > { %v397_v25 = vpop.f32.mrf.mxu0 }
  0x99   : > { %v442_v26 = vpop.f32.mrf.mxu1 }
  0x9a   : > { %v446_v28 = vmax.f32 %v397_v25, %v442_v26 }
  0x9c   : > { %v447_v29 = vpack.c.bf16 %v446_v28, %v446_v28 }
  0x9e   : > { %v449_v30 = vshrl.u32 %v447_v29, 16  ;;  %v452_v32 = vshll.u32 %v447_v29, 16 }
  0xa0   : > { %v451_v31 = vrot.slane %v449_v30, 7  ;;  %v399_v35 = vpop.f32.mrf.mxu0 }
  0xa1   : > { %v444_v36 = vpop.f32.mrf.mxu1 }
  0xa2   : > { %v454_v37 = vor.u32 %v452_v32, %v451_v31  ;;  %v928_v31 = vld [vmem:[%s1102_s7] ss:$0 sm:$0xff] }
  0xa4   : > { %v460_v38 = vsel %vm1044_vm9, %v454_v37, %v459_v34 }
  0xa5   : > { %461 = vst [vmem:[#allocation2] sm:$0x7] %v460_v38 }
  0xac   : > { %v462_v39 = vld [vmem:[#allocation2] sm:$0x3] }
  0xad   : > { %v467_v40 = vld [vmem:[#allocation2] sm:$0x7]  ;;  %847 = vmatmul.msk.bf16.vlgmr.msra.gmra.mxu3 %vm495_vm10, %v462_v39 }
  0xae   : > { %v474_v41 = vunpack.c.l.b16 %v467_v40  ;;  %v540_v47 = vld [vmem:[#allocation2] sm:$0x6] }
  0xaf   : > { %v547_v48 = vunpack.c.l.b16 %v540_v47 }
  0xb0   : > { %v475_v42 = vpack.c.b16 %v474_v41, %v474_v41 }
  0xb1   : > { %v548_v49 = vpack.c.b16 %v547_v48, %v547_v48 }
  0xb2   : > { %v479_v43 = vshll.u32 %v475_v42, 16  ;;  %v477_v44 = vshrl.u32 %v475_v42, 16 }
  0xb3   : > { %v549_v50 = vrot.slane %v548_v49, 1 }
  0xb4   : > { %v481_v45 = vrot.slane %v479_v43, 1 }
  0xb6   : > { %v482_v46 = vor.u32 %v481_v45, %v477_v44 }
  0xb8   : > { %838 = vmatmul.msk.bf16.vlgmr.msra.gmra.mxu2 %vm495_vm10, %v482_v46 }
  0xc8   : > { %860 = vmatmul.msk.bf16.vlgmr.msrb.gmra.mxu2 %vm495_vm10, %v549_v50 }
 0x130   : > { %v536_v51 = vpop.f32.mrf.mxu3 }
 0x138   : > { %v538_v52 = vpop.f32.mrf.mxu3 }
 0x13b   : > { %v508_v53 = vpop.f32.mrf.mxu2 }
 0x13c   : > { %v537_v61 = vadd.f32 %v536_v51, %v508_v53 }
 0x143   : > { %v510_v58 = vpop.f32.mrf.mxu2 }
 0x14b   : > { %v574_v63 = vpop.f32.mrf.mxu2 }
 0x14c   : > { %v578_v0 = vadd.f32 %v574_v63, %v537_v61 }
 0x14e   : > { %v583_v2 = vmul.f32 %v926_v62, %v578_v0 }
 0x150   : > { %v588_v3 = vadd.f32 %v927_v1, %v583_v2 }
 0x152   : > { %v589_v4 = vmax.f32 %v588_v3, 0.0 }
 0x153   : > { %v576_v5 = vpop.f32.mrf.mxu2 }
 0x154   : > { %v590_v6 = vpack.c.bf16 %v589_v4, %v589_v4 }
 0x156   : > { %v592_v7 = vshrl.u32 %v590_v6, 16  ;;  %v595_v9 = vshll.u32 %v590_v6, 16 }
 0x158   : > { %v594_v8 = vrot.slane %v592_v7, 7 }
 0x15a   : > { %v597_v11 = vor.u32 %v595_v9, %v594_v8 }
 0x15c   : > { %v600_v12 = vsel %vm1044_vm9, %v597_v11, %v599_v10 }
 0x15d   : > { %601 = vst [vmem:[#allocation3] sm:$0x7] %v600_v12 }
 0x164   : > { %v602_v13 = vld [vmem:[#allocation3] sm:$0x3] }
 0x165   : > { %v679_v14 = vld [vmem:[#allocation3] sm:$0x6]  ;;  %882 = vmatmul.msk.bf16.vlgmr.msrb.gmra.mxu0 %vm495_vm10, %v602_v13 }
 0x166   : > { %v607_v15 = vld [vmem:[#allocation3] sm:$0x7]  ;;  %v686_v16 = vunpack.c.l.b16 %v679_v14 }
 0x167   : > { %v614_v17 = vunpack.c.l.b16 %v607_v15 }
 0x168   : > { %v687_v18 = vpack.c.b16 %v686_v16, %v686_v16 }
 0x169   : > { %v615_v19 = vpack.c.b16 %v614_v17, %v614_v17 }
 0x16a   : > { %v688_v20 = vrot.slane %v687_v18, 1 }
 0x16b   : > { %v619_v21 = vshll.u32 %v615_v19, 16  ;;  %v617_v22 = vshrl.u32 %v615_v19, 16 }
 0x16c   : > { %895 = vmatmul.msk.bf16.vlgmr.msrb.gmra.mxu1 %vm495_vm10, %v688_v20 }
 0x16d   : > { %v621_v23 = vrot.slane %v619_v21, 1 }
 0x16f   : > { %v622_v24 = vor.u32 %v621_v23, %v617_v22 }
 0x171   : > { %873 = vmatmul.msk.bf16.vlgmr.msrb.gmra.mxu3 %vm495_vm10, %v622_v24 }
 0x1e2   : > { %v675_v25 = vpop.f32.mrf.mxu0 }
 0x1e9   : > { %v713_v26 = vpop.f32.mrf.mxu1 }
 0x1ea   : > { %v677_v27 = vpop.f32.mrf.mxu0 }
 0x1f1   : > { %v715_v28 = vpop.f32.mrf.mxu1 }
 0x1f4   : > { %v647_v29 = vpop.f32.mrf.mxu3 }
 0x1f5   : > { %v676_v30 = vadd.f32 %v675_v25, %v647_v29 }
 0x1f7   : > { %v717_v32 = vadd.f32 %v713_v26, %v676_v30 }
 0x1f9   : > { %v722_v34 = vmul.f32 %v928_v31, %v717_v32 }
 0x1fb   : > { %v727_v35 = vadd.f32 %v929_v33, %v722_v34 }
 0x1fc   : > { %v649_v36 = vpop.f32.mrf.mxu3 }
 0x1fd   : > { %v728_v37 = vmax.f32 %v727_v35, 0.0 }
 0x1ff   : > { %730 = vst.msk [vmem:[%s327_s28] sm:$0xf] %vm729_vm11, %v728_v37 }
 0x200 PF: > { %s19_s30 = sadd.s32 1, %s936_s30  }
 0x201   : > { %p16_p4 = scmp.ge.s32.totalorder %s19_s30, 6  }
 0x203   :  { %18 = sbr.rel (!%p16_p4) target bundleno = 1 (0x1), region = 91 }

// kernel: siamese_unet_forward.9
= control target key start
LH: loop header
LB: loop body
LE: loop exit
PB: predicated region body
PF: predicated region fallthrough
CT: control target
= control target key end

     0   :  { %s1055_s24 = smov 0   ;;  %s1218_s0 = inlined_call_operand.vmem [shape: f32[4,16,64], index: 0, kind: input, shape index: {}]   ;;  %s1219_s1 = inlined_call_operand.vmem [shape: bf16[3,64,64], index: 1, kind: input, shape index: {}]   ;;  %s1220_s2 = inlined_call_operand.vmem [shape: f32[1,64], index: 2, kind: input, shape index: {}]   ;;  %s1221_s3 = inlined_call_operand.vmem [shape: f32[1,64], index: 3, kind: input, shape index: {}]   ;;  %s1222_s4 = inlined_call_operand.vmem [shape: bf16[3,64,64], index: 4, kind: input, shape index: {}]   ;;  %s1223_s5 = inlined_call_operand.vmem [shape: f32[1,64], index: 5, kind: input, shape index: {}]   ;;  %s1224_s6 = inlined_call_operand.vmem [shape: f32[1,64], index: 6, kind: input, shape index: {}]   ;;  %s1225_s7 = inlined_call_operand.vmem [shape: f32[4,16,64], index: 7, kind: output, shape index: {}]  }
   0x1 LB: > { %s810_s25 = sadd.s32 4294967295, %s1013_s24   ;;  %p814_p0 = scmp.ge.s32.totalorder %s1013_s24, 1  ;;  %s1013_s24 = sphi %s1055_s24, %s17_s24  }
   0x2   : > { %p237_p1 = scmp.lt.s32.totalorder %s1013_s24, 5 }
   0x4   : > { %p238_p2 = pnand %p814_p0, %p237_p1 }
   0x5   : > { %p269_p3 = scmp.lt.s32.totalorder (!%p238_p2), %s810_s25, 3 }
   0x6   : > { %241 = sbr.rel (%p238_p2) target bundleno = 370 (0x172), region = 48 }
   0xb   : > { %v960_v0 = vld [vmem:[%s1219_s1 + $0x18] sm:$0xff]  ;;  %vm280_vm0 = vcmask 516096   ;;  %vm281_vm1 = vsmask.f32 256  ;;  %v959_v3 = vld [vmem:[%s1219_s1 + $0x10] sm:$0xff]  ;;  %s1235_s25 = smov (!%p269_p3, %s810_s25), 3 }
   0xc   : > { %v968_v1 = vld [vmem:[%s1219_s1 + $0x58] sm:$0xff]  ;;  %446 = vmatpush.bf16.msra.mxu1 %v960_v0  ;;  %v967_v4 = vld [vmem:[%s1219_s1 + $0x50] sm:$0xff]  ;;  %vm286_vm2 = vsmask.f32 7938  ;;  %vm1084_vm3 = vmand %vm280_vm0, %vm281_vm1  ;;  %s955_s15 = sshll.u32 %s1235_s25, 4  ;;  %vm323_vm6 = vcmask 519168  }
   0xd   : > { %v964_v2 = vld [vmem:[%s1219_s1 + $0x38] sm:$0xff]  ;;  %504 = vmatpush.bf16.msra.mxu2 %v968_v1  ;;  %v963_v5 = vld [vmem:[%s1219_s1 + $0x30] sm:$0xff]  ;;  %v283_v7 = vld [vmem:[#allocation2] sm:$0x1]  ;;  %s273_s22 = scalar_lea.vmem %s1218_s0, %s955_s15  ;;  %vm301_vm5 = vsmask.f32 4368  ;;  %s278_s27 = scalar_lea.vmem %s1225_s7, %s955_s15 }
   0xe   : > { %406 = vmatpush.bf16.msra.mxu0 %v964_v2  ;;  %v284_v8 = vsel %vm1084_vm3, 0, %v283_v7  ;;  %vm1092_vm4 = vmand %vm280_vm0, %vm286_vm2  ;;  %v288_v10 = vld [vmem:[#allocation2 + $0x8] sm:$0x1]  ;;  %v297_v15 = vld [vmem:[%s273_s22] sm:$0xff]  ;;  %vm398_vm9 = vcmask 523264   ;;  %vm469_vm10 = vcmask 1046528  }
   0xf   : > { %v958_v11 = vld [vmem:[%s1219_s1 + $0x8] sm:$0xff]  ;;  %285 = vst [vmem:[#allocation2] sm:$0x1] %v284_v8  ;;  %v289_v13 = vsel %vm1092_vm4, 0, %v288_v10  ;;  %v299_v17 = vpack.c.bf16 %v297_v15, %v297_v15  ;;  %v957_v23 = vld [vmem:[%s1219_s1] sm:$0xff]  ;;  %vm1119_vm7 = vmor %vm281_vm1, %vm301_vm5 }
  0x10   : > { %v966_v12 = vld [vmem:[%s1219_s1 + $0x48] sm:$0xff]  ;;  %447 = vmatpush.bf16.msra.mxu1 %v959_v3  ;;  %290 = vst [vmem:[#allocation2 + $0x8] sm:$0x1] %v289_v13  ;;  %v965_v24 = vld [vmem:[%s1219_s1 + $0x40] sm:$0xff]  ;;  %vm1128_vm8 = vmand %vm323_vm6, %vm286_vm2  ;;  %vm361_vm11 = vsmask.f32 7424 }
  0x11   : > { %505 = vmatpush.bf16.msra.mxu2 %v967_v4  ;;  %v962_v14 = vld [vmem:[%s1219_s1 + $0x28] sm:$0xff]  ;;  %v304_v19 = vshrl.u32 %v299_v17, 16  ;;  %v307_v20 = vshll.u32 %v299_v17, 16  ;;  %v961_v28 = vld [vmem:[%s1219_s1 + $0x20] sm:$0xff]  ;;  %v294_v58 = vld [vmem:[#allocation3 + $0x8] sm:$0x1] }
  0x12   : > { %v298_v16 = vld [vmem:[%s273_s22 + $0x8] sm:$0xff]  ;;  %407 = vmatpush.bf16.msra.mxu0 %v963_v5  ;;  %v295_v59 = vsel %vm1092_vm4, 0, %v294_v58  ;;  %v972_v60 = vld [vmem:[%s1222_s4 + $0x18] sm:$0xff]  ;;  %v971_v61 = vld [vmem:[%s1222_s4 + $0x10] sm:$0xff] }
  0x13   : > { %v300_v18 = vpack.c.bf16 %v298_v16, %v298_v16  ;;  %v306_v26 = vrot.slane %v304_v19, 7  ;;  %v291_v56 = vld [vmem:[#allocation3] sm:$0x1]  ;;  %296 = vst [vmem:[#allocation3 + $0x8] sm:$0x1] %v295_v59  ;;  %v980_v62 = vld [vmem:[%s1222_s4 + $0x58] sm:$0xff] }
  0x14   : > { %448 = vmatpush.bf16.msra.mxu1 %v958_v11  ;;  %v292_v57 = vsel %vm1084_vm3, 0, %v291_v56  ;;  %v970_v63 = vld [vmem:[%s1222_s4 + $0x8] sm:$0xff]  ;;  %v976_v0 = vld [vmem:[%s1222_s4 + $0x38] sm:$0xff]  ;;  %v979_v1 = vld [vmem:[%s1222_s4 + $0x50] sm:$0xff] }
  0x15   : > { %v312_v21 = vshrl.u32 %v300_v18, 16  ;;  %v315_v22 = vshll.u32 %v300_v18, 16  ;;  %506 = vmatpush.bf16.msra.mxu2 %v966_v12  ;;  %v309_v31 = vor.u32 %v307_v20, %v306_v26  ;;  %v310_v32 = vrot.slane %v306_v26, 4  ;;  %293 = vst [vmem:[#allocation3] sm:$0x1] %v292_v57  ;;  %v969_v4 = vld [vmem:[%s1222_s4] sm:$0xff]  ;;  %630 = vmatpush.bf16.msra.mxu3 %v976_v0 }
  0x16   : > { %408 = vmatpush.bf16.msra.mxu0 %v962_v14  ;;  %v325_v30 = vld [vmem:[#allocation2] sm:$0xf]  ;;  %v975_v7 = vld [vmem:[%s1222_s4 + $0x30] sm:$0xff]  ;;  %v978_v12 = vld [vmem:[%s1222_s4 + $0x48] sm:$0xff] }
  0x17   : > { %v314_v27 = vrot.slane %v312_v21, 7  ;;  %v330_v35 = vld [vmem:[#allocation2 + $0x8] sm:$0x1]  ;;  %v326_v37 = vsel %vm1128_vm8, %v309_v31, %v325_v30  ;;  %v1003_v8 = vld [vmem:[%s1220_s2] ss:$0 sm:$0xff] }
  0x18   : > { %449 = vmatpush.bf16.msra.mxu1 %v957_v23  ;;  %327 = vst [vmem:[#allocation2] sm:$0xf] %v326_v37  ;;  %v1004_v11 = vld [vmem:[%s1221_s3] ss:$0 sm:$0xff]  ;;  %v974_v14 = vld [vmem:[%s1222_s4 + $0x28] sm:$0xff] }
  0x19   : > { %v317_v33 = vor.u32 %v315_v22, %v314_v27  ;;  %v319_v34 = vrot.slane %v314_v27, 4  ;;  %507 = vmatpush.bf16.msra.mxu2 %v965_v24  ;;  %631 = vmatpush.bf16.msra.mxu3 %v975_v7  ;;  %v977_v16 = vld [vmem:[%s1222_s4 + $0x40] sm:$0xff] }
  0x1a   : > { %409 = vmatpush.bf16.msra.mxu0 %v961_v28  ;;  %v973_v18 = vld [vmem:[%s1222_s4 + $0x20] sm:$0xff] }
  0x1b   : > { %v318_v36 = vsel %vm1119_vm7, %v310_v32, %v317_v33  ;;  %v331_v38 = vsel %vm1084_vm3, %v319_v34, %v330_v35  ;;  %v1005_v0 = vld [vmem:[%s1223_s5] ss:$0 sm:$0xff] }
  0x1c   : > { %329 = vst.msk [vmem:[#allocation2 + $0x4] sm:$0xf] %vm323_vm6, %v318_v36  ;;  %727 = vmatpush.bf16.msrb.mxu1 %v980_v62  ;;  %v552_v32 = vld [vmem:[#allocation3] sm:$0xf] }
  0x1d   : > { %332 = vst [vmem:[#allocation2 + $0x8] sm:$0x1] %v331_v38  ;;  %632 = vmatpush.bf16.msra.mxu3 %v974_v14 }
  0x1e   : > { %670 = vmatpush.bf16.msrb.mxu0 %v972_v60 }
  0x1f   : > { %v990_v39 = vld [vmem:[#allocation2] sm:$0xe] }
  0x20   : > { %728 = vmatpush.bf16.msrb.mxu1 %v979_v1 }
  0x21   : > { %633 = vmatpush.bf16.msra.mxu3 %v973_v18 }
  0x22   : > { %671 = vmatpush.bf16.msrb.mxu0 %v971_v61 }
  0x23   : > { %v982_v40 = vld [vmem:[#allocation2] sm:$0xff]  }
  0x24   : > { %v989_v41 = vld [vmem:[#allocation2] sm:$0xf0]  ;;  %v365_v42 = vshll.u32 %v982_v40, 16  ;;  %860 = vmatmul.msk.bf16.vlgmr.msra.gmra.mxu1 %vm398_vm9, %v982_v40  ;;  %v343_v43 = vld [vmem:[#allocation2 + $0x8] sm:$0x1]  ;;  %v363_v45 = vshrl.u32 %v982_v40, 16 }
  0x25   : > { %v991_v44 = vor.u32 %v990_v39, %v989_v41  ;;  %v358_v46 = vunpack.c.l.b16 %v343_v43  ;;  %729 = vmatpush.bf16.msrb.mxu1 %v978_v12  ;;  %v556_v40 = vld [vmem:[#allocation3 + $0x8] sm:$0x1] }
  0x26   : > { %v367_v47 = vrot.slane %v365_v42, 1  ;;  %672 = vmatpush.bf16.msrb.mxu0 %v970_v63 }
  0x27   : > { %v360_v48 = vpack.c.b16 %v358_v46, %v358_v46  ;;  %v470_v49 = vrot.slane %v991_v44, 1 }
  0x28   : > { %v368_v50 = vor.u32 %v367_v47, %v363_v45 }
  0x29   : > { %v471_v51 = vrot.slane %v360_v48, 1  ;;  %v370_v52 = vshll.u32 %v360_v48, 16  ;;  %730 = vmatpush.bf16.msrb.mxu1 %v977_v16 }
  0x2a   : > { %673 = vmatpush.bf16.msrb.mxu0 %v969_v4 }
  0x2b   : > { %v472_v53 = vsel %vm469_vm10, %v470_v49, %v471_v51  ;;  %v372_v54 = vrot.slane %v370_v52, 1 }
  0x2c   : > { %885 = vmatmul.msk.bf16.vlgmr.msra.gmra.mxu2 %vm398_vm9, %v472_v53 }
  0x2d   : > { %v373_v55 = vsel %vm361_vm11, %v368_v50, %v372_v54 }
  0x2e   : > { %843 = vmatmul.msk.bf16.vlgmr.msra.gmra.mxu0 %vm398_vm9, %v373_v55 }
  0xa1   : > { %v451_v2 = vpop.f32.mrf.mxu1 }
  0xa9   : > { %v453_v19 = vpop.f32.mrf.mxu1 }
  0xab   : > { %v411_v3 = vpop.f32.mrf.mxu0 }
  0xac   : > { %v452_v5 = vadd.f32 %v451_v2, %v411_v3  ;;  %v1006_v2 = vld [vmem:[%s1224_s6] ss:$0 sm:$0xff] }
  0xaf   : > { %v509_v9 = vpop.f32.mrf.mxu2 }
  0xb0   : > { %v514_v10 = vadd.f32 %v509_v9, %v452_v5 }
  0xb2   : > { %v520_v13 = vmul.f32 %v1003_v8, %v514_v10 }
  0xb3   : > { %v413_v15 = vpop.f32.mrf.mxu0 }
  0xb4   : > { %v526_v17 = vadd.f32 %v1004_v11, %v520_v13  ;;  %v454_v21 = vadd.f32 %v453_v19, %v413_v15 }
  0xb6   : > { %v528_v20 = vmax.f32 %v526_v17, 0.0 }
  0xb7   : > { %v511_v22 = vpop.f32.mrf.mxu2 }
  0xb8   : > { %v530_v23 = vpack.c.bf16 %v528_v20, %v528_v20  ;;  %v515_v24 = vadd.f32 %v511_v22, %v454_v21 }
  0xba   : > { %v533_v26 = vshrl.u32 %v530_v23, 16  ;;  %v521_v27 = vmul.f32 %v1003_v8, %v515_v24  ;;  %v536_v30 = vshll.u32 %v530_v23, 16 }
  0xbc   : > { %v535_v28 = vrot.slane %v533_v26, 7  ;;  %v527_v31 = vadd.f32 %v1004_v11, %v521_v27 }
  0xbe   : > { %v538_v33 = vor.u32 %v536_v30, %v535_v28  ;;  %v529_v34 = vmax.f32 %v527_v31, 0.0  ;;  %v539_v41 = vrot.slane %v535_v28, 4 }
  0xc0   : > { %v553_v35 = vsel %vm1128_vm8, %v538_v33, %v552_v32  ;;  %v531_v36 = vpack.c.bf16 %v529_v34, %v529_v34 }
  0xc1   : > { %554 = vst [vmem:[#allocation3] sm:$0xf] %v553_v35 }
  0xc2   : > { %v541_v37 = vshrl.u32 %v531_v36, 16  ;;  %v544_v39 = vshll.u32 %v531_v36, 16 }
  0xc4   : > { %v543_v38 = vrot.slane %v541_v37, 7 }
  0xc6   : > { %v546_v42 = vor.u32 %v544_v39, %v543_v38  ;;  %v548_v43 = vrot.slane %v543_v38, 4 }
  0xc8   : > { %v547_v44 = vsel %vm1119_vm7, %v539_v41, %v546_v42  ;;  %v557_v45 = vsel %vm1084_vm3, %v548_v43, %v556_v40  ;;  %v993_v49 = vld [vmem:[#allocation3] sm:$0xe] }
  0xc9   : > { %555 = vst.msk [vmem:[#allocation3 + $0x4] sm:$0xf] %vm323_vm6, %v547_v44 }
  0xca   : > { %558 = vst [vmem:[#allocation3 + $0x8] sm:$0x1] %v557_v45 }
  0xd0   : > { %v986_v29 = vld [vmem:[#allocation3] sm:$0xff]  }
  0xd1   : > { %v992_v46 = vld [vmem:[#allocation3] sm:$0xf0]  ;;  %v590_v47 = vshll.u32 %v986_v29, 16  ;;  %927 = vmatmul.msk.bf16.vlgmr.msrb.gmra.mxu0 %vm398_vm9, %v986_v29  ;;  %v569_v48 = vld [vmem:[#allocation3 + $0x8] sm:$0x1]  ;;  %v588_v54 = vshrl.u32 %v986_v29, 16 }
  0xd2   : > { %v584_v50 = vunpack.c.l.b16 %v569_v48  ;;  %v994_v51 = vor.u32 %v993_v49, %v992_v46 }
  0xd3   : > { %v592_v52 = vrot.slane %v590_v47, 1 }
  0xd4   : > { %v586_v53 = vpack.c.b16 %v584_v50, %v584_v50  ;;  %v693_v25 = vrot.slane %v994_v51, 1 }
  0xd5   : > { %v593_v57 = vor.u32 %v592_v52, %v588_v54 }
  0xd6   : > { %v694_v55 = vrot.slane %v586_v53, 1  ;;  %v595_v56 = vshll.u32 %v586_v53, 16 }
  0xd8   : > { %v695_v6 = vsel %vm469_vm10, %v693_v25, %v694_v55  ;;  %v597_v58 = vrot.slane %v595_v56, 1 }
  0xd9   : > { %952 = vmatmul.msk.bf16.vlgmr.msrb.gmra.mxu1 %vm398_vm9, %v695_v6 }
  0xda   : > { %v598_v59 = vsel %vm361_vm11, %v593_v57, %v597_v58 }
  0xdb   : > { %910 = vmatmul.msk.bf16.vlgmr.msra.gmra.mxu3 %vm398_vm9, %v598_v59 }
 0x14e   : > { %v675_v60 = vpop.f32.mrf.mxu0 }
 0x156   : > { %v732_v61 = vpop.f32.mrf.mxu1  ;;  %v677_v5 = vpop.f32.mrf.mxu0 }
 0x15e   : > { %v635_v62 = vpop.f32.mrf.mxu3  ;;  %v734_v10 = vpop.f32.mrf.mxu1 }
 0x15f   : > { %v676_v63 = vadd.f32 %v675_v60, %v635_v62 }
 0x161   : > { %v737_v1 = vadd.f32 %v732_v61, %v676_v63 }
 0x163   : > { %v743_v3 = vmul.f32 %v1005_v0, %v737_v1 }
 0x165   : > { %v749_v4 = vadd.f32 %v1006_v2, %v743_v3 }
 0x166   : > { %v637_v7 = vpop.f32.mrf.mxu3 }
 0x167   : > { %v751_v8 = vmax.f32 %v749_v4, 0.0  ;;  %v678_v9 = vadd.f32 %v677_v5, %v637_v7 }
 0x169   : > { %753 = vst.msk [vmem:[%s278_s27] sm:$0xff] %vm398_vm9, %v751_v8  ;;  %v738_v11 = vadd.f32 %v734_v10, %v678_v9 }
 0x16b   : > { %v744_v12 = vmul.f32 %v1005_v0, %v738_v11 }
 0x16d   : > { %v750_v13 = vadd.f32 %v1006_v2, %v744_v12 }
 0x16f   : > { %v752_v14 = vmax.f32 %v750_v13, 0.0 }
 0x171   : > { %754 = vst.msk [vmem:[%s278_s27 + $0x8] sm:$0xff] %vm398_vm9, %v752_v14 }
 0x172 PF: > { %s17_s24 = sadd.s32 1, %s1013_s24  }
 0x173   : > { %p14_p4 = scmp.ge.s32.totalorder %s17_s24, 6  }
 0x175   :  { %16 = sbr.rel (!%p14_p4) target bundleno = 1 (0x1), region = 82 }

// kernel: siamese_unet_forward.12
= control target key start
LH: loop header
LB: loop body
LE: loop exit
PB: predicated region body
PF: predicated region fallthrough
CT: control target
= control target key end

     0   :  { %s1587_s25 = smov 0   ;;  %s1795_s0 = inlined_call_operand.vmem [shape: f32[4,4,32], index: 0, kind: input, shape index: {}, may-alias: {0,1}]   ;;  %s1796_s1 = inlined_call_operand.vmem [shape: f32[4,4,32], index: 1, kind: input, shape index: {}, may-alias: {0,1}]   ;;  %s1797_s2 = inlined_call_operand.vmem [shape: f32[4,8,64], index: 2, kind: input, shape index: {}, may-alias: {2,3}]   ;;  %s1798_s3 = inlined_call_operand.vmem [shape: f32[4,8,64], index: 3, kind: input, shape index: {}, may-alias: {2,3}]   ;;  %s1799_s4 = inlined_call_operand.vmem [shape: bf16[2,32,64], index: 4, kind: input, shape index: {}]   ;;  %s1800_s5 = inlined_call_operand.vmem [shape: f32[1,64], index: 5, kind: input, shape index: {}]   ;;  %s1801_s6 = inlined_call_operand.vmem [shape: bf16[3,64,32], index: 6, kind: input, shape index: {}]   ;;  %s1802_s7 = inlined_call_operand.vmem [shape: bf16[3,64,32], index: 7, kind: input, shape index: {}]   ;;  %s1803_s8 = inlined_call_operand.vmem [shape: f32[1,32], index: 8, kind: input, shape index: {}]   ;;  %s1804_s9 = inlined_call_operand.vmem [shape: f32[1,32], index: 9, kind: input, shape index: {}]   ;;  %s1805_s10 = inlined_call_operand.vmem [shape: bf16[3,32,32], index: 10, kind: input, shape index: {}]   ;;  %s1806_s11 = inlined_call_operand.vmem [shape: f32[1,32], index: 11, kind: input, shape index: {}]   ;;  %s1807_s12 = inlined_call_operand.vmem [shape: f32[1,32], index: 12, kind: input, shape index: {}]   ;;  %s1808_s13 = inlined_call_operand.vmem [shape: f32[2,8,32], index: 13, kind: output, shape index: {}]  }
   0x1 LB: > { %s1593_s26 = sadd.s32 4294967295, %s1515_s25   ;;  %p1263_p0 = scmp.ge.s32.totalorder %s1515_s25, 1  ;;  %s1515_s25 = sphi %s1587_s25, %s23_s25  }
   0x2   : > { %p421_p1 = scmp.lt.s32.totalorder %s1515_s25, 3 }
   0x4   : > { %p422_p2 = pnand %p1263_p0, %p421_p1 }
   0x5   : > { %s477_s14 = sadd.s32 (!%p422_p2), 2, %s1593_s26  ;;  %p483_p3 = scmp.lt.s32.totalorder (!%p422_p2), %s1593_s26, 3 }
   0x6   : > { %425 = sbr.rel (%p422_p2) target bundleno = 505 (0x1f9), region = 72  ;;  %p478_p4 = scmp.lt.s32.totalorder (!%p422_p2), %s477_s14, 3 }
   0x7   : > { %p497_p5 = scmp.lt.s32.totalorder (!%p422_p2), %s1593_s26, 1 }
   0xb   : > { %v1463_v0 = vld [vmem:[%s1799_s4 + $0x8] sm:$0xff]  ;;  %v1465_v1 = vld [vmem:[%s1799_s4 + $0x18] sm:$0xff]  ;;  %vm508_vm0 = vcmask 516096   ;;  %v1462_v2 = vld [vmem:[%s1799_s4] sm:$0xff]  ;;  %vm509_vm1 = vsmask.f32 256 }
   0xc   : > { %v511_v3 = vld [vmem:[#allocation2] sm:$0x1]  ;;  %584 = vmatpush.bf16.msra.mxu0 %v1463_v0  ;;  %614 = vmatpush.bf16.msra.mxu1 %v1465_v1  ;;  %v1464_v4 = vld [vmem:[%s1799_s4 + $0x10] sm:$0xff]  ;;  %s484_s19 = scalar_select %p483_p3, %s1593_s26, 3  ;;  %vm1613_vm2 = vmand %vm508_vm0, %vm509_vm1  ;;  %vm514_vm3 = vsmask.f32 7938 }
   0xd   : > { %v516_v6 = vld [vmem:[#allocation2 + $0x4] sm:$0x1]  ;;  %s1818_s14 = smov (!%p478_p4, %s477_s14), 3  ;;  %v512_v7 = vsel %vm1613_vm2, 0, %v511_v3  ;;  %vm1620_vm4 = vmand %vm508_vm0, %vm514_vm3  ;;  %v519_v9 = vld [vmem:[#allocation3] sm:$0x1] }
   0xe   : > { %v522_v10 = vld [vmem:[#allocation3 + $0x4] sm:$0x1]  ;;  %s1265_s20 = sshll.u32 %s484_s19, 2  ;;  %s1267_s21 = sshll.u32 %s484_s19, 3  ;;  %513 = vst [vmem:[#allocation2] sm:$0x1] %v512_v7 }
   0xf   : > { %v517_v11 = vsel %vm1620_vm4, 0, %v516_v6  ;;  %v520_v12 = vsel %vm1613_vm2, 0, %v519_v9  ;;  %s1264_s22 = sshll.u32 %s1818_s14, 2  ;;  %s486_s27 = scalar_lea.vmem %s1796_s1, %s1265_s20  ;;  %v523_v13 = vsel %vm1620_vm4, 0, %v522_v10  ;;  %vm574_vm5 = vcmask 261120   ;;  %v1469_v32 = vld [vmem:[%s1801_s6 + $0x18] sm:$0xff] }
  0x10   : > { %518 = vst [vmem:[#allocation2 + $0x4] sm:$0x1] %v517_v11  ;;  %585 = vmatpush.bf16.msra.mxu0 %v1462_v2  ;;  %615 = vmatpush.bf16.msra.mxu1 %v1464_v4  ;;  %s481_s30 = scalar_lea.vmem %s1795_s0, %s1264_s22  ;;  %s1266_s15 = sshll.u32 %s1818_s14, 3  ;;  %v503_v14 = vld [vmem:[%s486_s27] sm:$0xf]  ;;  %vm545_vm6 = vcmask 519168  }
  0x11   : > { %521 = vst [vmem:[#allocation3] sm:$0x1] %v520_v12  ;;  %s491_s18 = scalar_lea.vmem %s1797_s2, %s1266_s15  ;;  %s496_s20 = scalar_lea.vmem %s1798_s3, %s1267_s21  ;;  %v502_v15 = vld [vmem:[%s481_s30] sm:$0xf]  ;;  %vm1645_vm7 = vmand %vm545_vm6, %vm514_vm3  ;;  %765 = vmatpush.bf16.msra.mxu3 %v1469_v32  ;;  %v1468_v33 = vld [vmem:[%s1801_s6 + $0x10] sm:$0xff]  ;;  %vm717_vm8 = vcmask 523264  }
  0x12   : > { %524 = vst [vmem:[#allocation3 + $0x4] sm:$0x1] %v523_v13  ;;  %v504_v16 = vsub.f32 %v502_v15, %v503_v14  ;;  %v505_v17 = vld [vmem:[%s491_s18] sm:$0xff]  ;;  %v1473_v34 = vld [vmem:[%s1802_s7 + $0x18] sm:$0xff]  ;;  %v1467_v35 = vld [vmem:[%s1801_s6 + $0x8] sm:$0xff]  ;;  %vm640_vm9 = vcmask 1040384  }
  0x13   : > { %v506_v18 = vld [vmem:[%s496_s20] sm:$0xff]  ;;  %v1472_v36 = vld [vmem:[%s1802_s7 + $0x10] sm:$0xff]  ;;  %725 = vmatpush.bf16.msra.mxu2 %v1473_v34  ;;  %v1481_v38 = vld [vmem:[%s1802_s7 + $0x38] sm:$0xff]  ;;  %vm525_vm10 = vcmask 253952   ;;  %vm1032_vm13 = vcmask 257024   ;;  %s1820_s26 = smov (!%p497_p5, %s1593_s26), 1 }
  0x14   : > { %v507_v19 = vsub.f32 %v505_v17, %v506_v18  ;;  %v553_v20 = vpack.c.bf16 %v504_v16, %v504_v16  ;;  %v1466_v37 = vld [vmem:[%s1801_s6] sm:$0xff]  ;;  %v1477_v39 = vld [vmem:[%s1801_s6 + $0x38] sm:$0xff]  ;;  %839 = vmatpush.bf16.msrb.mxu0 %v1481_v38  ;;  %v1480_v41 = vld [vmem:[%s1802_s7 + $0x30] sm:$0xff]  ;;  %s1268_s17 = sshll.u32 %s1820_s26, 3 }
  0x15   : > { %v547_v26 = vld [vmem:[#allocation2] sm:$0xf]  ;;  %766 = vmatpush.bf16.msra.mxu3 %v1468_v33  ;;  %v1485_v40 = vld [vmem:[%s1801_s6 + $0x58] sm:$0xff]  ;;  %891 = vmatpush.bf16.msrb.mxu1 %v1477_v39  ;;  %v1476_v42 = vld [vmem:[%s1801_s6 + $0x30] sm:$0xff]  ;;  %s500_s23 = scalar_lea.vmem %s1808_s13, %s1268_s17 }
  0x16   : > { %v534_v21 = vpack.c.bf16 %v507_v19, %v507_v19  ;;  %1277 = vmatmul.msk.bf16.vlgmr.msra.gmra.mxu0 %vm574_vm5, %v553_v20  ;;  %1290 = vmatmul.msk.bf16.vlgmr.msra.gmra.mxu1 %vm574_vm5, %v553_v20  ;;  %v1471_v44 = vld [vmem:[%s1802_s7 + $0x8] sm:$0xff]  ;;  %v1484_v45 = vld [vmem:[%s1801_s6 + $0x50] sm:$0xff]  ;;  %v1470_v46 = vld [vmem:[%s1802_s7] sm:$0xff] }
  0x17   : > { %v550_v27 = vld [vmem:[#allocation2 + $0x4] sm:$0x1]  ;;  %726 = vmatpush.bf16.msra.mxu2 %v1472_v36  ;;  %v1504_v47 = vld [vmem:[%s1800_s5] ss:$0 sm:$0xff]  ;;  %v1489_v52 = vld [vmem:[%s1802_s7 + $0x58] sm:$0xff] }
  0x18   : > { %v536_v22 = vshrl.u32 %v534_v21, 16  ;;  %v539_v23 = vshll.u32 %v534_v21, 16  ;;  %840 = vmatpush.bf16.msrb.mxu0 %v1480_v41  ;;  %v1483_v53 = vld [vmem:[%s1801_s6 + $0x48] sm:$0xff]  ;;  %v1488_v0 = vld [vmem:[%s1802_s7 + $0x50] sm:$0xff]  ;;  %v1482_v1 = vld [vmem:[%s1801_s6 + $0x40] sm:$0xff] }
  0x19   : > { %767 = vmatpush.bf16.msra.mxu3 %v1467_v35  ;;  %892 = vmatpush.bf16.msrb.mxu1 %v1476_v42  ;;  %v1479_v58 = vld [vmem:[%s1802_s7 + $0x28] sm:$0xff]  ;;  %v1478_v3 = vld [vmem:[%s1802_s7 + $0x20] sm:$0xff]  ;;  %v669_v34 = vld [vmem:[#allocation3] sm:$0xf] }
  0x1a   : > { %v538_v24 = vrot.slane %v536_v22, 7  ;;  %v1475_v59 = vld [vmem:[%s1801_s6 + $0x28] sm:$0xff]  ;;  %v1474_v4 = vld [vmem:[%s1801_s6 + $0x20] sm:$0xff]  ;;  %v672_v35 = vld [vmem:[#allocation3 + $0x4] sm:$0x1] }
  0x1b   : > { %727 = vmatpush.bf16.msra.mxu2 %v1471_v44  ;;  %v1487_v19 = vld [vmem:[%s1802_s7 + $0x48] sm:$0xff]  ;;  %vm1743_vm11 = vmand %vm525_vm10, %vm509_vm1 }
  0x1c   : > { %v541_v28 = vor.u32 %v539_v23, %v538_v24  ;;  %v542_v29 = vrot.slane %v538_v24, 4  ;;  %841 = vmatpush.bf16.msrb.mxu0 %v1479_v58  ;;  %vm530_vm12 = vmand %vm525_vm10, %vm514_vm3 }
  0x1d   : > { %768 = vmatpush.bf16.msra.mxu3 %v1466_v37  ;;  %893 = vmatpush.bf16.msrb.mxu1 %v1475_v59  ;;  %vm1033_vm14 = vmand %vm1032_vm13, %vm514_vm3 }
  0x1e   : > { %v548_v30 = vsel %vm1645_vm7, %v541_v28, %v547_v26  ;;  %v551_v31 = vsel %vm1613_vm2, %v542_v29, %v550_v27  ;;  %v1486_v27 = vld [vmem:[%s1802_s7 + $0x40] sm:$0xff] }
  0x1f   : > { %549 = vst [vmem:[#allocation2] sm:$0xf] %v548_v30  ;;  %728 = vmatpush.bf16.msra.mxu2 %v1470_v46 }
  0x20   : > { %552 = vst [vmem:[#allocation2 + $0x4] sm:$0x1] %v551_v31  ;;  %842 = vmatpush.bf16.msrb.mxu0 %v1478_v3  ;;  %v1493_v3 = vld [vmem:[%s1805_s10 + $0x18] sm:$0xff] }
  0x21   : > { %1000 = vmatpush.bf16.msrb.mxu3 %v1485_v40  ;;  %894 = vmatpush.bf16.msrb.mxu1 %v1474_v4  ;;  %v1490_v4 = vld [vmem:[%s1805_s10] sm:$0xff] }
  0x23   : > { %956 = vmatpush.bf16.msrb.mxu2 %v1489_v52 }
  0x24   : > { %1084 = vmatpush.bf16.msra.mxu0 %v1493_v3 }
  0x25   : > { %1001 = vmatpush.bf16.msrb.mxu3 %v1484_v45 }
  0x26   : > { %v675_v43 = vld [vmem:[#allocation2] sm:$0xf] }
  0x27   : > { %1324 = vmatmul.msk.bf16.vlgmr.msra.gmra.mxu3 %vm717_vm8, %v675_v43  ;;  %v775_v54 = vld [vmem:[#allocation2 + $0x4] sm:$0x1]  ;;  %v901_v7 = vld [vmem:[#allocation2] sm:$0xe]  ;;  %957 = vmatpush.bf16.msrb.mxu2 %v1488_v0 }
  0x28   : > { %v851_v6 = vunpack.c.l.b16 %v775_v54  ;;  %v966_v11 = vunpack.c.l.b16 %v901_v7  ;;  %v774_v12 = vld [vmem:[#allocation2] sm:$0xf] }
  0x29   : > { %1002 = vmatpush.bf16.msrb.mxu3 %v1483_v53  ;;  %v850_v14 = vunpack.c.l.b16 %v774_v12  ;;  %v1491_v0 = vld [vmem:[%s1805_s10 + $0x8] sm:$0xff] }
  0x2a   : > { %v967_v20 = vpack.c.b16 %v851_v6, %v966_v11  ;;  %1112 = vmatpush.bf16.msra.mxu1 %v1491_v0 }
  0x2b   : > { %v852_v21 = vpack.c.b16 %v851_v6, %v850_v14  ;;  %958 = vmatpush.bf16.msrb.mxu2 %v1487_v19  ;;  %v1494_v6 = vld [vmem:[%s1805_s10 + $0x20] sm:$0xff] }
  0x2c   : > { %v968_v22 = vrot.slane %v967_v20, 1  ;;  %v1505_v14 = vld [vmem:[%s1803_s8] ss:$0 sm:$0xff] }
  0x2d   : > { %1003 = vmatpush.bf16.msrb.mxu3 %v1482_v1  ;;  %v854_v23 = vshrl.u32 %v852_v21, 16  ;;  %v856_v24 = vshll.u32 %v852_v21, 16 }
  0x2e   : > { %1113 = vmatpush.bf16.msra.mxu1 %v1490_v4 }
  0x2f   : > { %v858_v26 = vrot.slane %v856_v24, 1  ;;  %959 = vmatpush.bf16.msrb.mxu2 %v1486_v27 }
  0x31   : > { %v859_v28 = vor.u32 %v858_v26, %v854_v23 }
  0x33   : > { %1374 = vmatmul.msk.bf16.vlgmr.msrb.gmra.mxu1 %vm717_vm8, %v859_v28 }
  0x37   : > { %1424 = vmatmul.msk.bf16.vlgmr.msrb.gmra.mxu3 %vm717_vm8, %v968_v22 }
  0x93   : > { %v587_v48 = vpop.f32.mrf.mxu0  ;;  %v617_v49 = vpop.f32.mrf.mxu1 }
  0x94   : > { %v588_v50 = vadd.f32 %v1504_v47, %v587_v48  ;;  %v618_v51 = vadd.f32 %v1504_v47, %v617_v49 }
  0x96   : > { %v622_v55 = vrot.slane %v588_v50, 1  ;;  %v623_v56 = vrot.slane %v588_v50, 2  ;;  %v629_v57 = vrot.slane %v618_v51, 1  ;;  %v624_v60 = vrot.slane %v588_v50, 3 }
  0x97   : > { %v630_v61 = vrot.slane %v618_v51, 2  ;;  %v631_v62 = vrot.slane %v618_v51, 3  ;;  %v632_v63 = vperm.slane %v618_v51, 0 }
  0x98   : > { %v633_v2 = vperm.slane %v629_v57, 0  ;;  %v531_v57 = vld [vmem:[#allocation4 + $0x4] sm:$0x1] }
  0x99   : > { %v634_v8 = vperm.slane %v630_v61, 0  ;;  %v635_v9 = vperm.slane %v631_v62, 0  ;;  %v641_v10 = vsel %vm640_vm9, %v588_v50, %v632_v63  ;;  %v532_v61 = vsel %vm530_vm12, 0, %v531_v57 }
  0x9a   : > { %v642_v13 = vsel %vm640_vm9, %v622_v55, %v633_v2  ;;  %649 = vst [vmem:[#allocation1] ss:$4 sm:$0xff] %v641_v10  ;;  %v1495_v2 = vld [vmem:[%s1805_s10 + $0x28] sm:$0xff] }
  0x9b   : > { %v643_v15 = vsel %vm640_vm9, %v623_v56, %v634_v8  ;;  %v644_v16 = vsel %vm640_vm9, %v624_v60, %v635_v9  ;;  %651 = vst [vmem:[#allocation1 + $0x1] ss:$4 sm:$0xff] %v642_v13  ;;  %v589_v17 = vpop.f32.mrf.mxu0  ;;  %v619_v18 = vpop.f32.mrf.mxu1  ;;  %v527_v56 = vld [vmem:[#allocation4] sm:$0x1] }
  0x9c   : > { %653 = vst [vmem:[#allocation1 + $0x2] ss:$4 sm:$0xff] %v643_v15  ;;  %v528_v59 = vsel %vm1743_vm11, 0, %v527_v56  ;;  %v1492_v15 = vld [vmem:[%s1805_s10 + $0x10] sm:$0xff]  ;;  %v1506_v17 = vld [vmem:[%s1804_s9] ss:$0 sm:$0xff] }
  0x9d   : > { %655 = vst [vmem:[#allocation1 + $0x3] ss:$4 sm:$0xff] %v644_v16  ;;  %1085 = vmatpush.bf16.msra.mxu0 %v1492_v15 }
  0x9e   : > { %529 = vst [vmem:[#allocation4] sm:$0x1] %v528_v59 }
  0x9f   : > { %533 = vst [vmem:[#allocation4 + $0x4] sm:$0x1] %v532_v61 }
  0xa4   : > { %v656_v29 = vld.sshfl [vmem:[#allocation1] sm:$0xff pattern:$0x73625140] }
  0xa5   : > { %v658_v30 = vpack.c.bf16 %v656_v29, %v656_v29  ;;  %v1034_v27 = vld [vmem:[#allocation4] sm:$0xf] }
  0xa6   : > { %v1037_v28 = vld [vmem:[#allocation4 + $0x4] sm:$0x1] }
  0xa7   : > { %v660_v31 = vshrl.u32 %v658_v30, 16  ;;  %v663_v33 = vshll.u32 %v658_v30, 16 }
  0xa9   : > { %v662_v32 = vrot.slane %v660_v31, 7 }
  0xaa   : > { %v770_v52 = vpop.f32.mrf.mxu3 }
  0xab   : > { %v665_v36 = vor.u32 %v663_v33, %v662_v32  ;;  %v666_v37 = vrot.slane %v662_v32, 4 }
  0xad   : > { %v670_v38 = vsel %vm1645_vm7, %v665_v36, %v669_v34  ;;  %v673_v39 = vsel %vm1613_vm2, %v666_v37, %v672_v35 }
  0xae   : > { %671 = vst [vmem:[#allocation3] sm:$0xf] %v670_v38 }
  0xaf   : > { %674 = vst [vmem:[#allocation3 + $0x4] sm:$0x1] %v673_v39 }
  0xb0   : > { %v896_v54 = vpop.f32.mrf.mxu1 }
  0xb2   : > { %v772_v53 = vpop.f32.mrf.mxu3 }
  0xb5   : > { %v684_v40 = vld [vmem:[#allocation3] sm:$0xf] }
  0xb6   : > { %v785_v41 = vld [vmem:[#allocation3] sm:$0xf]  ;;  %1307 = vmatmul.msk.bf16.vlgmr.msra.gmra.mxu2 %vm717_vm8, %v684_v40  ;;  %v786_v42 = vld [vmem:[#allocation3 + $0x4] sm:$0x1] }
  0xb7   : > { %v798_v43 = vunpack.c.l.b16 %v785_v41  ;;  %v799_v44 = vunpack.c.l.b16 %v786_v42  ;;  %v911_v46 = vld [vmem:[#allocation3] sm:$0xe]  ;;  %1150 = vmatpush.bf16.msra.mxu2 %v1495_v2 }
  0xb8   : > { %v922_v48 = vunpack.c.l.b16 %v911_v46  ;;  %v898_v60 = vpop.f32.mrf.mxu1 }
  0xb9   : > { %v800_v45 = vpack.c.b16 %v799_v44, %v798_v43 }
  0xba   : > { %v923_v51 = vpack.c.b16 %v799_v44, %v922_v48  ;;  %v1005_v55 = vpop.f32.mrf.mxu3 }
  0xbb   : > { %v804_v47 = vshll.u32 %v800_v45, 16  ;;  %v802_v49 = vshrl.u32 %v800_v45, 16  ;;  %1151 = vmatpush.bf16.msra.mxu2 %v1494_v6 }
  0xbc   : > { %v924_v5 = vrot.slane %v923_v51, 1 }
  0xbd   : > { %v806_v50 = vrot.slane %v804_v47, 1 }
  0xbf   : > { %v807_v25 = vor.u32 %v806_v50, %v802_v49  ;;  %v1507_v50 = vld [vmem:[%s1806_s11] ss:$0 sm:$0xff] }
  0xc1   : > { %1357 = vmatmul.msk.bf16.vlgmr.msrb.gmra.mxu0 %vm717_vm8, %v807_v25 }
  0xc2   : > { %v1007_v62 = vpop.f32.mrf.mxu3 }
  0xc6   : > { %1407 = vmatmul.msk.bf16.vlgmr.msrb.gmra.mxu2 %vm717_vm8, %v924_v5  ;;  %v1508_v5 = vld [vmem:[%s1807_s12] ss:$0 sm:$0xff] }
 0x139   : > { %v730_v63 = vpop.f32.mrf.mxu2 }
 0x13a   : > { %v771_v10 = vadd.f32 %v770_v52, %v730_v63 }
 0x13e   : > { %v844_v1 = vpop.f32.mrf.mxu0 }
 0x13f   : > { %v897_v8 = vadd.f32 %v896_v54, %v844_v1 }
 0x141   : > { %v732_v7 = vpop.f32.mrf.mxu2  ;;  %v900_v12 = vadd.f32 %v897_v8, %v771_v10 }
 0x146   : > { %v846_v9 = vpop.f32.mrf.mxu0 }
 0x149   : > { %v961_v11 = vpop.f32.mrf.mxu2 }
 0x14a   : > { %v1006_v13 = vadd.f32 %v1005_v55, %v961_v11 }
 0x14c   : > { %v1009_v16 = vadd.f32 %v1006_v13, %v900_v12 }
 0x14e   : > { %v1014_v18 = vmul.f32 %v1505_v14, %v1009_v16 }
 0x150   : > { %v1019_v19 = vadd.f32 %v1506_v17, %v1014_v18 }
 0x151   : > { %v963_v20 = vpop.f32.mrf.mxu2 }
 0x152   : > { %v1020_v21 = vmax.f32 %v1019_v19, 0.0 }
 0x154   : > { %v1021_v22 = vpack.c.bf16 %v1020_v21, %v1020_v21 }
 0x156   : > { %v1023_v23 = vshrl.u32 %v1021_v22, 16  ;;  %v1026_v26 = vshll.u32 %v1021_v22, 16 }
 0x158   : > { %v1025_v24 = vrot.slane %v1023_v23, 7 }
 0x15a   : > { %v1028_v29 = vor.u32 %v1026_v26, %v1025_v24  ;;  %v1029_v30 = vrot.slane %v1025_v24, 4 }
 0x15c   : > { %v1035_v31 = vsel %vm1033_vm14, %v1028_v29, %v1034_v27  ;;  %v1038_v32 = vsel %vm1743_vm11, %v1029_v30, %v1037_v28 }
 0x15d   : > { %1036 = vst [vmem:[#allocation4] sm:$0xf] %v1035_v31 }
 0x15e   : > { %1039 = vst [vmem:[#allocation4 + $0x4] sm:$0x1] %v1038_v32 }
 0x164   : > { %v1040_v33 = vld [vmem:[#allocation4] sm:$0xf] }
 0x165   : > { %v1119_v34 = vld [vmem:[#allocation4] sm:$0xe]  ;;  %v1045_v35 = vld [vmem:[#allocation4 + $0x4] sm:$0x1]  ;;  %v1053_v36 = vunpack.c.l.b16 %v1040_v33  ;;  %1446 = vmatmul.msk.bf16.vlgmr.msra.gmra.mxu1 %vm574_vm5, %v1040_v33 }
 0x166   : > { %v1126_v37 = vunpack.c.l.b16 %v1119_v34  ;;  %v1054_v38 = vunpack.c.l.b16 %v1045_v35 }
 0x168   : > { %v1055_v39 = vpack.c.b16 %v1054_v38, %v1053_v36  ;;  %v1127_v40 = vpack.c.b16 %v1054_v38, %v1126_v37 }
 0x16a   : > { %v1059_v41 = vshll.u32 %v1055_v39, 16  ;;  %v1128_v42 = vrot.slane %v1127_v40, 1  ;;  %v1057_v43 = vshrl.u32 %v1055_v39, 16 }
 0x16c   : > { %v1061_v44 = vrot.slane %v1059_v41, 1  ;;  %1459 = vmatmul.msk.bf16.vlgmr.msra.gmra.mxu2 %vm574_vm5, %v1128_v42 }
 0x16e   : > { %v1062_v45 = vor.u32 %v1061_v44, %v1057_v43 }
 0x170   : > { %1437 = vmatmul.msk.bf16.vlgmr.msra.gmra.mxu0 %vm574_vm5, %v1062_v45 }
 0x1e2   : > { %v1115_v46 = vpop.f32.mrf.mxu1 }
 0x1ea   : > { %v1117_v47 = vpop.f32.mrf.mxu1 }
 0x1ed   : > { %v1087_v48 = vpop.f32.mrf.mxu0 }
 0x1ee   : > { %v1116_v49 = vadd.f32 %v1115_v46, %v1087_v48 }
 0x1ef   : > { %v1153_v25 = vpop.f32.mrf.mxu2 }
 0x1f0   : > { %v1157_v51 = vadd.f32 %v1153_v25, %v1116_v49 }
 0x1f2   : > { %v1162_v52 = vmul.f32 %v1507_v50, %v1157_v51 }
 0x1f4   : > { %v1167_v53 = vadd.f32 %v1508_v5, %v1162_v52 }
 0x1f5   : > { %v1089_v54 = vpop.f32.mrf.mxu0 }
 0x1f6   : > { %v1168_v55 = vmax.f32 %v1167_v53, 0.0 }
 0x1f7   : > { %v1155_v56 = vpop.f32.mrf.mxu2 }
 0x1f8   : > { %1169 = vst.msk [vmem:[%s500_s23] sm:$0xff] %vm574_vm5, %v1168_v55 }
 0x1f9 PF: > { %s23_s25 = sadd.s32 1, %s1515_s25  }
 0x1fa   : > { %p20_p6 = scmp.ge.s32.totalorder %s23_s25, 4  }
 0x1fc   :  { %22 = sbr.rel (!%p20_p6) target bundleno = 1 (0x1), region = 121 }

// kernel: siamese_unet_forward.14
= control target key start
LH: loop header
LB: loop body
LE: loop exit
PB: predicated region body
PF: predicated region fallthrough
CT: control target
= control target key end

     0   :  { %s333_s12 = smov 0   ;;  %s377_s0 = inlined_call_operand.vmem [shape: f32[2,16,64], index: 0, kind: input, shape index: {}]   ;;  %s378_s1 = inlined_call_operand.vmem [shape: f32[64,32], index: 1, kind: input, shape index: {}]   ;;  %s379_s2 = inlined_call_operand.vmem [shape: f32[1,32], index: 2, kind: input, shape index: {}]   ;;  %s380_s3 = inlined_call_operand.vmem [shape: f32[2,16,32], index: 3, kind: output, shape index: {}]  }
   0x1 LB: > { %s273_s13 = sadd.s32 4294967295, %s311_s12   ;;  %p277_p0 = scmp.ge.s32.totalorder %s311_s12, 1  ;;  %s311_s12 = sphi %s333_s12, %s13_s12  }
   0x2   : > { %p137_p1 = scmp.lt.s32.totalorder %s311_s12, 3 }
   0x4   : > { %p138_p2 = pnand %p277_p0, %p137_p1 }
   0x5   : > { %p161_p3 = scmp.lt.s32.totalorder (!%p138_p2), %s273_s13, 1 }
   0x6   : > { %141 = sbr.rel (%p138_p2) target bundleno = 157 (0x9d), region = 32 }
   0xb   : > { %v180_v0 = vld [vmem:[%s378_s1 + $0x38] sm:$0xff]  ;;  %v179_v1 = vld [vmem:[%s378_s1 + $0x30] sm:$0xff]  ;;  %v178_v2 = vld [vmem:[%s378_s1 + $0x28] sm:$0xff]  ;;  %s382_s13 = smov (!%p161_p3, %s273_s13), 1  ;;  %vm185_vm0 = vcmask 523264   ;;  %vm215_vm1 = vcmask 261120  }
   0xc   : > { %200 = vmatpush.msra.mxu0 %v180_v0  ;;  %288 = vmatpush.msra.mxu1 %v180_v0  ;;  %v177_v3 = vld [vmem:[%s378_s1 + $0x20] sm:$0xff]  ;;  %v176_v4 = vld [vmem:[%s378_s1 + $0x18] sm:$0xff]  ;;  %s286_s24 = sshll.u32 %s382_s13, 4  ;;  %v175_v5 = vld [vmem:[%s378_s1 + $0x10] sm:$0xff] }
   0xd   : > { %v174_v6 = vld [vmem:[%s378_s1 + $0x8] sm:$0xff]  ;;  %s165_s4 = scalar_lea.vmem %s377_s0, %s286_s24  ;;  %v173_v7 = vld [vmem:[%s378_s1] sm:$0xff]  ;;  %s170_s11 = scalar_lea.vmem %s380_s3, %s286_s24 }
   0xe   : > { %201 = vmatpush.msra.mxu0 %v179_v1  ;;  %289 = vmatpush.msra.mxu1 %v179_v1  ;;  %v171_v8 = vld [vmem:[%s165_s4] sm:$0xff]  ;;  %v172_v9 = vld [vmem:[%s165_s4 + $0x8] sm:$0xff] }
   0xf   : > { %v304_v10 = vld [vmem:[%s379_s2] ss:$0 sm:$0xff] }
  0x10   : > { %202 = vmatpush.msra.mxu0 %v178_v2  ;;  %290 = vmatpush.msra.mxu1 %v178_v2 }
  0x12   : > { %203 = vmatpush.msra.mxu0 %v177_v3  ;;  %291 = vmatpush.msra.mxu1 %v177_v3 }
  0x14   : > { %204 = vmatpush.msra.mxu0 %v176_v4  ;;  %292 = vmatpush.msra.mxu1 %v176_v4 }
  0x16   : > { %205 = vmatpush.msra.mxu0 %v175_v5  ;;  %293 = vmatpush.msra.mxu1 %v175_v5 }
  0x18   : > { %206 = vmatpush.msra.mxu0 %v174_v6  ;;  %294 = vmatpush.msra.mxu1 %v174_v6 }
  0x1a   : > { %207 = vmatpush.msra.mxu0 %v173_v7  ;;  %295 = vmatpush.msra.mxu1 %v173_v7 }
  0x1b   : > { %282 = vmatmul.msk.f32.vlgmr.msra.gmra.mxu0 %vm185_vm0, %v171_v8  ;;  %283 = vmatmul.msk.f32.vlgmr.msra.gmra.mxu1 %vm185_vm0, %v172_v9 }
  0x98   : > { %v209_v11 = vpop.f32.mrf.mxu0  ;;  %v212_v12 = vpop.f32.mrf.mxu1 }
  0x99   : > { %v210_v13 = vadd.f32 %v304_v10, %v209_v11  ;;  %v213_v14 = vadd.f32 %v304_v10, %v212_v12 }
  0x9b   : > { %216 = vst.msk [vmem:[%s170_s11] sm:$0xff] %vm215_vm1, %v210_v13 }
  0x9c   : > { %217 = vst.msk [vmem:[%s170_s11 + $0x8] sm:$0xff] %vm215_vm1, %v213_v14 }
  0x9d PF: > { %s13_s12 = sadd.s32 1, %s311_s12  }
  0x9e   : > { %p10_p4 = scmp.ge.s32.totalorder %s13_s12, 4  }
  0xa0   :  { %12 = sbr.rel (!%p10_p4) target bundleno = 1 (0x1), region = 62 }

// kernel: siamese_unet_forward.17
= control target key start
LH: loop header
LB: loop body
LE: loop exit
PB: predicated region body
PF: predicated region fallthrough
CT: control target
= control target key end

     0   :  { %s333_s12 = smov 0   ;;  %s377_s0 = inlined_call_operand.vmem [shape: f32[4,16,64], index: 0, kind: input, shape index: {}]   ;;  %s378_s1 = inlined_call_operand.vmem [shape: f32[64,32], index: 1, kind: input, shape index: {}]   ;;  %s379_s2 = inlined_call_operand.vmem [shape: f32[1,32], index: 2, kind: input, shape index: {}]   ;;  %s380_s3 = inlined_call_operand.vmem [shape: f32[4,16,32], index: 3, kind: output, shape index: {}]  }
   0x1 LB: > { %s273_s13 = sadd.s32 4294967295, %s311_s12   ;;  %p277_p0 = scmp.ge.s32.totalorder %s311_s12, 1  ;;  %s311_s12 = sphi %s333_s12, %s13_s12  }
   0x2   : > { %p137_p1 = scmp.lt.s32.totalorder %s311_s12, 5 }
   0x4   : > { %p138_p2 = pnand %p277_p0, %p137_p1 }
   0x5   : > { %p161_p3 = scmp.lt.s32.totalorder (!%p138_p2), %s273_s13, 3 }
   0x6   : > { %141 = sbr.rel (%p138_p2) target bundleno = 157 (0x9d), region = 32 }
   0xb   : > { %v180_v0 = vld [vmem:[%s378_s1 + $0x38] sm:$0xff]  ;;  %v179_v1 = vld [vmem:[%s378_s1 + $0x30] sm:$0xff]  ;;  %v178_v2 = vld [vmem:[%s378_s1 + $0x28] sm:$0xff]  ;;  %s382_s13 = smov (!%p161_p3, %s273_s13), 3  ;;  %vm185_vm0 = vcmask 523264   ;;  %vm215_vm1 = vcmask 261120  }
   0xc   : > { %200 = vmatpush.msra.mxu0 %v180_v0  ;;  %288 = vmatpush.msra.mxu1 %v180_v0  ;;  %v177_v3 = vld [vmem:[%s378_s1 + $0x20] sm:$0xff]  ;;  %v176_v4 = vld [vmem:[%s378_s1 + $0x18] sm:$0xff]  ;;  %s286_s24 = sshll.u32 %s382_s13, 4  ;;  %v175_v5 = vld [vmem:[%s378_s1 + $0x10] sm:$0xff] }
   0xd   : > { %v174_v6 = vld [vmem:[%s378_s1 + $0x8] sm:$0xff]  ;;  %s165_s4 = scalar_lea.vmem %s377_s0, %s286_s24  ;;  %v173_v7 = vld [vmem:[%s378_s1] sm:$0xff]  ;;  %s170_s11 = scalar_lea.vmem %s380_s3, %s286_s24 }
   0xe   : > { %201 = vmatpush.msra.mxu0 %v179_v1  ;;  %289 = vmatpush.msra.mxu1 %v179_v1  ;;  %v171_v8 = vld [vmem:[%s165_s4] sm:$0xff]  ;;  %v172_v9 = vld [vmem:[%s165_s4 + $0x8] sm:$0xff] }
   0xf   : > { %v304_v10 = vld [vmem:[%s379_s2] ss:$0 sm:$0xff] }
  0x10   : > { %202 = vmatpush.msra.mxu0 %v178_v2  ;;  %290 = vmatpush.msra.mxu1 %v178_v2 }
  0x12   : > { %203 = vmatpush.msra.mxu0 %v177_v3  ;;  %291 = vmatpush.msra.mxu1 %v177_v3 }
  0x14   : > { %204 = vmatpush.msra.mxu0 %v176_v4  ;;  %292 = vmatpush.msra.mxu1 %v176_v4 }
  0x16   : > { %205 = vmatpush.msra.mxu0 %v175_v5  ;;  %293 = vmatpush.msra.mxu1 %v175_v5 }
  0x18   : > { %206 = vmatpush.msra.mxu0 %v174_v6  ;;  %294 = vmatpush.msra.mxu1 %v174_v6 }
  0x1a   : > { %207 = vmatpush.msra.mxu0 %v173_v7  ;;  %295 = vmatpush.msra.mxu1 %v173_v7 }
  0x1b   : > { %282 = vmatmul.msk.f32.vlgmr.msra.gmra.mxu0 %vm185_vm0, %v171_v8  ;;  %283 = vmatmul.msk.f32.vlgmr.msra.gmra.mxu1 %vm185_vm0, %v172_v9 }
  0x98   : > { %v209_v11 = vpop.f32.mrf.mxu0  ;;  %v212_v12 = vpop.f32.mrf.mxu1 }
  0x99   : > { %v210_v13 = vadd.f32 %v304_v10, %v209_v11  ;;  %v213_v14 = vadd.f32 %v304_v10, %v212_v12 }
  0x9b   : > { %216 = vst.msk [vmem:[%s170_s11] sm:$0xff] %vm215_vm1, %v210_v13 }
  0x9c   : > { %217 = vst.msk [vmem:[%s170_s11 + $0x8] sm:$0xff] %vm215_vm1, %v213_v14 }
  0x9d PF: > { %s13_s12 = sadd.s32 1, %s311_s12  }
  0x9e   : > { %p10_p4 = scmp.ge.s32.totalorder %s13_s12, 6  }
  0xa0   :  { %12 = sbr.rel (!%p10_p4) target bundleno = 1 (0x1), region = 62 }

// kernel: siamese_unet_forward.13
= control target key start
LH: loop header
LB: loop body
LE: loop exit
PB: predicated region body
PF: predicated region fallthrough
CT: control target
= control target key end

     0   :  { %s1789_s21 = smov 0   ;;  %s2033_s0 = inlined_call_operand.vmem [shape: f32[2,8,32], index: 0, kind: input, shape index: {}]   ;;  %s2034_s1 = inlined_call_operand.vmem [shape: f32[4,16,64], index: 1, kind: input, shape index: {}, may-alias: {1,2}]   ;;  %s2035_s2 = inlined_call_operand.vmem [shape: f32[4,16,64], index: 2, kind: input, shape index: {}, may-alias: {1,2}]   ;;  %s2036_s3 = inlined_call_operand.vmem [shape: bf16[2,32,64], index: 3, kind: input, shape index: {}]   ;;  %s2037_s4 = inlined_call_operand.vmem [shape: f32[1,64], index: 4, kind: input, shape index: {}]   ;;  %s2038_s5 = inlined_call_operand.vmem [shape: bf16[3,64,64], index: 5, kind: input, shape index: {}]   ;;  %s2039_s6 = inlined_call_operand.vmem [shape: bf16[3,64,64], index: 6, kind: input, shape index: {}]   ;;  %s2040_s7 = inlined_call_operand.vmem [shape: f32[1,64], index: 7, kind: input, shape index: {}]   ;;  %s2041_s8 = inlined_call_operand.vmem [shape: f32[1,64], index: 8, kind: input, shape index: {}]   ;;  %s2042_s9 = inlined_call_operand.vmem [shape: bf16[3,64,64], index: 9, kind: input, shape index: {}]   ;;  %s2043_s10 = inlined_call_operand.vmem [shape: f32[1,64], index: 10, kind: input, shape index: {}]   ;;  %s2044_s11 = inlined_call_operand.vmem [shape: f32[1,64], index: 11, kind: input, shape index: {}]   ;;  %s2045_s12 = inlined_call_operand.vmem [shape: f32[2,16,64], index: 12, kind: output, shape index: {}]  }
   0x1 LB: > { %s1392_s22 = sadd.s32 4294967295, %s1722_s21   ;;  %p1396_p0 = scmp.ge.s32.totalorder %s1722_s21, 1  ;;  %s1722_s21 = sphi %s1789_s21, %s22_s21  }
   0x2   : > { %p385_p1 = scmp.lt.s32.totalorder %s1722_s21, 3 }
   0x4   : > { %p386_p2 = pnand %p1396_p0, %p385_p1 }
   0x5   : > { %p437_p3 = scmp.lt.s32.totalorder (!%p386_p2), %s1392_s22, 1  ;;  %s441_s18 = sadd.s32 (!%p386_p2), 2, %s1392_s22 }
   0x6   : > { %389 = sbr.rel (%p386_p2) target bundleno = 525 (0x20d), region = 68  ;;  %p442_p4 = scmp.lt.s32.totalorder (!%p386_p2), %s441_s18, 3 }
   0x7   : > { %p448_p5 = scmp.lt.s32.totalorder (!%p386_p2), %s1392_s22, 3 }
   0xb   : > { %v1641_v0 = vld [vmem:[%s2036_s3 + $0x8] sm:$0xff]  ;;  %v1643_v1 = vld [vmem:[%s2036_s3 + $0x18] sm:$0xff]  ;;  %v1640_v2 = vld [vmem:[%s2036_s3] sm:$0xff]  ;;  %s1809_s13 = scalar_select %p437_p3, %s1392_s22, 1  ;;  %vm544_vm0 = vcmask 261120   ;;  %vm466_vm1 = vcmask 516096  }
   0xc   : > { %554 = vmatpush.bf16.msra.mxu0 %v1641_v0  ;;  %584 = vmatpush.bf16.msra.mxu1 %v1643_v1  ;;  %v1642_v3 = vld [vmem:[%s2036_s3 + $0x10] sm:$0xff]  ;;  %s2055_s18 = smov (!%p442_p4, %s441_s18), 3  ;;  %s2057_s22 = smov (!%p448_p5, %s1392_s22), 3  ;;  %vm467_vm2 = vsmask.f32 256  ;;  %v1648_v15 = vld [vmem:[%s2038_s5 + $0x18] sm:$0xff] }
   0xd   : > { %s1397_s14 = sshll.u32 %s1809_s13, 3  ;;  %s1637_s19 = sshll.u32 %s2055_s18, 4  ;;  %vm1823_vm3 = vmand %vm466_vm1, %vm467_vm2  ;;  %v469_v12 = vld [vmem:[#allocation2] sm:$0x1]  ;;  %v1653_v16 = vld [vmem:[%s2039_s6 + $0x18] sm:$0xff]  ;;  %798 = vmatpush.bf16.msra.mxu3 %v1648_v15  ;;  %vm513_vm6 = vcmask 519168  }
   0xe   : > { %s440_s17 = scalar_lea.vmem %s2033_s0, %s1397_s14  ;;  %s1638_s20 = sshll.u32 %s2057_s22, 4  ;;  %v470_v14 = vsel %vm1823_vm3, 0, %v469_v12  ;;  %v1647_v18 = vld [vmem:[%s2038_s5 + $0x10] sm:$0xff]  ;;  %vm472_vm4 = vsmask.f32 7938  ;;  %752 = vmatpush.bf16.msra.mxu2 %v1653_v16  ;;  %v1661_v28 = vld [vmem:[%s2039_s6 + $0x38] sm:$0xff] }
   0xf   : > { %v459_v4 = vld [vmem:[%s440_s17] sm:$0xff]  ;;  %s446_s25 = scalar_lea.vmem %s2034_s1, %s1637_s19  ;;  %s452_s28 = scalar_lea.vmem %s2035_s2, %s1638_s20  ;;  %471 = vst [vmem:[#allocation2] sm:$0x1] %v470_v14  ;;  %v1652_v19 = vld [vmem:[%s2039_s6 + $0x10] sm:$0xff]  ;;  %vm1843_vm5 = vmand %vm466_vm1, %vm472_vm4  ;;  %vm491_vm7 = vsmask.f32 4368 }
  0x10   : > { %555 = vmatpush.bf16.msra.mxu0 %v1640_v2  ;;  %585 = vmatpush.bf16.msra.mxu1 %v1642_v3  ;;  %v523_v5 = vpack.c.bf16 %v459_v4, %v459_v4  ;;  %v460_v6 = vld [vmem:[%s446_s25] sm:$0xff]  ;;  %v461_v7 = vld [vmem:[%s446_s25 + $0x8] sm:$0xff]  ;;  %v474_v22 = vld [vmem:[#allocation2 + $0x8] sm:$0x1]  ;;  %vm744_vm10 = vcmask 523264   ;;  %vm630_vm11 = vcmask 1040384  }
  0x11   : > { %v462_v8 = vld [vmem:[%s452_s28] sm:$0xff]  ;;  %v463_v9 = vld [vmem:[%s452_s28 + $0x8] sm:$0xff]  ;;  %v480_v23 = vld [vmem:[#allocation3 + $0x8] sm:$0x1]  ;;  %v475_v24 = vsel %vm1843_vm5, 0, %v474_v22  ;;  %799 = vmatpush.bf16.msra.mxu3 %v1647_v18  ;;  %vm980_vm13 = vcmask 1046528  }
  0x12   : > { %v464_v10 = vsub.f32 %v460_v6, %v462_v8  ;;  %v465_v13 = vsub.f32 %v461_v7, %v463_v9  ;;  %v481_v25 = vsel %vm1843_vm5, 0, %v480_v23  ;;  %v1657_v29 = vld [vmem:[%s2038_s5 + $0x38] sm:$0xff]  ;;  %476 = vst [vmem:[#allocation2 + $0x8] sm:$0x1] %v475_v24  ;;  %v1646_v32 = vld [vmem:[%s2038_s5 + $0x8] sm:$0xff]  ;;  %v1660_v34 = vld [vmem:[%s2039_s6 + $0x30] sm:$0xff]  ;;  %753 = vmatpush.bf16.msra.mxu2 %v1652_v19 }
  0x13   : > { %1412 = vmatmul.msk.bf16.vlgmr.msra.gmra.mxu0 %vm544_vm0, %v523_v5  ;;  %1425 = vmatmul.msk.bf16.vlgmr.msra.gmra.mxu1 %vm544_vm0, %v523_v5  ;;  %482 = vst [vmem:[#allocation3 + $0x8] sm:$0x1] %v481_v25  ;;  %v1656_v35 = vld [vmem:[%s2038_s5 + $0x30] sm:$0xff]  ;;  %vm1868_vm8 = vmand %vm513_vm6, %vm472_vm4  ;;  %v1651_v38 = vld [vmem:[%s2039_s6 + $0x8] sm:$0xff]  ;;  %vm840_vm12 = vsmask.f32 7424 }
  0x14   : > { %v489_v17 = vpack.c.bf16 %v464_v10, %v464_v10  ;;  %v490_v20 = vpack.c.bf16 %v465_v13, %v465_v13  ;;  %884 = vmatpush.bf16.msrb.mxu0 %v1661_v28  ;;  %945 = vmatpush.bf16.msrb.mxu1 %v1657_v29  ;;  %v477_v39 = vld [vmem:[#allocation3] sm:$0x1]  ;;  %vm1877_vm9 = vmor %vm467_vm2, %vm491_vm7  ;;  %v1645_v47 = vld [vmem:[%s2038_s5] sm:$0xff]  ;;  %s1639_s30 = sshll.u32 %s1809_s13, 4 }
  0x15   : > { %v478_v44 = vsel %vm1823_vm3, 0, %v477_v39  ;;  %800 = vmatpush.bf16.msra.mxu3 %v1646_v32  ;;  %v1650_v49 = vld [vmem:[%s2039_s6] sm:$0xff]  ;;  %v1665_v50 = vld [vmem:[%s2038_s5 + $0x58] sm:$0xff]  ;;  %v1664_v53 = vld [vmem:[%s2038_s5 + $0x50] sm:$0xff]  ;;  %s457_s16 = scalar_lea.vmem %s2045_s12, %s1639_s30 }
  0x16   : > { %v494_v26 = vshrl.u32 %v489_v17, 16  ;;  %v497_v27 = vshll.u32 %v489_v17, 16  ;;  %v502_v30 = vshrl.u32 %v490_v20, 16  ;;  %v505_v31 = vshll.u32 %v490_v20, 16  ;;  %v515_v43 = vld [vmem:[#allocation2] sm:$0xf]  ;;  %754 = vmatpush.bf16.msra.mxu2 %v1651_v38 }
  0x17   : > { %479 = vst [vmem:[#allocation3] sm:$0x1] %v478_v44  ;;  %v1711_v51 = vld [vmem:[%s2037_s4] ss:$0 sm:$0xff]  ;;  %v1655_v28 = vld [vmem:[%s2038_s5 + $0x28] sm:$0xff]  ;;  %v1669_v29 = vld [vmem:[%s2039_s6 + $0x58] sm:$0xff] }
  0x18   : > { %v496_v33 = vrot.slane %v494_v26, 7  ;;  %v504_v36 = vrot.slane %v502_v30, 7  ;;  %885 = vmatpush.bf16.msrb.mxu0 %v1660_v34  ;;  %946 = vmatpush.bf16.msrb.mxu1 %v1656_v35  ;;  %v1654_v34 = vld [vmem:[%s2038_s5 + $0x20] sm:$0xff]  ;;  %v1668_v38 = vld [vmem:[%s2039_s6 + $0x50] sm:$0xff]  ;;  %v1681_v21 = vld [vmem:[%s2042_s9 + $0x58] sm:$0xff] }
  0x19   : > { %801 = vmatpush.bf16.msra.mxu3 %v1645_v47  ;;  %v520_v56 = vld [vmem:[#allocation2 + $0x8] sm:$0x1]  ;;  %v1662_v39 = vld [vmem:[%s2038_s5 + $0x40] sm:$0xff] }
  0x1a   : > { %v499_v41 = vor.u32 %v497_v27, %v496_v33  ;;  %v500_v42 = vrot.slane %v496_v33, 4  ;;  %v507_v45 = vor.u32 %v505_v31, %v504_v36  ;;  %v509_v52 = vrot.slane %v504_v36, 4  ;;  %755 = vmatpush.bf16.msra.mxu2 %v1650_v49  ;;  %v1659_v27 = vld [vmem:[%s2039_s6 + $0x28] sm:$0xff]  ;;  %v1658_v33 = vld [vmem:[%s2039_s6 + $0x20] sm:$0xff] }
  0x1b   : > { %v1663_v31 = vld [vmem:[%s2038_s5 + $0x48] sm:$0xff] }
  0x1c   : > { %v516_v46 = vsel %vm1868_vm8, %v499_v41, %v515_v43  ;;  %v508_v48 = vsel %vm1877_vm9, %v500_v42, %v507_v45  ;;  %v521_v59 = vsel %vm1823_vm3, %v509_v52, %v520_v56  ;;  %886 = vmatpush.bf16.msrb.mxu0 %v1659_v27  ;;  %947 = vmatpush.bf16.msrb.mxu1 %v1655_v28 }
  0x1d   : > { %517 = vst [vmem:[#allocation2] sm:$0xf] %v516_v46  ;;  %1062 = vmatpush.bf16.msrb.mxu3 %v1665_v50 }
  0x1e   : > { %519 = vst.msk [vmem:[#allocation2 + $0x4] sm:$0xf] %vm513_vm6, %v508_v48  ;;  %1015 = vmatpush.bf16.msrb.mxu2 %v1669_v29 }
  0x1f   : > { %522 = vst [vmem:[#allocation2 + $0x8] sm:$0x1] %v521_v59 }
  0x20   : > { %887 = vmatpush.bf16.msrb.mxu0 %v1658_v33  ;;  %948 = vmatpush.bf16.msrb.mxu1 %v1654_v34 }
  0x21   : > { %1063 = vmatpush.bf16.msrb.mxu3 %v1664_v53 }
  0x22   : > { %1016 = vmatpush.bf16.msrb.mxu2 %v1668_v38 }
  0x24   : > { %v1698_v47 = vld [vmem:[#allocation2] sm:$0xe] }
  0x25   : > { %v1644_v60 = vld [vmem:[#allocation2] sm:$0xff]  ;;  %1064 = vmatpush.bf16.msrb.mxu3 %v1663_v31 }
  0x26   : > { %1467 = vmatmul.msk.bf16.vlgmr.msra.gmra.mxu3 %vm744_vm10, %v1644_v60  ;;  %v1683_v35 = vld [vmem:[#allocation2] sm:$0xff]   ;;  %v810_v41 = vld [vmem:[#allocation2 + $0x8] sm:$0x1]  ;;  %v1666_v60 = vld [vmem:[%s2039_s6 + $0x40] sm:$0xff] }
  0x27   : > { %v899_v43 = vunpack.c.l.b16 %v810_v41  ;;  %v905_v44 = vshll.u32 %v1683_v35, 16  ;;  %v1697_v45 = vld [vmem:[#allocation2] sm:$0xf0]  ;;  %v903_v46 = vshrl.u32 %v1683_v35, 16  ;;  %v483_v35 = vld [vmem:[#allocation4] sm:$0x1] }
  0x28   : > { %v1699_v50 = vor.u32 %v1698_v47, %v1697_v45  ;;  %v486_v41 = vld [vmem:[#allocation4 + $0x8] sm:$0x1] }
  0x29   : > { %v901_v48 = vpack.c.b16 %v899_v43, %v899_v43  ;;  %v907_v49 = vrot.slane %v905_v44, 1  ;;  %1065 = vmatpush.bf16.msrb.mxu3 %v1662_v39  ;;  %v1673_v44 = vld [vmem:[%s2042_s9 + $0x18] sm:$0xff] }
  0x2a   : > { %v1028_v53 = vrot.slane %v1699_v50, 1  ;;  %1228 = vmatpush.bf16.msra.mxu1 %v1673_v44 }
  0x2b   : > { %v910_v52 = vshll.u32 %v901_v48, 16 }
  0x90   : > { %v557_v54 = vpop.f32.mrf.mxu0  ;;  %v587_v55 = vpop.f32.mrf.mxu1 }
  0x91   : > { %v558_v57 = vadd.f32 %v1711_v51, %v557_v54  ;;  %v588_v58 = vadd.f32 %v1711_v51, %v587_v55  ;;  %v908_v51 = vor.u32 %v907_v49, %v903_v46  ;;  %v1029_v54 = vrot.slane %v901_v48, 1  ;;  %v1667_v55 = vld [vmem:[%s2039_s6 + $0x48] sm:$0xff]  ;;  %v1672_v48 = vld [vmem:[%s2042_s9 + $0x10] sm:$0xff] }
  0x92   : > { %1017 = vmatpush.bf16.msrb.mxu2 %v1667_v55  ;;  %1229 = vmatpush.bf16.msra.mxu1 %v1672_v48  ;;  %v1671_v49 = vld [vmem:[%s2042_s9 + $0x8] sm:$0xff] }
  0x93   : > { %v592_v61 = vrot.slane %v558_v57, 1  ;;  %v593_v62 = vrot.slane %v558_v57, 2  ;;  %v594_v63 = vrot.slane %v558_v57, 3  ;;  %v595_v0 = vrot.slane %v558_v57, 4 }
  0x94   : > { %v596_v1 = vrot.slane %v558_v57, 5  ;;  %v597_v2 = vrot.slane %v558_v57, 6  ;;  %v607_v3 = vrot.slane %v588_v58, 1  ;;  %v608_v4 = vrot.slane %v588_v58, 2 }
  0x95   : > { %v609_v5 = vrot.slane %v588_v58, 3  ;;  %v610_v6 = vrot.slane %v588_v58, 4  ;;  %v611_v7 = vrot.slane %v588_v58, 5  ;;  %v612_v8 = vrot.slane %v588_v58, 6 }
  0x96   : > { %v613_v9 = vrot.slane %v588_v58, 7  ;;  %v614_v10 = vperm.slane %v588_v58, 0  ;;  %v615_v12 = vperm.slane %v607_v3, 0  ;;  %v616_v13 = vperm.slane %v608_v4, 0  ;;  %1018 = vmatpush.bf16.msrb.mxu2 %v1666_v60  ;;  %v688_v3 = vld [vmem:[#allocation3] sm:$0xf]  ;;  %1230 = vmatpush.bf16.msra.mxu1 %v1671_v49 }
  0x97   : > { %v617_v14 = vperm.slane %v609_v5, 0  ;;  %v618_v15 = vperm.slane %v610_v6, 0  ;;  %v619_v16 = vperm.slane %v611_v7, 0  ;;  %v598_v17 = vrot.slane %v558_v57, 7  ;;  %v1712_v60 = vld [vmem:[%s2040_s7] ss:$0 sm:$0xff] }
  0x98   : > { %v620_v18 = vperm.slane %v612_v8, 0  ;;  %v631_v19 = vsel %vm630_vm11, %v558_v57, %v614_v10  ;;  %v632_v20 = vsel %vm630_vm11, %v592_v61, %v615_v12  ;;  %v559_v22 = vpop.f32.mrf.mxu0  ;;  %v589_v23 = vpop.f32.mrf.mxu1  ;;  %v621_v24 = vperm.slane %v613_v9, 0  ;;  %v692_v10 = vld [vmem:[#allocation3 + $0x8] sm:$0x1] }
  0x99   : > { %v633_v25 = vsel %vm630_vm11, %v593_v62, %v616_v13  ;;  %v634_v26 = vsel %vm630_vm11, %v594_v63, %v617_v14  ;;  %647 = vst [vmem:[#allocation1] ss:$4 sm:$0xff] %v631_v19  ;;  %v635_v30 = vsel %vm630_vm11, %v595_v0, %v618_v15  ;;  %v636_v32 = vsel %vm630_vm11, %v596_v1, %v619_v16 }
  0x9a   : > { %649 = vst [vmem:[#allocation1 + $0x1] ss:$4 sm:$0xff] %v632_v20  ;;  %v637_v36 = vsel %vm630_vm11, %v597_v2, %v620_v18  ;;  %v638_v42 = vsel %vm630_vm11, %v598_v17, %v621_v24  ;;  %v912_v57 = vrot.slane %v910_v52, 1  ;;  %v1030_v58 = vsel %vm980_vm13, %v1028_v53, %v1029_v54  ;;  %v1680_v52 = vld [vmem:[%s2042_s9 + $0x50] sm:$0xff]  ;;  %v1670_v54 = vld [vmem:[%s2042_s9] sm:$0xff] }
  0x9b   : > { %651 = vst [vmem:[#allocation1 + $0x2] ss:$4 sm:$0xff] %v633_v25  ;;  %1567 = vmatmul.msk.bf16.vlgmr.msrb.gmra.mxu3 %vm744_vm10, %v1030_v58  ;;  %1231 = vmatpush.bf16.msra.mxu1 %v1670_v54 }
  0x9c   : > { %653 = vst [vmem:[#allocation1 + $0x3] ss:$4 sm:$0xff] %v634_v26  ;;  %v913_v61 = vsel %vm840_vm12, %v908_v51, %v912_v57  ;;  %v1677_v51 = vld [vmem:[%s2042_s9 + $0x38] sm:$0xff] }
  0x9d   : > { %655 = vst [vmem:[#allocation1 + $0x20] ss:$4 sm:$0xff] %v635_v30  ;;  %1517 = vmatmul.msk.bf16.vlgmr.msrb.gmra.mxu1 %vm744_vm10, %v913_v61  ;;  %1188 = vmatpush.bf16.msra.mxu0 %v1677_v51  ;;  %v1679_v61 = vld [vmem:[%s2042_s9 + $0x48] sm:$0xff] }
  0x9e   : > { %657 = vst [vmem:[#allocation1 + $0x21] ss:$4 sm:$0xff] %v636_v32 }
  0x9f   : > { %659 = vst [vmem:[#allocation1 + $0x22] ss:$4 sm:$0xff] %v637_v36  ;;  %v484_v36 = vsel %vm1823_vm3, 0, %v483_v35 }
  0xa0   : > { %661 = vst [vmem:[#allocation1 + $0x23] ss:$4 sm:$0xff] %v638_v42  ;;  %v487_v42 = vsel %vm1843_vm5, 0, %v486_v41 }
  0xa1   : > { %485 = vst [vmem:[#allocation4] sm:$0x1] %v484_v36 }
  0xa2   : > { %488 = vst [vmem:[#allocation4 + $0x8] sm:$0x1] %v487_v42 }
  0xa3   : > { %v662_v56 = vld.sshfl [vmem:[#allocation1] sm:$0xff pattern:$0x73625140] }
  0xa4   : > { %v666_v59 = vpack.c.bf16 %v662_v56, %v662_v56  ;;  %v1676_v56 = vld [vmem:[%s2042_s9 + $0x30] sm:$0xff] }
  0xa5   : > { %1189 = vmatpush.bf16.msra.mxu0 %v1676_v56 }
  0xa6   : > { %v669_v62 = vshrl.u32 %v666_v59, 16  ;;  %v672_v2 = vshll.u32 %v666_v59, 16 }
  0xa7   : > { %v663_v63 = vld.sshfl [vmem:[#allocation1 + $0x20] sm:$0xff pattern:$0x73625140] }
  0xa8   : > { %v667_v0 = vpack.c.bf16 %v663_v63, %v663_v63  ;;  %v671_v1 = vrot.slane %v669_v62, 7 }
  0xa9   : > { %v803_v38 = vpop.f32.mrf.mxu3 }
  0xaa   : > { %v674_v4 = vor.u32 %v672_v2, %v671_v1  ;;  %v677_v5 = vshrl.u32 %v667_v0, 16  ;;  %v675_v6 = vrot.slane %v671_v1, 4  ;;  %v680_v8 = vshll.u32 %v667_v0, 16  ;;  %v1713_v1 = vld [vmem:[%s2041_s8] ss:$0 sm:$0xff] }
  0xac   : > { %v679_v7 = vrot.slane %v677_v5, 7  ;;  %v689_v9 = vsel %vm1868_vm8, %v674_v4, %v688_v3  ;;  %v1675_v4 = vld [vmem:[%s2042_s9 + $0x28] sm:$0xff] }
  0xad   : > { %690 = vst [vmem:[#allocation3] sm:$0xf] %v689_v9  ;;  %1190 = vmatpush.bf16.msra.mxu0 %v1675_v4 }
  0xae   : > { %v682_v12 = vor.u32 %v680_v8, %v679_v7  ;;  %v684_v13 = vrot.slane %v679_v7, 4  ;;  %v1678_v7 = vld [vmem:[%s2042_s9 + $0x40] sm:$0xff] }
  0xb0   : > { %v683_v14 = vsel %vm1877_vm9, %v675_v6, %v682_v12  ;;  %v693_v15 = vsel %vm1823_vm3, %v684_v13, %v692_v10  ;;  %v1674_v10 = vld [vmem:[%s2042_s9 + $0x20] sm:$0xff] }
  0xb1   : > { %691 = vst.msk [vmem:[#allocation3 + $0x4] sm:$0xf] %vm513_vm6, %v683_v14  ;;  %v805_v43 = vpop.f32.mrf.mxu3  ;;  %1191 = vmatpush.bf16.msra.mxu0 %v1674_v10 }
  0xb2   : > { %694 = vst [vmem:[#allocation3 + $0x8] sm:$0x1] %v693_v15 }
  0xb4   : > { %v1695_v29 = vld [vmem:[#allocation3] sm:$0xe] }
  0xb8   : > { %v1649_v16 = vld [vmem:[#allocation3] sm:$0xff] }
  0xb9   : > { %v1687_v17 = vld [vmem:[#allocation3] sm:$0xff]   ;;  %v822_v18 = vld [vmem:[#allocation3 + $0x8] sm:$0x1]  ;;  %1446 = vmatmul.msk.bf16.vlgmr.msra.gmra.mxu2 %vm744_vm10, %v1649_v16 }
  0xba   : > { %v844_v19 = vshll.u32 %v1687_v17, 16  ;;  %v837_v20 = vunpack.c.l.b16 %v822_v18  ;;  %v842_v24 = vshrl.u32 %v1687_v17, 16  ;;  %v1694_v28 = vld [vmem:[#allocation3] sm:$0xf0]  ;;  %1285 = vmatpush.bf16.msra.mxu2 %v1681_v21 }
  0xbb   : > { %v1696_v31 = vor.u32 %v1695_v29, %v1694_v28 }
  0xbc   : > { %v839_v22 = vpack.c.b16 %v837_v20, %v837_v20  ;;  %v846_v23 = vrot.slane %v844_v19, 1 }
  0xbd   : > { %v981_v33 = vrot.slane %v1696_v31, 1  ;;  %v1114_v31 = vld [vmem:[#allocation4 + $0x8] sm:$0x1] }
  0xbe   : > { %v849_v25 = vshll.u32 %v839_v22, 16  ;;  %v847_v26 = vor.u32 %v846_v23, %v842_v24  ;;  %v982_v32 = vrot.slane %v839_v22, 1  ;;  %1286 = vmatpush.bf16.msra.mxu2 %v1680_v52  ;;  %v1110_v23 = vld [vmem:[#allocation4] sm:$0xf] }
  0xc0   : > { %v851_v27 = vrot.slane %v849_v25, 1  ;;  %v983_v34 = vsel %vm980_vm13, %v981_v33, %v982_v32 }
  0xc2   : > { %v852_v30 = vsel %vm840_vm12, %v847_v26, %v851_v27  ;;  %1287 = vmatpush.bf16.msra.mxu2 %v1679_v61 }
  0xc3   : > { %1500 = vmatmul.msk.bf16.vlgmr.msrb.gmra.mxu0 %vm744_vm10, %v852_v30 }
  0xc6   : > { %1288 = vmatpush.bf16.msra.mxu2 %v1678_v7 }
  0xc9   : > { %1550 = vmatmul.msk.bf16.vlgmr.msrb.gmra.mxu2 %vm744_vm10, %v983_v34 }
 0x11a   : > { %v950_v45 = vpop.f32.mrf.mxu1 }
 0x11e   : > { %v1067_v53 = vpop.f32.mrf.mxu3 }
 0x122   : > { %v952_v63 = vpop.f32.mrf.mxu1 }
 0x126   : > { %v1069_v8 = vpop.f32.mrf.mxu3 }
 0x13c   : > { %v757_v39 = vpop.f32.mrf.mxu2 }
 0x13d   : > { %v804_v55 = vadd.f32 %v803_v38, %v757_v39 }
 0x140   : > { %v889_v46 = vpop.f32.mrf.mxu0 }
 0x141   : > { %v951_v50 = vadd.f32 %v950_v45, %v889_v46 }
 0x143   : > { %v955_v58 = vadd.f32 %v951_v50, %v804_v55  ;;  %v1714_v55 = vld [vmem:[%s2043_s10] ss:$0 sm:$0xff] }
 0x144   : > { %v759_v47 = vpop.f32.mrf.mxu2 }
 0x145   : > { %v806_v5 = vadd.f32 %v805_v43, %v759_v47 }
 0x148   : > { %v891_v62 = vpop.f32.mrf.mxu0 }
 0x149   : > { %v953_v2 = vadd.f32 %v952_v63, %v891_v62 }
 0x14b   : > { %v956_v12 = vadd.f32 %v953_v2, %v806_v5 }
 0x14c   : > { %v1020_v57 = vpop.f32.mrf.mxu2 }
 0x14d   : > { %v1068_v59 = vadd.f32 %v1067_v53, %v1020_v57 }
 0x14f   : > { %v1072_v0 = vadd.f32 %v1068_v59, %v955_v58  ;;  %v1715_v58 = vld [vmem:[%s2044_s11] ss:$0 sm:$0xff] }
 0x151   : > { %v1078_v3 = vmul.f32 %v1712_v60, %v1072_v0 }
 0x153   : > { %v1084_v6 = vadd.f32 %v1713_v1, %v1078_v3 }
 0x154   : > { %v1022_v9 = vpop.f32.mrf.mxu2 }
 0x155   : > { %v1086_v13 = vmax.f32 %v1084_v6, 0.0  ;;  %v1070_v14 = vadd.f32 %v1069_v8, %v1022_v9 }
 0x157   : > { %v1088_v15 = vpack.c.bf16 %v1086_v13, %v1086_v13  ;;  %v1073_v16 = vadd.f32 %v1070_v14, %v956_v12 }
 0x159   : > { %v1091_v17 = vshrl.u32 %v1088_v15, 16  ;;  %v1079_v18 = vmul.f32 %v1712_v60, %v1073_v16  ;;  %v1094_v20 = vshll.u32 %v1088_v15, 16 }
 0x15b   : > { %v1093_v19 = vrot.slane %v1091_v17, 7  ;;  %v1085_v22 = vadd.f32 %v1713_v1, %v1079_v18 }
 0x15d   : > { %v1096_v24 = vor.u32 %v1094_v20, %v1093_v19  ;;  %v1087_v25 = vmax.f32 %v1085_v22, 0.0  ;;  %v1097_v32 = vrot.slane %v1093_v19, 4 }
 0x15f   : > { %v1111_v26 = vsel %vm1868_vm8, %v1096_v24, %v1110_v23  ;;  %v1089_v27 = vpack.c.bf16 %v1087_v25, %v1087_v25 }
 0x160   : > { %1112 = vst [vmem:[#allocation4] sm:$0xf] %v1111_v26 }
 0x161   : > { %v1099_v28 = vshrl.u32 %v1089_v27, 16  ;;  %v1102_v30 = vshll.u32 %v1089_v27, 16 }
 0x163   : > { %v1101_v29 = vrot.slane %v1099_v28, 7 }
 0x165   : > { %v1104_v33 = vor.u32 %v1102_v30, %v1101_v29  ;;  %v1106_v34 = vrot.slane %v1101_v29, 4 }
 0x167   : > { %v1105_v35 = vsel %vm1877_vm9, %v1097_v32, %v1104_v33  ;;  %v1115_v36 = vsel %vm1823_vm3, %v1106_v34, %v1114_v31  ;;  %v1701_v42 = vld [vmem:[#allocation4] sm:$0xe] }
 0x168   : > { %1113 = vst.msk [vmem:[#allocation4 + $0x4] sm:$0xf] %vm513_vm6, %v1105_v35 }
 0x169   : > { %1116 = vst [vmem:[#allocation4 + $0x8] sm:$0x1] %v1115_v36 }
 0x16f   : > { %v1691_v37 = vld [vmem:[#allocation4] sm:$0xff]  }
 0x170   : > { %v1700_v38 = vld [vmem:[#allocation4] sm:$0xf0]  ;;  %v1148_v39 = vshll.u32 %v1691_v37, 16  ;;  %1609 = vmatmul.msk.bf16.vlgmr.msra.gmra.mxu1 %vm744_vm10, %v1691_v37  ;;  %v1127_v41 = vld [vmem:[#allocation4 + $0x8] sm:$0x1]  ;;  %v1146_v47 = vshrl.u32 %v1691_v37, 16 }
 0x171   : > { %v1142_v43 = vunpack.c.l.b16 %v1127_v41  ;;  %v1702_v44 = vor.u32 %v1701_v42, %v1700_v38 }
 0x172   : > { %v1150_v45 = vrot.slane %v1148_v39, 1 }
 0x173   : > { %v1144_v46 = vpack.c.b16 %v1142_v43, %v1142_v43  ;;  %v1251_v40 = vrot.slane %v1702_v44, 1 }
 0x174   : > { %v1151_v21 = vor.u32 %v1150_v45, %v1146_v47 }
 0x175   : > { %v1252_v48 = vrot.slane %v1144_v46, 1  ;;  %v1153_v11 = vshll.u32 %v1144_v46, 16 }
 0x177   : > { %v1253_v49 = vsel %vm980_vm13, %v1251_v40, %v1252_v48  ;;  %v1155_v50 = vrot.slane %v1153_v11, 1 }
 0x178   : > { %1634 = vmatmul.msk.bf16.vlgmr.msra.gmra.mxu2 %vm744_vm10, %v1253_v49 }
 0x179   : > { %v1156_v51 = vsel %vm840_vm12, %v1151_v21, %v1155_v50 }
 0x17a   : > { %1592 = vmatmul.msk.bf16.vlgmr.msra.gmra.mxu0 %vm744_vm10, %v1156_v51 }
 0x1ed   : > { %v1233_v52 = vpop.f32.mrf.mxu1 }
 0x1f5   : > { %v1235_v62 = vpop.f32.mrf.mxu1 }
 0x1f7   : > { %v1193_v53 = vpop.f32.mrf.mxu0 }
 0x1f8   : > { %v1234_v54 = vadd.f32 %v1233_v52, %v1193_v53 }
 0x1fb   : > { %v1290_v56 = vpop.f32.mrf.mxu2 }
 0x1fc   : > { %v1295_v57 = vadd.f32 %v1290_v56, %v1234_v54 }
 0x1fe   : > { %v1301_v59 = vmul.f32 %v1714_v55, %v1295_v57 }
 0x1ff   : > { %v1195_v60 = vpop.f32.mrf.mxu0 }
 0x200   : > { %v1307_v61 = vadd.f32 %v1715_v58, %v1301_v59  ;;  %v1236_v0 = vadd.f32 %v1235_v62, %v1195_v60 }
 0x202   : > { %v1309_v63 = vmax.f32 %v1307_v61, 0.0 }
 0x203   : > { %v1292_v1 = vpop.f32.mrf.mxu2 }
 0x204   : > { %1311 = vst.msk [vmem:[%s457_s16] sm:$0xff] %vm744_vm10, %v1309_v63  ;;  %v1296_v2 = vadd.f32 %v1292_v1, %v1236_v0 }
 0x206   : > { %v1302_v3 = vmul.f32 %v1714_v55, %v1296_v2 }
 0x208   : > { %v1308_v4 = vadd.f32 %v1715_v58, %v1302_v3 }
 0x20a   : > { %v1310_v5 = vmax.f32 %v1308_v4, 0.0 }
 0x20c   : > { %1312 = vst.msk [vmem:[%s457_s16 + $0x8] sm:$0xff] %vm744_vm10, %v1310_v5 }
 0x20d PF: > { %s22_s21 = sadd.s32 1, %s1722_s21  }
 0x20e   : > { %p19_p6 = scmp.ge.s32.totalorder %s22_s21, 4  }
 0x210   :  { %21 = sbr.rel (!%p19_p6) target bundleno = 1 (0x1), region = 118 }

// kernel: siamese_unet_forward.15
= control target key start
LH: loop header
LB: loop body
LE: loop exit
PB: predicated region body
PF: predicated region fallthrough
CT: control target
= control target key end

     0   :  { %s1445_s17 = smov 0   ;;  %s1648_s0 = inlined_call_operand.vmem [shape: f32[4,4,32], index: 0, kind: input, shape index: {}]   ;;  %s1649_s1 = inlined_call_operand.vmem [shape: f32[4,8,64], index: 1, kind: input, shape index: {}]   ;;  %s1650_s2 = inlined_call_operand.vmem [shape: bf16[2,32,64], index: 2, kind: input, shape index: {}]   ;;  %s1651_s3 = inlined_call_operand.vmem [shape: f32[1,64], index: 3, kind: input, shape index: {}]   ;;  %s1652_s4 = inlined_call_operand.vmem [shape: bf16[3,64,32], index: 4, kind: input, shape index: {}]   ;;  %s1653_s5 = inlined_call_operand.vmem [shape: bf16[3,64,32], index: 5, kind: input, shape index: {}]   ;;  %s1654_s6 = inlined_call_operand.vmem [shape: f32[1,32], index: 6, kind: input, shape index: {}]   ;;  %s1655_s7 = inlined_call_operand.vmem [shape: f32[1,32], index: 7, kind: input, shape index: {}]   ;;  %s1656_s8 = inlined_call_operand.vmem [shape: bf16[3,32,32], index: 8, kind: input, shape index: {}]   ;;  %s1657_s9 = inlined_call_operand.vmem [shape: f32[1,32], index: 9, kind: input, shape index: {}]   ;;  %s1658_s10 = inlined_call_operand.vmem [shape: f32[1,32], index: 10, kind: input, shape index: {}]   ;;  %s1659_s11 = inlined_call_operand.vmem [shape: f32[4,8,32], index: 11, kind: output, shape index: {}]  }
   0x1 LB: > { %s1129_s18 = sadd.s32 4294967295, %s1383_s17   ;;  %p1133_p0 = scmp.ge.s32.totalorder %s1383_s17, 1  ;;  %s1383_s17 = sphi %s1445_s17, %s21_s17  }
   0x2   : > { %p345_p1 = scmp.lt.s32.totalorder %s1383_s17, 5 }
   0x4   : > { %p346_p2 = pnand %p1133_p0, %p345_p1 }
   0x5   : > { %p387_p3 = scmp.lt.s32.totalorder (!%p346_p2), %s1129_s18, 3 }
   0x6   : > { %349 = sbr.rel (%p346_p2) target bundleno = 502 (0x1f6), region = 64 }
   0xb   : > { %v1331_v0 = vld [vmem:[%s1650_s2 + $0x8] sm:$0xff]  ;;  %v1333_v1 = vld [vmem:[%s1650_s2 + $0x18] sm:$0xff]  ;;  %vm402_vm0 = vcmask 516096   ;;  %v1330_v2 = vld [vmem:[%s1650_s2] sm:$0xff]  ;;  %vm403_vm1 = vsmask.f32 256 }
   0xc   : > { %v405_v3 = vld [vmem:[#allocation2] sm:$0x1]  ;;  %478 = vmatpush.bf16.msra.mxu0 %v1331_v0  ;;  %508 = vmatpush.bf16.msra.mxu1 %v1333_v1  ;;  %v1332_v4 = vld [vmem:[%s1650_s2 + $0x10] sm:$0xff]  ;;  %s1669_s18 = smov (!%p387_p3, %s1129_s18), 3  ;;  %vm1468_vm2 = vmand %vm402_vm0, %vm403_vm1  ;;  %vm408_vm3 = vsmask.f32 7938 }
   0xd   : > { %v410_v6 = vld [vmem:[#allocation2 + $0x4] sm:$0x1]  ;;  %v406_v7 = vsel %vm1468_vm2, 0, %v405_v3  ;;  %vm1475_vm4 = vmand %vm402_vm0, %vm408_vm3  ;;  %v413_v9 = vld [vmem:[#allocation3] sm:$0x1]  ;;  %s1134_s27 = sshll.u32 %s1669_s18, 2 }
   0xe   : > { %v416_v10 = vld [vmem:[#allocation3 + $0x4] sm:$0x1]  ;;  %s1135_s28 = sshll.u32 %s1669_s18, 3  ;;  %407 = vst [vmem:[#allocation2] sm:$0x1] %v406_v7  ;;  %v411_v11 = vsel %vm1475_vm4, 0, %v410_v6  ;;  %s390_s12 = scalar_lea.vmem %s1648_s0, %s1134_s27 }
   0xf   : > { %v414_v12 = vsel %vm1468_vm2, 0, %v413_v9  ;;  %s394_s15 = scalar_lea.vmem %s1649_s1, %s1135_s28  ;;  %412 = vst [vmem:[#allocation2 + $0x4] sm:$0x1] %v411_v11  ;;  %v417_v13 = vsel %vm1475_vm4, 0, %v416_v10  ;;  %v400_v14 = vld [vmem:[%s390_s12] sm:$0xf]  ;;  %s398_s26 = scalar_lea.vmem %s1659_s11, %s1135_s28 }
  0x10   : > { %479 = vmatpush.bf16.msra.mxu0 %v1330_v2  ;;  %509 = vmatpush.bf16.msra.mxu1 %v1332_v4  ;;  %v401_v15 = vld [vmem:[%s394_s15] sm:$0xff]  ;;  %415 = vst [vmem:[#allocation3] sm:$0x1] %v414_v12  ;;  %vm468_vm5 = vcmask 261120   ;;  %v447_v17 = vpack.c.bf16 %v400_v14, %v400_v14  ;;  %vm439_vm6 = vcmask 519168   ;;  %v1337_v28 = vld [vmem:[%s1652_s4 + $0x18] sm:$0xff] }
  0x11   : > { %418 = vst [vmem:[#allocation3 + $0x4] sm:$0x1] %v417_v13  ;;  %v428_v16 = vpack.c.bf16 %v401_v15, %v401_v15  ;;  %vm1498_vm7 = vmand %vm439_vm6, %vm408_vm3  ;;  %659 = vmatpush.bf16.msra.mxu3 %v1337_v28  ;;  %v1336_v29 = vld [vmem:[%s1652_s4 + $0x10] sm:$0xff]  ;;  %v1341_v30 = vld [vmem:[%s1653_s5 + $0x18] sm:$0xff]  ;;  %vm611_vm8 = vcmask 523264   ;;  %vm534_vm9 = vcmask 1040384  }
  0x12   : > { %v1335_v31 = vld [vmem:[%s1652_s4 + $0x8] sm:$0xff]  ;;  %v1340_v32 = vld [vmem:[%s1653_s5 + $0x10] sm:$0xff]  ;;  %619 = vmatpush.bf16.msra.mxu2 %v1341_v30  ;;  %v1334_v33 = vld [vmem:[%s1652_s4] sm:$0xff]  ;;  %vm419_vm10 = vcmask 253952   ;;  %vm926_vm13 = vcmask 257024  }
  0x13   : > { %v430_v18 = vshrl.u32 %v428_v16, 16  ;;  %v433_v19 = vshll.u32 %v428_v16, 16  ;;  %1145 = vmatmul.msk.bf16.vlgmr.msra.gmra.mxu0 %vm468_vm5, %v447_v17  ;;  %1158 = vmatmul.msk.bf16.vlgmr.msra.gmra.mxu1 %vm468_vm5, %v447_v17  ;;  %v1349_v34 = vld [vmem:[%s1653_s5 + $0x38] sm:$0xff]  ;;  %v1348_v37 = vld [vmem:[%s1653_s5 + $0x30] sm:$0xff]  ;;  %v1339_v40 = vld [vmem:[%s1653_s5 + $0x8] sm:$0xff] }
  0x14   : > { %v1345_v35 = vld [vmem:[%s1652_s4 + $0x38] sm:$0xff]  ;;  %733 = vmatpush.bf16.msrb.mxu0 %v1349_v34  ;;  %v1344_v38 = vld [vmem:[%s1652_s4 + $0x30] sm:$0xff]  ;;  %v1338_v42 = vld [vmem:[%s1653_s5] sm:$0xff] }
  0x15   : > { %v432_v20 = vrot.slane %v430_v18, 7  ;;  %v441_v22 = vld [vmem:[#allocation2] sm:$0xf]  ;;  %660 = vmatpush.bf16.msra.mxu3 %v1336_v29  ;;  %v1353_v36 = vld [vmem:[%s1652_s4 + $0x58] sm:$0xff]  ;;  %785 = vmatpush.bf16.msrb.mxu1 %v1345_v35  ;;  %v1352_v41 = vld [vmem:[%s1652_s4 + $0x50] sm:$0xff] }
  0x16   : > { %v444_v23 = vld [vmem:[#allocation2 + $0x4] sm:$0x1]  ;;  %620 = vmatpush.bf16.msra.mxu2 %v1340_v32  ;;  %v1372_v43 = vld [vmem:[%s1651_s3] ss:$0 sm:$0xff]  ;;  %v1357_v48 = vld [vmem:[%s1653_s5 + $0x58] sm:$0xff] }
  0x17   : > { %v435_v24 = vor.u32 %v433_v19, %v432_v20  ;;  %v436_v25 = vrot.slane %v432_v20, 4  ;;  %v1351_v49 = vld [vmem:[%s1652_s4 + $0x48] sm:$0xff]  ;;  %v1356_v60 = vld [vmem:[%s1653_s5 + $0x50] sm:$0xff]  ;;  %v1350_v61 = vld [vmem:[%s1652_s4 + $0x40] sm:$0xff] }
  0x18   : > { %734 = vmatpush.bf16.msrb.mxu0 %v1348_v37  ;;  %v1347_v54 = vld [vmem:[%s1653_s5 + $0x28] sm:$0xff]  ;;  %v1346_v63 = vld [vmem:[%s1653_s5 + $0x20] sm:$0xff]  ;;  %v563_v30 = vld [vmem:[#allocation3] sm:$0xf] }
  0x19   : > { %v442_v26 = vsel %vm1498_vm7, %v435_v24, %v441_v22  ;;  %v445_v27 = vsel %vm1468_vm2, %v436_v25, %v444_v23  ;;  %661 = vmatpush.bf16.msra.mxu3 %v1335_v31  ;;  %786 = vmatpush.bf16.msrb.mxu1 %v1344_v38  ;;  %v1343_v55 = vld [vmem:[%s1652_s4 + $0x28] sm:$0xff]  ;;  %v1342_v0 = vld [vmem:[%s1652_s4 + $0x20] sm:$0xff]  ;;  %v566_v31 = vld [vmem:[#allocation3 + $0x4] sm:$0x1] }
  0x1a   : > { %443 = vst [vmem:[#allocation2] sm:$0xf] %v442_v26  ;;  %621 = vmatpush.bf16.msra.mxu2 %v1339_v40  ;;  %v1355_v15 = vld [vmem:[%s1653_s5 + $0x48] sm:$0xff]  ;;  %v1354_v23 = vld [vmem:[%s1653_s5 + $0x40] sm:$0xff]  ;;  %vm1596_vm11 = vmand %vm419_vm10, %vm403_vm1 }
  0x1b   : > { %446 = vst [vmem:[#allocation2 + $0x4] sm:$0x1] %v445_v27  ;;  %vm424_vm12 = vmand %vm419_vm10, %vm408_vm3 }
  0x1c   : > { %735 = vmatpush.bf16.msrb.mxu0 %v1347_v54  ;;  %vm927_vm14 = vmand %vm926_vm13, %vm408_vm3 }
  0x1d   : > { %662 = vmatpush.bf16.msra.mxu3 %v1334_v33  ;;  %787 = vmatpush.bf16.msrb.mxu1 %v1343_v55 }
  0x1e   : > { %622 = vmatpush.bf16.msra.mxu2 %v1338_v42 }
  0x20   : > { %736 = vmatpush.bf16.msrb.mxu0 %v1346_v63  ;;  %v1361_v63 = vld [vmem:[%s1656_s8 + $0x18] sm:$0xff] }
  0x21   : > { %v569_v39 = vld [vmem:[#allocation2] sm:$0xf]  ;;  %894 = vmatpush.bf16.msrb.mxu3 %v1353_v36  ;;  %788 = vmatpush.bf16.msrb.mxu1 %v1342_v0  ;;  %v1358_v0 = vld [vmem:[%s1656_s8] sm:$0xff] }
  0x22   : > { %1192 = vmatmul.msk.bf16.vlgmr.msra.gmra.mxu3 %vm611_vm8, %v569_v39  ;;  %v669_v50 = vld [vmem:[#allocation2 + $0x4] sm:$0x1]  ;;  %850 = vmatpush.bf16.msrb.mxu2 %v1357_v48  ;;  %v795_v2 = vld [vmem:[#allocation2] sm:$0xe] }
  0x23   : > { %v745_v1 = vunpack.c.l.b16 %v669_v50  ;;  %v860_v7 = vunpack.c.l.b16 %v795_v2  ;;  %v668_v8 = vld [vmem:[#allocation2] sm:$0xf] }
  0x24   : > { %v744_v10 = vunpack.c.l.b16 %v668_v8  ;;  %978 = vmatpush.bf16.msra.mxu0 %v1361_v63 }
  0x25   : > { %895 = vmatpush.bf16.msrb.mxu3 %v1352_v41  ;;  %v861_v16 = vpack.c.b16 %v745_v1, %v860_v7 }
  0x26   : > { %851 = vmatpush.bf16.msrb.mxu2 %v1356_v60  ;;  %v746_v17 = vpack.c.b16 %v745_v1, %v744_v10  ;;  %v1359_v60 = vld [vmem:[%s1656_s8 + $0x8] sm:$0xff]  ;;  %v1362_v1 = vld [vmem:[%s1656_s8 + $0x20] sm:$0xff] }
  0x27   : > { %v862_v18 = vrot.slane %v861_v16, 1  ;;  %1006 = vmatpush.bf16.msra.mxu1 %v1359_v60  ;;  %v1373_v10 = vld [vmem:[%s1654_s6] ss:$0 sm:$0xff] }
  0x28   : > { %v748_v19 = vshrl.u32 %v746_v17, 16  ;;  %v750_v20 = vshll.u32 %v746_v17, 16 }
  0x29   : > { %896 = vmatpush.bf16.msrb.mxu3 %v1351_v49 }
  0x2a   : > { %852 = vmatpush.bf16.msrb.mxu2 %v1355_v15  ;;  %v752_v22 = vrot.slane %v750_v20, 1 }
  0x2b   : > { %1007 = vmatpush.bf16.msra.mxu1 %v1358_v0 }
  0x2c   : > { %v753_v24 = vor.u32 %v752_v22, %v748_v19 }
  0x2d   : > { %897 = vmatpush.bf16.msrb.mxu3 %v1350_v61 }
  0x2e   : > { %853 = vmatpush.bf16.msrb.mxu2 %v1354_v23  ;;  %1242 = vmatmul.msk.bf16.vlgmr.msrb.gmra.mxu1 %vm611_vm8, %v753_v24 }
  0x32   : > { %1292 = vmatmul.msk.bf16.vlgmr.msrb.gmra.mxu3 %vm611_vm8, %v862_v18 }
  0x90   : > { %v481_v44 = vpop.f32.mrf.mxu0  ;;  %v511_v45 = vpop.f32.mrf.mxu1 }
  0x91   : > { %v482_v46 = vadd.f32 %v1372_v43, %v481_v44  ;;  %v512_v47 = vadd.f32 %v1372_v43, %v511_v45 }
  0x93   : > { %v516_v51 = vrot.slane %v482_v46, 1  ;;  %v517_v52 = vrot.slane %v482_v46, 2  ;;  %v523_v53 = vrot.slane %v512_v47, 1  ;;  %v518_v56 = vrot.slane %v482_v46, 3 }
  0x94   : > { %v524_v57 = vrot.slane %v512_v47, 2  ;;  %v525_v58 = vrot.slane %v512_v47, 3  ;;  %v526_v59 = vperm.slane %v512_v47, 0 }
  0x95   : > { %v527_v62 = vperm.slane %v523_v53, 0  ;;  %v425_v53 = vld [vmem:[#allocation4 + $0x4] sm:$0x1] }
  0x96   : > { %v528_v3 = vperm.slane %v524_v57, 0  ;;  %v529_v4 = vperm.slane %v525_v58, 0  ;;  %v535_v6 = vsel %vm534_vm9, %v482_v46, %v526_v59  ;;  %v426_v57 = vsel %vm424_vm12, 0, %v425_v53 }
  0x97   : > { %v536_v9 = vsel %vm534_vm9, %v516_v51, %v527_v62  ;;  %543 = vst [vmem:[#allocation1] ss:$4 sm:$0xff] %v535_v6  ;;  %v1363_v62 = vld [vmem:[%s1656_s8 + $0x28] sm:$0xff] }
  0x98   : > { %v537_v11 = vsel %vm534_vm9, %v517_v52, %v528_v3  ;;  %v538_v12 = vsel %vm534_vm9, %v518_v56, %v529_v4  ;;  %545 = vst [vmem:[#allocation1 + $0x1] ss:$4 sm:$0xff] %v536_v9  ;;  %v483_v13 = vpop.f32.mrf.mxu0  ;;  %v513_v14 = vpop.f32.mrf.mxu1  ;;  %v421_v52 = vld [vmem:[#allocation4] sm:$0x1] }
  0x99   : > { %547 = vst [vmem:[#allocation1 + $0x2] ss:$4 sm:$0xff] %v537_v11  ;;  %v422_v55 = vsel %vm1596_vm11, 0, %v421_v52  ;;  %v1360_v11 = vld [vmem:[%s1656_s8 + $0x10] sm:$0xff]  ;;  %v1374_v13 = vld [vmem:[%s1655_s7] ss:$0 sm:$0xff] }
  0x9a   : > { %549 = vst [vmem:[#allocation1 + $0x3] ss:$4 sm:$0xff] %v538_v12  ;;  %979 = vmatpush.bf16.msra.mxu0 %v1360_v11 }
  0x9b   : > { %423 = vst [vmem:[#allocation4] sm:$0x1] %v422_v55 }
  0x9c   : > { %427 = vst [vmem:[#allocation4 + $0x4] sm:$0x1] %v426_v57 }
  0xa1   : > { %v550_v25 = vld.sshfl [vmem:[#allocation1] sm:$0xff pattern:$0x73625140] }
  0xa2   : > { %v552_v26 = vpack.c.bf16 %v550_v25, %v550_v25  ;;  %v928_v23 = vld [vmem:[#allocation4] sm:$0xf] }
  0xa3   : > { %v931_v24 = vld [vmem:[#allocation4 + $0x4] sm:$0x1] }
  0xa4   : > { %v554_v27 = vshrl.u32 %v552_v26, 16  ;;  %v557_v29 = vshll.u32 %v552_v26, 16 }
  0xa5   : > { %v664_v48 = vpop.f32.mrf.mxu3 }
  0xa6   : > { %v556_v28 = vrot.slane %v554_v27, 7 }
  0xa8   : > { %v559_v32 = vor.u32 %v557_v29, %v556_v28  ;;  %v560_v33 = vrot.slane %v556_v28, 4 }
  0xaa   : > { %v564_v34 = vsel %vm1498_vm7, %v559_v32, %v563_v30  ;;  %v567_v35 = vsel %vm1468_vm2, %v560_v33, %v566_v31 }
  0xab   : > { %565 = vst [vmem:[#allocation3] sm:$0xf] %v564_v34  ;;  %v790_v50 = vpop.f32.mrf.mxu1 }
  0xac   : > { %568 = vst [vmem:[#allocation3 + $0x4] sm:$0x1] %v567_v35 }
  0xad   : > { %v666_v49 = vpop.f32.mrf.mxu3 }
  0xb2   : > { %v578_v36 = vld [vmem:[#allocation3] sm:$0xf] }
  0xb3   : > { %v679_v37 = vld [vmem:[#allocation3] sm:$0xf]  ;;  %1175 = vmatmul.msk.bf16.vlgmr.msra.gmra.mxu2 %vm611_vm8, %v578_v36  ;;  %v680_v38 = vld [vmem:[#allocation3 + $0x4] sm:$0x1]  ;;  %v792_v56 = vpop.f32.mrf.mxu1 }
  0xb4   : > { %v692_v39 = vunpack.c.l.b16 %v679_v37  ;;  %v693_v40 = vunpack.c.l.b16 %v680_v38  ;;  %v805_v42 = vld [vmem:[#allocation3] sm:$0xe]  ;;  %1044 = vmatpush.bf16.msra.mxu2 %v1363_v62 }
  0xb5   : > { %v816_v44 = vunpack.c.l.b16 %v805_v42  ;;  %v899_v51 = vpop.f32.mrf.mxu3 }
  0xb6   : > { %v694_v41 = vpack.c.b16 %v693_v40, %v692_v39 }
  0xb7   : > { %v817_v47 = vpack.c.b16 %v693_v40, %v816_v44 }
  0xb8   : > { %v698_v43 = vshll.u32 %v694_v41, 16  ;;  %v696_v45 = vshrl.u32 %v694_v41, 16  ;;  %1045 = vmatpush.bf16.msra.mxu2 %v1362_v1 }
  0xb9   : > { %v818_v5 = vrot.slane %v817_v47, 1 }
  0xba   : > { %v700_v46 = vrot.slane %v698_v43, 1 }
  0xbc   : > { %v701_v21 = vor.u32 %v700_v46, %v696_v45  ;;  %v1375_v46 = vld [vmem:[%s1657_s9] ss:$0 sm:$0xff] }
  0xbd   : > { %v901_v58 = vpop.f32.mrf.mxu3 }
  0xbe   : > { %1225 = vmatmul.msk.bf16.vlgmr.msrb.gmra.mxu0 %vm611_vm8, %v701_v21 }
  0xc3   : > { %1275 = vmatmul.msk.bf16.vlgmr.msrb.gmra.mxu2 %vm611_vm8, %v818_v5  ;;  %v1376_v5 = vld [vmem:[%s1658_s10] ss:$0 sm:$0xff] }
 0x136   : > { %v624_v59 = vpop.f32.mrf.mxu2 }
 0x137   : > { %v665_v6 = vadd.f32 %v664_v48, %v624_v59 }
 0x13b   : > { %v738_v61 = vpop.f32.mrf.mxu0 }
 0x13c   : > { %v791_v3 = vadd.f32 %v790_v50, %v738_v61 }
 0x13e   : > { %v626_v2 = vpop.f32.mrf.mxu2  ;;  %v794_v8 = vadd.f32 %v791_v3, %v665_v6 }
 0x143   : > { %v740_v4 = vpop.f32.mrf.mxu0 }
 0x146   : > { %v855_v7 = vpop.f32.mrf.mxu2 }
 0x147   : > { %v900_v9 = vadd.f32 %v899_v51, %v855_v7 }
 0x149   : > { %v903_v12 = vadd.f32 %v900_v9, %v794_v8 }
 0x14b   : > { %v908_v14 = vmul.f32 %v1373_v10, %v903_v12 }
 0x14d   : > { %v913_v15 = vadd.f32 %v1374_v13, %v908_v14 }
 0x14e   : > { %v857_v16 = vpop.f32.mrf.mxu2 }
 0x14f   : > { %v914_v17 = vmax.f32 %v913_v15, 0.0 }
 0x151   : > { %v915_v18 = vpack.c.bf16 %v914_v17, %v914_v17 }
 0x153   : > { %v917_v19 = vshrl.u32 %v915_v18, 16  ;;  %v920_v22 = vshll.u32 %v915_v18, 16 }
 0x155   : > { %v919_v20 = vrot.slane %v917_v19, 7 }
 0x157   : > { %v922_v25 = vor.u32 %v920_v22, %v919_v20  ;;  %v923_v26 = vrot.slane %v919_v20, 4 }
 0x159   : > { %v929_v27 = vsel %vm927_vm14, %v922_v25, %v928_v23  ;;  %v932_v28 = vsel %vm1596_vm11, %v923_v26, %v931_v24 }
 0x15a   : > { %930 = vst [vmem:[#allocation4] sm:$0xf] %v929_v27 }
 0x15b   : > { %933 = vst [vmem:[#allocation4 + $0x4] sm:$0x1] %v932_v28 }
 0x161   : > { %v934_v29 = vld [vmem:[#allocation4] sm:$0xf] }
 0x162   : > { %v1013_v30 = vld [vmem:[#allocation4] sm:$0xe]  ;;  %v939_v31 = vld [vmem:[#allocation4 + $0x4] sm:$0x1]  ;;  %v947_v32 = vunpack.c.l.b16 %v934_v29  ;;  %1314 = vmatmul.msk.bf16.vlgmr.msra.gmra.mxu1 %vm468_vm5, %v934_v29 }
 0x163   : > { %v1020_v33 = vunpack.c.l.b16 %v1013_v30  ;;  %v948_v34 = vunpack.c.l.b16 %v939_v31 }
 0x165   : > { %v949_v35 = vpack.c.b16 %v948_v34, %v947_v32  ;;  %v1021_v36 = vpack.c.b16 %v948_v34, %v1020_v33 }
 0x167   : > { %v953_v37 = vshll.u32 %v949_v35, 16  ;;  %v1022_v38 = vrot.slane %v1021_v36, 1  ;;  %v951_v39 = vshrl.u32 %v949_v35, 16 }
 0x169   : > { %v955_v40 = vrot.slane %v953_v37, 1  ;;  %1327 = vmatmul.msk.bf16.vlgmr.msra.gmra.mxu2 %vm468_vm5, %v1022_v38 }
 0x16b   : > { %v956_v41 = vor.u32 %v955_v40, %v951_v39 }
 0x16d   : > { %1305 = vmatmul.msk.bf16.vlgmr.msra.gmra.mxu0 %vm468_vm5, %v956_v41 }
 0x1df   : > { %v1009_v42 = vpop.f32.mrf.mxu1 }
 0x1e7   : > { %v1011_v43 = vpop.f32.mrf.mxu1 }
 0x1ea   : > { %v981_v44 = vpop.f32.mrf.mxu0 }
 0x1eb   : > { %v1010_v45 = vadd.f32 %v1009_v42, %v981_v44 }
 0x1ec   : > { %v1047_v21 = vpop.f32.mrf.mxu2 }
 0x1ed   : > { %v1051_v47 = vadd.f32 %v1047_v21, %v1010_v45 }
 0x1ef   : > { %v1056_v48 = vmul.f32 %v1375_v46, %v1051_v47 }
 0x1f1   : > { %v1061_v49 = vadd.f32 %v1376_v5, %v1056_v48 }
 0x1f2   : > { %v983_v50 = vpop.f32.mrf.mxu0 }
 0x1f3   : > { %v1062_v51 = vmax.f32 %v1061_v49, 0.0 }
 0x1f4   : > { %v1049_v52 = vpop.f32.mrf.mxu2 }
 0x1f5   : > { %1063 = vst.msk [vmem:[%s398_s26] sm:$0xff] %vm468_vm5, %v1062_v51 }
 0x1f6 PF: > { %s21_s17 = sadd.s32 1, %s1383_s17  }
 0x1f7   : > { %p18_p4 = scmp.ge.s32.totalorder %s21_s17, 6  }
 0x1f9   :  { %20 = sbr.rel (!%p18_p4) target bundleno = 1 (0x1), region = 107 }

// kernel: siamese_unet_forward.16
= control target key start
LH: loop header
LB: loop body
LE: loop exit
PB: predicated region body
PF: predicated region fallthrough
CT: control target
= control target key end

     0   :  { %s1711_s17 = smov 0   ;;  %s1953_s0 = inlined_call_operand.vmem [shape: f32[4,8,32], index: 0, kind: input, shape index: {}]   ;;  %s1954_s1 = inlined_call_operand.vmem [shape: f32[4,16,64], index: 1, kind: input, shape index: {}]   ;;  %s1955_s2 = inlined_call_operand.vmem [shape: bf16[2,32,64], index: 2, kind: input, shape index: {}]   ;;  %s1956_s3 = inlined_call_operand.vmem [shape: f32[1,64], index: 3, kind: input, shape index: {}]   ;;  %s1957_s4 = inlined_call_operand.vmem [shape: bf16[3,64,64], index: 4, kind: input, shape index: {}]   ;;  %s1958_s5 = inlined_call_operand.vmem [shape: bf16[3,64,64], index: 5, kind: input, shape index: {}]   ;;  %s1959_s6 = inlined_call_operand.vmem [shape: f32[1,64], index: 6, kind: input, shape index: {}]   ;;  %s1960_s7 = inlined_call_operand.vmem [shape: f32[1,64], index: 7, kind: input, shape index: {}]   ;;  %s1961_s8 = inlined_call_operand.vmem [shape: bf16[3,64,64], index: 8, kind: input, shape index: {}]   ;;  %s1962_s9 = inlined_call_operand.vmem [shape: f32[1,64], index: 9, kind: input, shape index: {}]   ;;  %s1963_s10 = inlined_call_operand.vmem [shape: f32[1,64], index: 10, kind: input, shape index: {}]   ;;  %s1964_s11 = inlined_call_operand.vmem [shape: f32[4,16,64], index: 11, kind: output, shape index: {}]  }
   0x1 LB: > { %s1322_s18 = sadd.s32 4294967295, %s1649_s17   ;;  %p1326_p0 = scmp.ge.s32.totalorder %s1649_s17, 1  ;;  %s1649_s17 = sphi %s1711_s17, %s21_s17  }
   0x2   : > { %p346_p1 = scmp.lt.s32.totalorder %s1649_s17, 5 }
   0x4   : > { %p347_p2 = pnand %p1326_p0, %p346_p1 }
   0x5   : > { %p390_p3 = scmp.lt.s32.totalorder (!%p347_p2), %s1322_s18, 3 }
   0x6   : > { %350 = sbr.rel (%p347_p2) target bundleno = 525 (0x20d), region = 64 }
   0xb   : > { %v1568_v0 = vld [vmem:[%s1955_s2 + $0x8] sm:$0xff]  ;;  %v1570_v1 = vld [vmem:[%s1955_s2 + $0x18] sm:$0xff]  ;;  %vm408_vm0 = vcmask 516096   ;;  %v1567_v2 = vld [vmem:[%s1955_s2] sm:$0xff]  ;;  %vm409_vm1 = vsmask.f32 256 }
   0xc   : > { %v411_v3 = vld [vmem:[#allocation2] sm:$0x1]  ;;  %496 = vmatpush.bf16.msra.mxu0 %v1568_v0  ;;  %526 = vmatpush.bf16.msra.mxu1 %v1570_v1  ;;  %v1569_v4 = vld [vmem:[%s1955_s2 + $0x10] sm:$0xff]  ;;  %s1974_s18 = smov (!%p390_p3, %s1322_s18), 3  ;;  %vm1734_vm2 = vmand %vm408_vm0, %vm409_vm1  ;;  %vm414_vm3 = vsmask.f32 7938 }
   0xd   : > { %v416_v6 = vld [vmem:[#allocation2 + $0x8] sm:$0x1]  ;;  %v412_v7 = vsel %vm1734_vm2, 0, %v411_v3  ;;  %vm1741_vm4 = vmand %vm408_vm0, %vm414_vm3  ;;  %v419_v9 = vld [vmem:[#allocation3] sm:$0x1]  ;;  %s1327_s27 = sshll.u32 %s1974_s18, 3 }
   0xe   : > { %v422_v10 = vld [vmem:[#allocation3 + $0x8] sm:$0x1]  ;;  %s1565_s28 = sshll.u32 %s1974_s18, 4  ;;  %413 = vst [vmem:[#allocation2] sm:$0x1] %v412_v7  ;;  %v417_v11 = vsel %vm1741_vm4, 0, %v416_v6  ;;  %s393_s12 = scalar_lea.vmem %s1953_s0, %s1327_s27 }
   0xf   : > { %v420_v12 = vsel %vm1734_vm2, 0, %v419_v9  ;;  %s398_s15 = scalar_lea.vmem %s1954_s1, %s1565_s28  ;;  %418 = vst [vmem:[#allocation2 + $0x8] sm:$0x1] %v417_v11  ;;  %v423_v13 = vsel %vm1741_vm4, 0, %v422_v10  ;;  %vm455_vm5 = vcmask 519168   ;;  %v405_v14 = vld [vmem:[%s393_s12] sm:$0xff]  ;;  %s403_s22 = scalar_lea.vmem %s1964_s11, %s1565_s28 }
  0x10   : > { %497 = vmatpush.bf16.msra.mxu0 %v1567_v2  ;;  %527 = vmatpush.bf16.msra.mxu1 %v1569_v4  ;;  %v406_v15 = vld [vmem:[%s398_s15] sm:$0xff]  ;;  %v407_v16 = vld [vmem:[%s398_s15 + $0x8] sm:$0xff]  ;;  %421 = vst [vmem:[#allocation3] sm:$0x1] %v420_v12  ;;  %vm486_vm6 = vcmask 261120   ;;  %v465_v19 = vpack.c.bf16 %v405_v14, %v405_v14  ;;  %vm1763_vm8 = vmand %vm455_vm5, %vm414_vm3  ;;  %vm686_vm10 = vcmask 523264  }
  0x11   : > { %424 = vst [vmem:[#allocation3 + $0x8] sm:$0x1] %v423_v13  ;;  %v431_v17 = vpack.c.bf16 %v406_v15, %v406_v15  ;;  %v432_v18 = vpack.c.bf16 %v407_v16, %v407_v16  ;;  %vm433_vm7 = vsmask.f32 4368  ;;  %v1575_v37 = vld [vmem:[%s1957_s4 + $0x18] sm:$0xff]  ;;  %v1574_v39 = vld [vmem:[%s1957_s4 + $0x10] sm:$0xff] }
  0x12   : > { %vm1768_vm9 = vmor %vm409_vm1, %vm433_vm7  ;;  %v1580_v38 = vld [vmem:[%s1958_s5 + $0x18] sm:$0xff]  ;;  %740 = vmatpush.bf16.msra.mxu3 %v1575_v37  ;;  %v1579_v40 = vld [vmem:[%s1958_s5 + $0x10] sm:$0xff]  ;;  %vm572_vm11 = vcmask 1040384   ;;  %vm782_vm12 = vsmask.f32 7424  ;;  %vm922_vm13 = vcmask 1046528  }
  0x13   : > { %v436_v20 = vshrl.u32 %v431_v17, 16  ;;  %v439_v21 = vshll.u32 %v431_v17, 16  ;;  %v444_v22 = vshrl.u32 %v432_v18, 16  ;;  %v447_v23 = vshll.u32 %v432_v18, 16  ;;  %1340 = vmatmul.msk.bf16.vlgmr.msra.gmra.mxu0 %vm486_vm6, %v465_v19  ;;  %1353 = vmatmul.msk.bf16.vlgmr.msra.gmra.mxu1 %vm486_vm6, %v465_v19  ;;  %v1588_v41 = vld [vmem:[%s1958_s5 + $0x38] sm:$0xff]  ;;  %v1587_v43 = vld [vmem:[%s1958_s5 + $0x30] sm:$0xff] }
  0x14   : > { %694 = vmatpush.bf16.msra.mxu2 %v1580_v38  ;;  %v1584_v42 = vld [vmem:[%s1957_s4 + $0x38] sm:$0xff]  ;;  %826 = vmatpush.bf16.msrb.mxu0 %v1588_v41  ;;  %v1583_v44 = vld [vmem:[%s1957_s4 + $0x30] sm:$0xff]  ;;  %v1573_v45 = vld [vmem:[%s1957_s4 + $0x8] sm:$0xff] }
  0x15   : > { %v438_v24 = vrot.slane %v436_v20, 7  ;;  %v446_v25 = vrot.slane %v444_v22, 7  ;;  %v457_v28 = vld [vmem:[#allocation2] sm:$0xf]  ;;  %887 = vmatpush.bf16.msrb.mxu1 %v1584_v42  ;;  %v1572_v47 = vld [vmem:[%s1957_s4] sm:$0xff]  ;;  %v1592_v49 = vld [vmem:[%s1957_s4 + $0x58] sm:$0xff] }
  0x16   : > { %v462_v29 = vld [vmem:[#allocation2 + $0x8] sm:$0x1]  ;;  %741 = vmatpush.bf16.msra.mxu3 %v1574_v39  ;;  %v1578_v46 = vld [vmem:[%s1958_s5 + $0x8] sm:$0xff]  ;;  %v1577_v48 = vld [vmem:[%s1958_s5] sm:$0xff] }
  0x17   : > { %v441_v30 = vor.u32 %v439_v21, %v438_v24  ;;  %v442_v31 = vrot.slane %v438_v24, 4  ;;  %v449_v32 = vor.u32 %v447_v23, %v446_v25  ;;  %v451_v33 = vrot.slane %v446_v25, 4  ;;  %v1638_v50 = vld [vmem:[%s1956_s3] ss:$0 sm:$0xff]  ;;  %v1591_v52 = vld [vmem:[%s1957_s4 + $0x50] sm:$0xff]  ;;  %v1586_v23 = vld [vmem:[%s1958_s5 + $0x28] sm:$0xff] }
  0x18   : > { %695 = vmatpush.bf16.msra.mxu2 %v1579_v40  ;;  %827 = vmatpush.bf16.msrb.mxu0 %v1587_v43  ;;  %v1582_v24 = vld [vmem:[%s1957_s4 + $0x28] sm:$0xff]  ;;  %v1596_v25 = vld [vmem:[%s1958_s5 + $0x58] sm:$0xff] }
  0x19   : > { %v450_v34 = vsel %vm1768_vm9, %v442_v31, %v449_v32  ;;  %v458_v35 = vsel %vm1763_vm8, %v441_v30, %v457_v28  ;;  %v463_v36 = vsel %vm1734_vm2, %v451_v33, %v462_v29  ;;  %888 = vmatpush.bf16.msrb.mxu1 %v1583_v44  ;;  %v1590_v29 = vld [vmem:[%s1957_s4 + $0x48] sm:$0xff]  ;;  %v1585_v31 = vld [vmem:[%s1958_s5 + $0x20] sm:$0xff]  ;;  %v1608_v8 = vld [vmem:[%s1961_s8 + $0x58] sm:$0xff] }
  0x1a   : > { %459 = vst [vmem:[#allocation2] sm:$0xf] %v458_v35  ;;  %742 = vmatpush.bf16.msra.mxu3 %v1573_v45  ;;  %v1581_v32 = vld [vmem:[%s1957_s4 + $0x20] sm:$0xff]  ;;  %v1595_v35 = vld [vmem:[%s1958_s5 + $0x50] sm:$0xff] }
  0x1b   : > { %461 = vst.msk [vmem:[#allocation2 + $0x4] sm:$0xf] %vm455_vm5, %v450_v34 }
  0x1c   : > { %464 = vst [vmem:[#allocation2 + $0x8] sm:$0x1] %v463_v36  ;;  %696 = vmatpush.bf16.msra.mxu2 %v1578_v46  ;;  %828 = vmatpush.bf16.msrb.mxu0 %v1586_v23  ;;  %v1589_v36 = vld [vmem:[%s1957_s4 + $0x40] sm:$0xff] }
  0x1d   : > { %889 = vmatpush.bf16.msrb.mxu1 %v1582_v24 }
  0x1e   : > { %743 = vmatpush.bf16.msra.mxu3 %v1572_v47 }
  0x20   : > { %697 = vmatpush.bf16.msra.mxu2 %v1577_v48  ;;  %829 = vmatpush.bf16.msrb.mxu0 %v1585_v31 }
  0x21   : > { %v1625_v43 = vld [vmem:[#allocation2] sm:$0xe]  ;;  %890 = vmatpush.bf16.msrb.mxu1 %v1581_v32 }
  0x22   : > { %v1571_v51 = vld [vmem:[#allocation2] sm:$0xff]  ;;  %1004 = vmatpush.bf16.msrb.mxu3 %v1592_v49 }
  0x23   : > { %1395 = vmatmul.msk.bf16.vlgmr.msra.gmra.mxu3 %vm686_vm10, %v1571_v51  ;;  %v1610_v33 = vld [vmem:[#allocation2] sm:$0xff]   ;;  %v752_v37 = vld [vmem:[#allocation2 + $0x8] sm:$0x1] }
  0x24   : > { %957 = vmatpush.bf16.msrb.mxu2 %v1596_v25  ;;  %v841_v39 = vunpack.c.l.b16 %v752_v37  ;;  %v847_v40 = vshll.u32 %v1610_v33, 16  ;;  %v1624_v41 = vld [vmem:[#allocation2] sm:$0xf0]  ;;  %v845_v42 = vshrl.u32 %v1610_v33, 16  ;;  %v425_v33 = vld [vmem:[#allocation4] sm:$0x1] }
  0x25   : > { %v1626_v46 = vor.u32 %v1625_v43, %v1624_v41  ;;  %v1594_v51 = vld [vmem:[%s1958_s5 + $0x48] sm:$0xff] }
  0x26   : > { %1005 = vmatpush.bf16.msrb.mxu3 %v1591_v52  ;;  %v843_v44 = vpack.c.b16 %v841_v39, %v841_v39  ;;  %v849_v45 = vrot.slane %v847_v40, 1  ;;  %v428_v37 = vld [vmem:[#allocation4 + $0x8] sm:$0x1]  ;;  %v1600_v40 = vld [vmem:[%s1961_s8 + $0x18] sm:$0xff] }
  0x27   : > { %v970_v49 = vrot.slane %v1626_v46, 1  ;;  %1170 = vmatpush.bf16.msra.mxu1 %v1600_v40 }
  0x28   : > { %958 = vmatpush.bf16.msrb.mxu2 %v1595_v35  ;;  %v850_v47 = vor.u32 %v849_v45, %v845_v42  ;;  %v852_v48 = vshll.u32 %v843_v44, 16  ;;  %v1598_v45 = vld [vmem:[%s1961_s8 + $0x8] sm:$0xff] }
  0x2a   : > { %1006 = vmatpush.bf16.msrb.mxu3 %v1590_v29 }
  0x2c   : > { %959 = vmatpush.bf16.msrb.mxu2 %v1594_v51 }
  0x2e   : > { %1007 = vmatpush.bf16.msrb.mxu3 %v1589_v36 }
  0x90   : > { %v499_v53 = vpop.f32.mrf.mxu0  ;;  %v529_v54 = vpop.f32.mrf.mxu1 }
  0x91   : > { %v500_v55 = vadd.f32 %v1638_v50, %v499_v53  ;;  %v530_v56 = vadd.f32 %v1638_v50, %v529_v54  ;;  %v971_v50 = vrot.slane %v843_v44, 1  ;;  %v854_v53 = vrot.slane %v852_v48, 1  ;;  %v1599_v44 = vld [vmem:[%s1961_s8 + $0x10] sm:$0xff] }
  0x92   : > { %1171 = vmatpush.bf16.msra.mxu1 %v1599_v44  ;;  %v1607_v48 = vld [vmem:[%s1961_s8 + $0x50] sm:$0xff] }
  0x93   : > { %v534_v57 = vrot.slane %v500_v55, 1  ;;  %v535_v58 = vrot.slane %v500_v55, 2  ;;  %v536_v59 = vrot.slane %v500_v55, 3  ;;  %v537_v60 = vrot.slane %v500_v55, 4 }
  0x94   : > { %v538_v61 = vrot.slane %v500_v55, 5  ;;  %v539_v62 = vrot.slane %v500_v55, 6  ;;  %v549_v63 = vrot.slane %v530_v56, 1  ;;  %v550_v0 = vrot.slane %v530_v56, 2 }
  0x95   : > { %v551_v1 = vrot.slane %v530_v56, 3  ;;  %v552_v2 = vrot.slane %v530_v56, 4  ;;  %v553_v3 = vrot.slane %v530_v56, 5  ;;  %v554_v4 = vrot.slane %v530_v56, 6 }
  0x96   : > { %v555_v6 = vrot.slane %v530_v56, 7  ;;  %v556_v7 = vperm.slane %v530_v56, 0  ;;  %v557_v9 = vperm.slane %v549_v63, 0  ;;  %v558_v10 = vperm.slane %v550_v0, 0  ;;  %v1593_v56 = vld [vmem:[%s1958_s5 + $0x40] sm:$0xff]  ;;  %1172 = vmatpush.bf16.msra.mxu1 %v1598_v45 }
  0x97   : > { %v559_v11 = vperm.slane %v551_v1, 0  ;;  %v560_v12 = vperm.slane %v552_v2, 0  ;;  %v561_v13 = vperm.slane %v553_v3, 0  ;;  %v540_v14 = vrot.slane %v500_v55, 7  ;;  %960 = vmatpush.bf16.msrb.mxu2 %v1593_v56  ;;  %v630_v63 = vld [vmem:[#allocation3] sm:$0xf] }
  0x98   : > { %v562_v15 = vperm.slane %v554_v4, 0  ;;  %v573_v16 = vsel %vm572_vm11, %v500_v55, %v556_v7  ;;  %v574_v17 = vsel %vm572_vm11, %v534_v57, %v557_v9  ;;  %v501_v18 = vpop.f32.mrf.mxu0  ;;  %v531_v19 = vpop.f32.mrf.mxu1  ;;  %v563_v20 = vperm.slane %v555_v6, 0  ;;  %v634_v7 = vld [vmem:[#allocation3 + $0x8] sm:$0x1]  ;;  %v1639_v56 = vld [vmem:[%s1959_s6] ss:$0 sm:$0xff] }
  0x99   : > { %v575_v21 = vsel %vm572_vm11, %v535_v58, %v558_v10  ;;  %v576_v22 = vsel %vm572_vm11, %v536_v59, %v559_v11  ;;  %589 = vst [vmem:[#allocation1] ss:$4 sm:$0xff] %v573_v16  ;;  %v577_v28 = vsel %vm572_vm11, %v537_v60, %v560_v12  ;;  %v578_v30 = vsel %vm572_vm11, %v538_v61, %v561_v13 }
  0x9a   : > { %591 = vst [vmem:[#allocation1 + $0x1] ss:$4 sm:$0xff] %v574_v17  ;;  %v579_v34 = vsel %vm572_vm11, %v539_v62, %v562_v15  ;;  %v580_v38 = vsel %vm572_vm11, %v540_v14, %v563_v20  ;;  %v972_v54 = vsel %vm922_vm13, %v970_v49, %v971_v50  ;;  %v855_v57 = vsel %vm782_vm12, %v850_v47, %v854_v53  ;;  %v1604_v47 = vld [vmem:[%s1961_s8 + $0x38] sm:$0xff]  ;;  %v1597_v50 = vld [vmem:[%s1961_s8] sm:$0xff] }
  0x9b   : > { %593 = vst [vmem:[#allocation1 + $0x2] ss:$4 sm:$0xff] %v575_v21  ;;  %1495 = vmatmul.msk.bf16.vlgmr.msrb.gmra.mxu3 %vm686_vm10, %v972_v54  ;;  %1445 = vmatmul.msk.bf16.vlgmr.msrb.gmra.mxu1 %vm686_vm10, %v855_v57  ;;  %v1606_v57 = vld [vmem:[%s1961_s8 + $0x48] sm:$0xff] }
  0x9c   : > { %595 = vst [vmem:[#allocation1 + $0x3] ss:$4 sm:$0xff] %v576_v22  ;;  %1130 = vmatpush.bf16.msra.mxu0 %v1604_v47  ;;  %1173 = vmatpush.bf16.msra.mxu1 %v1597_v50 }
  0x9d   : > { %597 = vst [vmem:[#allocation1 + $0x20] ss:$4 sm:$0xff] %v577_v28 }
  0x9e   : > { %599 = vst [vmem:[#allocation1 + $0x21] ss:$4 sm:$0xff] %v578_v30 }
  0x9f   : > { %601 = vst [vmem:[#allocation1 + $0x22] ss:$4 sm:$0xff] %v579_v34  ;;  %v426_v34 = vsel %vm1734_vm2, 0, %v425_v33 }
  0xa0   : > { %603 = vst [vmem:[#allocation1 + $0x23] ss:$4 sm:$0xff] %v580_v38  ;;  %v429_v38 = vsel %vm1741_vm4, 0, %v428_v37 }
  0xa1   : > { %427 = vst [vmem:[#allocation4] sm:$0x1] %v426_v34 }
  0xa2   : > { %430 = vst [vmem:[#allocation4 + $0x8] sm:$0x1] %v429_v38 }
  0xa3   : > { %v604_v52 = vld.sshfl [vmem:[#allocation1] sm:$0xff pattern:$0x73625140] }
  0xa4   : > { %v608_v55 = vpack.c.bf16 %v604_v52, %v604_v52  ;;  %v1603_v52 = vld [vmem:[%s1961_s8 + $0x30] sm:$0xff] }
  0xa5   : > { %1131 = vmatpush.bf16.msra.mxu0 %v1603_v52 }
  0xa6   : > { %v611_v58 = vshrl.u32 %v608_v55, 16  ;;  %v614_v62 = vshll.u32 %v608_v55, 16  ;;  %v745_v35 = vpop.f32.mrf.mxu3 }
  0xa7   : > { %v605_v59 = vld.sshfl [vmem:[#allocation1 + $0x20] sm:$0xff pattern:$0x73625140] }
  0xa8   : > { %v609_v60 = vpack.c.bf16 %v605_v59, %v605_v59  ;;  %v613_v61 = vrot.slane %v611_v58, 7 }
  0xaa   : > { %v616_v0 = vor.u32 %v614_v62, %v613_v61  ;;  %v619_v1 = vshrl.u32 %v609_v60, 16  ;;  %v617_v2 = vrot.slane %v613_v61, 4  ;;  %v622_v4 = vshll.u32 %v609_v60, 16  ;;  %v1640_v61 = vld [vmem:[%s1960_s7] ss:$0 sm:$0xff] }
  0xac   : > { %v621_v3 = vrot.slane %v619_v1, 7  ;;  %v631_v6 = vsel %vm1763_vm8, %v616_v0, %v630_v63  ;;  %v1602_v0 = vld [vmem:[%s1961_s8 + $0x28] sm:$0xff] }
  0xad   : > { %632 = vst [vmem:[#allocation3] sm:$0xf] %v631_v6  ;;  %1132 = vmatpush.bf16.msra.mxu0 %v1602_v0 }
  0xae   : > { %v624_v9 = vor.u32 %v622_v4, %v621_v3  ;;  %v626_v10 = vrot.slane %v621_v3, 4  ;;  %v747_v39 = vpop.f32.mrf.mxu3  ;;  %v1605_v3 = vld [vmem:[%s1961_s8 + $0x40] sm:$0xff] }
  0xb0   : > { %v625_v11 = vsel %vm1768_vm9, %v617_v2, %v624_v9  ;;  %v635_v12 = vsel %vm1734_vm2, %v626_v10, %v634_v7  ;;  %v1601_v7 = vld [vmem:[%s1961_s8 + $0x20] sm:$0xff] }
  0xb1   : > { %633 = vst.msk [vmem:[#allocation3 + $0x4] sm:$0xf] %vm455_vm5, %v625_v11  ;;  %1133 = vmatpush.bf16.msra.mxu0 %v1601_v7 }
  0xb2   : > { %636 = vst [vmem:[#allocation3 + $0x8] sm:$0x1] %v635_v12 }
  0xb4   : > { %v1622_v25 = vld [vmem:[#allocation3] sm:$0xe] }
  0xb8   : > { %v1576_v13 = vld [vmem:[#allocation3] sm:$0xff] }
  0xb9   : > { %v1614_v14 = vld [vmem:[#allocation3] sm:$0xff]   ;;  %v764_v15 = vld [vmem:[#allocation3 + $0x8] sm:$0x1]  ;;  %1374 = vmatmul.msk.bf16.vlgmr.msra.gmra.mxu2 %vm686_vm10, %v1576_v13 }
  0xba   : > { %v786_v16 = vshll.u32 %v1614_v14, 16  ;;  %v779_v17 = vunpack.c.l.b16 %v764_v15  ;;  %v784_v20 = vshrl.u32 %v1614_v14, 16  ;;  %v1621_v24 = vld [vmem:[#allocation3] sm:$0xf0]  ;;  %1227 = vmatpush.bf16.msra.mxu2 %v1608_v8 }
  0xbb   : > { %v1623_v29 = vor.u32 %v1622_v25, %v1621_v24 }
  0xbc   : > { %v781_v18 = vpack.c.b16 %v779_v17, %v779_v17  ;;  %v788_v19 = vrot.slane %v786_v16, 1 }
  0xbd   : > { %v923_v31 = vrot.slane %v1623_v29, 1  ;;  %v1056_v29 = vld [vmem:[#allocation4 + $0x8] sm:$0x1] }
  0xbe   : > { %v791_v21 = vshll.u32 %v781_v18, 16  ;;  %v789_v22 = vor.u32 %v788_v19, %v784_v20  ;;  %v924_v30 = vrot.slane %v781_v18, 1  ;;  %1228 = vmatpush.bf16.msra.mxu2 %v1607_v48  ;;  %v1052_v19 = vld [vmem:[#allocation4] sm:$0xf] }
  0xc0   : > { %v793_v23 = vrot.slane %v791_v21, 1  ;;  %v925_v32 = vsel %vm922_vm13, %v923_v31, %v924_v30 }
  0xc2   : > { %v794_v28 = vsel %vm782_vm12, %v789_v22, %v793_v23  ;;  %1229 = vmatpush.bf16.msra.mxu2 %v1606_v57 }
  0xc3   : > { %1428 = vmatmul.msk.bf16.vlgmr.msrb.gmra.mxu0 %vm686_vm10, %v794_v28 }
  0xc6   : > { %1230 = vmatpush.bf16.msra.mxu2 %v1605_v3 }
  0xc9   : > { %1478 = vmatmul.msk.bf16.vlgmr.msrb.gmra.mxu2 %vm686_vm10, %v925_v32 }
 0x118   : > { %v892_v41 = vpop.f32.mrf.mxu1 }
 0x11e   : > { %v1009_v49 = vpop.f32.mrf.mxu3 }
 0x120   : > { %v894_v59 = vpop.f32.mrf.mxu1 }
 0x126   : > { %v1011_v4 = vpop.f32.mrf.mxu3 }
 0x13c   : > { %v699_v36 = vpop.f32.mrf.mxu2 }
 0x13d   : > { %v746_v51 = vadd.f32 %v745_v35, %v699_v36 }
 0x140   : > { %v831_v42 = vpop.f32.mrf.mxu0 }
 0x141   : > { %v893_v46 = vadd.f32 %v892_v41, %v831_v42 }
 0x143   : > { %v897_v54 = vadd.f32 %v893_v46, %v746_v51  ;;  %v1641_v51 = vld [vmem:[%s1962_s9] ss:$0 sm:$0xff] }
 0x144   : > { %v701_v43 = vpop.f32.mrf.mxu2 }
 0x145   : > { %v748_v1 = vadd.f32 %v747_v39, %v701_v43 }
 0x148   : > { %v833_v58 = vpop.f32.mrf.mxu0 }
 0x149   : > { %v895_v62 = vadd.f32 %v894_v59, %v833_v58 }
 0x14b   : > { %v898_v9 = vadd.f32 %v895_v62, %v748_v1 }
 0x14c   : > { %v962_v53 = vpop.f32.mrf.mxu2 }
 0x14d   : > { %v1010_v55 = vadd.f32 %v1009_v49, %v962_v53 }
 0x14f   : > { %v1014_v60 = vadd.f32 %v1010_v55, %v897_v54  ;;  %v1642_v54 = vld [vmem:[%s1963_s10] ss:$0 sm:$0xff] }
 0x151   : > { %v1020_v63 = vmul.f32 %v1639_v56, %v1014_v60 }
 0x153   : > { %v1026_v2 = vadd.f32 %v1640_v61, %v1020_v63 }
 0x154   : > { %v964_v6 = vpop.f32.mrf.mxu2 }
 0x155   : > { %v1028_v10 = vmax.f32 %v1026_v2, 0.0  ;;  %v1012_v11 = vadd.f32 %v1011_v4, %v964_v6 }
 0x157   : > { %v1030_v12 = vpack.c.bf16 %v1028_v10, %v1028_v10  ;;  %v1015_v13 = vadd.f32 %v1012_v11, %v898_v9 }
 0x159   : > { %v1033_v14 = vshrl.u32 %v1030_v12, 16  ;;  %v1021_v15 = vmul.f32 %v1639_v56, %v1015_v13  ;;  %v1036_v17 = vshll.u32 %v1030_v12, 16 }
 0x15b   : > { %v1035_v16 = vrot.slane %v1033_v14, 7  ;;  %v1027_v18 = vadd.f32 %v1640_v61, %v1021_v15 }
 0x15d   : > { %v1038_v20 = vor.u32 %v1036_v17, %v1035_v16  ;;  %v1029_v21 = vmax.f32 %v1027_v18, 0.0  ;;  %v1039_v30 = vrot.slane %v1035_v16, 4 }
 0x15f   : > { %v1053_v22 = vsel %vm1763_vm8, %v1038_v20, %v1052_v19  ;;  %v1031_v23 = vpack.c.bf16 %v1029_v21, %v1029_v21 }
 0x160   : > { %1054 = vst [vmem:[#allocation4] sm:$0xf] %v1053_v22 }
 0x161   : > { %v1041_v24 = vshrl.u32 %v1031_v23, 16  ;;  %v1044_v28 = vshll.u32 %v1031_v23, 16 }
 0x163   : > { %v1043_v25 = vrot.slane %v1041_v24, 7 }
 0x165   : > { %v1046_v31 = vor.u32 %v1044_v28, %v1043_v25  ;;  %v1048_v32 = vrot.slane %v1043_v25, 4 }
 0x167   : > { %v1047_v33 = vsel %vm1768_vm9, %v1039_v30, %v1046_v31  ;;  %v1057_v34 = vsel %vm1734_vm2, %v1048_v32, %v1056_v29  ;;  %v1628_v38 = vld [vmem:[#allocation4] sm:$0xe] }
 0x168   : > { %1055 = vst.msk [vmem:[#allocation4 + $0x4] sm:$0xf] %vm455_vm5, %v1047_v33 }
 0x169   : > { %1058 = vst [vmem:[#allocation4 + $0x8] sm:$0x1] %v1057_v34 }
 0x16f   : > { %v1618_v26 = vld [vmem:[#allocation4] sm:$0xff]  }
 0x170   : > { %v1627_v35 = vld [vmem:[#allocation4] sm:$0xf0]  ;;  %v1090_v36 = vshll.u32 %v1618_v26, 16  ;;  %1537 = vmatmul.msk.bf16.vlgmr.msra.gmra.mxu1 %vm686_vm10, %v1618_v26  ;;  %v1069_v37 = vld [vmem:[#allocation4 + $0x8] sm:$0x1]  ;;  %v1088_v43 = vshrl.u32 %v1618_v26, 16 }
 0x171   : > { %v1084_v39 = vunpack.c.l.b16 %v1069_v37  ;;  %v1629_v40 = vor.u32 %v1628_v38, %v1627_v35 }
 0x172   : > { %v1092_v41 = vrot.slane %v1090_v36, 1 }
 0x173   : > { %v1086_v42 = vpack.c.b16 %v1084_v39, %v1084_v39  ;;  %v1193_v27 = vrot.slane %v1629_v40, 1 }
 0x174   : > { %v1093_v5 = vor.u32 %v1092_v41, %v1088_v43 }
 0x175   : > { %v1194_v44 = vrot.slane %v1086_v42, 1  ;;  %v1095_v8 = vshll.u32 %v1086_v42, 16 }
 0x177   : > { %v1195_v45 = vsel %vm922_vm13, %v1193_v27, %v1194_v44  ;;  %v1097_v46 = vrot.slane %v1095_v8, 1 }
 0x178   : > { %1562 = vmatmul.msk.bf16.vlgmr.msra.gmra.mxu2 %vm686_vm10, %v1195_v45 }
 0x179   : > { %v1098_v47 = vsel %vm782_vm12, %v1093_v5, %v1097_v46 }
 0x17a   : > { %1520 = vmatmul.msk.bf16.vlgmr.msra.gmra.mxu0 %vm686_vm10, %v1098_v47 }
 0x1ed   : > { %v1175_v48 = vpop.f32.mrf.mxu1 }
 0x1f5   : > { %v1177_v58 = vpop.f32.mrf.mxu1 }
 0x1f7   : > { %v1135_v49 = vpop.f32.mrf.mxu0 }
 0x1f8   : > { %v1176_v50 = vadd.f32 %v1175_v48, %v1135_v49 }
 0x1fb   : > { %v1232_v52 = vpop.f32.mrf.mxu2 }
 0x1fc   : > { %v1237_v53 = vadd.f32 %v1232_v52, %v1176_v50 }
 0x1fe   : > { %v1243_v55 = vmul.f32 %v1641_v51, %v1237_v53 }
 0x1ff   : > { %v1137_v56 = vpop.f32.mrf.mxu0 }
 0x200   : > { %v1249_v57 = vadd.f32 %v1642_v54, %v1243_v55  ;;  %v1178_v60 = vadd.f32 %v1177_v58, %v1137_v56 }
 0x202   : > { %v1251_v59 = vmax.f32 %v1249_v57, 0.0 }
 0x203   : > { %v1234_v61 = vpop.f32.mrf.mxu2 }
 0x204   : > { %1253 = vst.msk [vmem:[%s403_s22] sm:$0xff] %vm686_vm10, %v1251_v59  ;;  %v1238_v62 = vadd.f32 %v1234_v61, %v1178_v60 }
 0x206   : > { %v1244_v63 = vmul.f32 %v1641_v51, %v1238_v62 }
 0x208   : > { %v1250_v0 = vadd.f32 %v1642_v54, %v1244_v63 }
 0x20a   : > { %v1252_v1 = vmax.f32 %v1250_v0, 0.0 }
 0x20c   : > { %1254 = vst.msk [vmem:[%s403_s22 + $0x8] sm:$0xff] %vm686_vm10, %v1252_v1 }
 0x20d PF: > { %s21_s17 = sadd.s32 1, %s1649_s17  }
 0x20e   : > { %p18_p4 = scmp.ge.s32.totalorder %s21_s17, 6  }
 0x210   :  { %20 = sbr.rel (!%p18_p4) target bundleno = 1 (0x1), region = 111 }

</bundles_post_ra>
